<compile_context>
chip_gen: v6e
topology: v6e:2x2x1
jax: 0.10.0
libtpu: 0.0.40
codegen_flags: <defaults>
</compile_context>

<pallas_src>
import jax
import jax.numpy as jnp
from jax import lax
from jax.experimental import pallas as pl
from jax.experimental.pallas import tpu as pltpu

BB = 8        # batch block = one sublane group
LANES = 128   # vreg lane width


def _round_up(x, m):
    return (x + m - 1) // m * m


# ----------------------- fused encoder+decoder kernel ------------------------

def _make_seq2seq_kernel(enc_layers, dec_layers):
    """Whole TransliterationModel forward in one kernel:
       encoder LSTM stack over src -> state handoff -> autoregressive decoder
       (LSTM stack + fc_out + greedy / teacher-forced feedback)."""

    def kernel(tf_ref, src_ref, tgt_ref, *rest):
        n_enc, n_dec = 3 * enc_layers, 3 * dec_layers
        enc_w = rest[:n_enc]                          # per layer: wih, whh, bias
        dec_w = rest[n_enc:n_enc + n_dec]
        fc_w_ref = rest[n_enc + n_dec]                # (H, Vp)
        fc_b_ref = rest[n_enc + n_dec + 1]            # (1, Vp)
        out_ref = rest[n_enc + n_dec + 2]             # (Tt, BB, Vp) logits
        seq_scr = rest[n_enc + n_dec + 3]             # (Ts, BB, H)  inter-layer seq
        xp_scr = rest[n_enc + n_dec + 4]              # (Ts, BB, 4H) input projection

        Ts, B, _ = src_ref.shape
        Tt, _, Vp = out_ref.shape
        H = enc_w[1].shape[0]                         # whh is (H, 4H)
        Vin = enc_w[0].shape[0]                       # fused layer-0 W is (Vin, 4H)

        # ------------------------------ encoder -----------------------------
        src_tok = src_ref[...]                        # (Ts, B, 1) int32
        h_fin, c_fin = [], []
        for l in range(enc_layers):
            # Hoisted weight loads: read once, stay resident across the loop.
            wih = enc_w[3 * l][...]
            whh = enc_w[3 * l + 1][...]
            b = enc_w[3 * l + 2][...]

            if l == 0:
                # Embedding folded into W_ih: one_hot(src) @ (E @ W_ih).
                lane = lax.broadcasted_iota(jnp.int32, (Ts, B, Vin), 2)
                x = (lane == src_tok).astype(jnp.float32)       # (Ts, B, Vin)
            else:
                x = seq_scr[...]                                # (Ts, B, H)
            in_dim = x.shape[-1]
            # Input projection for ALL timesteps as one MXU matmul, bias folded.
            xp = jnp.dot(x.reshape(Ts * B, in_dim), wih,
                         preferred_element_type=jnp.float32) + b
            xp_scr[...] = xp.reshape(Ts, B, 4 * H)

            last = (l == enc_layers - 1)

            def estep(t, carry, _whh=whh, _last=last):
                h, c = carry
                gates = xp_scr[t] + jnp.dot(h, _whh,
                                            preferred_element_type=jnp.float32)
                i_g = jax.nn.sigmoid(gates[:, 0 * H:1 * H])
                f_g = jax.nn.sigmoid(gates[:, 1 * H:2 * H])
                g_g = jnp.tanh(gates[:, 2 * H:3 * H])
                o_g = jax.nn.sigmoid(gates[:, 3 * H:4 * H])
                c_new = f_g * c + i_g * g_g
                h_new = o_g * jnp.tanh(c_new)
                if not _last:
                    seq_scr[t] = h_new                # input to next layer
                return (h_new, c_new)

            zero = jnp.zeros((B, H), jnp.float32)
            h_f, c_f = lax.fori_loop(0, Ts, estep, (zero, zero), unroll=True)
            h_fin.append(h_f)
            c_fin.append(c_f)

        # State handoff (pad_layers with zeros) -- stays in vregs, no HBM trip.
        zero = jnp.zeros((B, H), jnp.float32)
        hs0 = tuple(h_fin[l] if l < enc_layers else zero for l in range(dec_layers))
        cs0 = tuple(c_fin[l] if l < enc_layers else zero for l in range(dec_layers))

        # ------------------------------ decoder -----------------------------
        dweights = [(dec_w[3 * l][...], dec_w[3 * l + 1][...], dec_w[3 * l + 2][...])
                    for l in range(dec_layers)]
        fc_w = fc_w_ref[...]
        fc_b = fc_b_ref[...]

        lane_i = lax.broadcasted_iota(jnp.int32, (B, Vp), 1)
        lane_f = lane_i.astype(jnp.float32)

        out_ref[0] = jnp.zeros((B, Vp), jnp.float32)          # outputs[:, 0] stays 0
        init_oh = (lane_i == tgt_ref[0]).astype(jnp.float32)  # one-hot of tgt[:, 0]

        def dstep(t, carry):
            dec_oh, hs, cs = carry
            # Layer-0 W has the decoder embedding folded in, so the one-hot
            # token feeds the LSTM directly (no separate embedding matmul).
            x = dec_oh
            new_h, new_c = [], []
            for l in range(dec_layers):
                wih, whh, bias = dweights[l]
                gates = (jnp.dot(x, wih, preferred_element_type=jnp.float32)
                         + jnp.dot(hs[l], whh, preferred_element_type=jnp.float32)
                         + bias)
                i_g = jax.nn.sigmoid(gates[:, 0 * H:1 * H])
                f_g = jax.nn.sigmoid(gates[:, 1 * H:2 * H])
                g_g = jnp.tanh(gates[:, 2 * H:3 * H])
                o_g = jax.nn.sigmoid(gates[:, 3 * H:4 * H])
                c_new = f_g * cs[l] + i_g * g_g
                h_new = o_g * jnp.tanh(c_new)
                new_h.append(h_new)
                new_c.append(c_new)
                x = h_new
            logits = jnp.dot(x, fc_w, preferred_element_type=jnp.float32) + fc_b
            out_ref[t] = logits                       # lane-dense (B, 128) store

            # Greedy argmax (first maximal lane), fully vectorized.
            mx = jnp.max(logits, axis=-1, keepdims=True)
            cand = jnp.where(logits >= mx, lane_f, jnp.float32(Vp))
            top1 = jnp.min(cand, axis=-1, keepdims=True)
            pred_oh = (lane_f == top1).astype(jnp.float32)

            tgt_oh = (lane_i == tgt_ref[t]).astype(jnp.float32)
            sel = (tf_ref[t] != 0).astype(jnp.float32)   # teacher-force flag (SMEM)
            next_oh = sel * tgt_oh + (1.0 - sel) * pred_oh
            return (next_oh, tuple(new_h), tuple(new_c))

        lax.fori_loop(1, Tt, dstep, (init_oh, hs0, cs0), unroll=True)

    return kernel


# ------------------------------ model wrapper ---------------------------------

def transliteration_forward(params, src, tgt, tf_flags):
    """Pallas forward of TransliterationModel (LSTM, unidirectional, no attention).
    src: (B, Ts) int32, tgt: (B, Tt) int32, tf_flags: (Tt,) bool.
    Returns logits (B, Tt, Vout)."""
    enc, dec = params["encoder"], params["decoder"]
    enc_layers, dec_layers = len(enc["layers"]), len(dec["layers"])
    H = enc["layers"][0]["whh_t"].shape[0]
    Vout = dec["embedding"].shape[0]
    Vp = _round_up(Vout, LANES)
    B, Ts = src.shape
    _, Tt = tgt.shape
    Bp = max(_round_up(B, BB), BB)

    # Fold embedding tables into the layer-0 input weights (one-time (V,E)@(E,4H);
    # exact for one-hot selection).  Removes the per-step embedding matmul from
    # the serial decode loop and the encoder's XLA gather entirely.
    enc_wih = [jnp.dot(enc["embedding"], enc["layers"][0]["wih_t"])] + \
              [l["wih_t"] for l in enc["layers"][1:]]
    dec_w0 = jnp.dot(dec["embedding"], dec["layers"][0]["wih_t"])        # (Vout, 4H)
    dec_wih = [jnp.pad(dec_w0, ((0, Vp - Vout), (0, 0)))] + \
              [l["wih_t"] for l in dec["layers"][1:]]

    # Lane-dense fc_out: pad vocab to a full 128-lane width; padded lanes get a
    # huge-negative bias so the in-kernel argmax never selects them.
    fc_w = jnp.pad(dec["fc_w_t"], ((0, 0), (0, Vp - Vout)))
    fc_b = jnp.pad(dec["fc_b2"], ((0, 0), (0, Vp - Vout)), constant_values=-1e30)

    # Token ids, time-major, batch padded to a sublane group, lane dim of 1.
    src3 = jnp.pad(src.astype(jnp.int32).T[:, :, None], ((0, 0), (0, Bp - B), (0, 0)))
    tgt3 = jnp.pad(tgt.astype(jnp.int32).T[:, :, None], ((0, 0), (0, Bp - B), (0, 0)))
    tf_i32 = tf_flags.astype(jnp.int32)                                   # (Tt,)

    def tok_spec(T):
        return pl.BlockSpec((T, BB, 1), lambda b, tf: (0, b, 0))

    weight_args = []
    for l in range(enc_layers):
        weight_args += [enc_wih[l], enc["layers"][l]["whh_t"], enc["layers"][l]["bias2d"]]
    for l in range(dec_layers):
        weight_args += [dec_wih[l], dec["layers"][l]["whh_t"], dec["layers"][l]["bias2d"]]
    weight_args += [fc_w, fc_b]

    in_specs = [tok_spec(Ts), tok_spec(Tt)] + \
               [pl.BlockSpec(w.shape, lambda b, tf: (0, 0)) for w in weight_args]

    out = pl.pallas_call(
        _make_seq2seq_kernel(enc_layers, dec_layers),
        grid_spec=pltpu.PrefetchScalarGridSpec(
            num_scalar_prefetch=1,                      # teacher-forcing flags -> SMEM
            grid=(Bp // BB,),                           # batch blocks
            in_specs=in_specs,
            out_specs=pl.BlockSpec((Tt, BB, Vp), lambda b, tf: (0, b, 0)),
            scratch_shapes=[pltpu.VMEM((Ts, BB, H), jnp.float32),      # inter-layer seq
                            pltpu.VMEM((Ts, BB, 4 * H), jnp.float32)], # hoisted x-proj
        ),
        out_shape=jax.ShapeDtypeStruct((Tt, Bp, Vp), jnp.float32),
        compiler_params=pltpu.CompilerParams(dimension_semantics=("parallel",)),
    )(tf_i32, src3, tgt3, *weight_args)

    return jnp.transpose(out, (1, 0, 2))[:B, :, :Vout]                   # (B, Tt, Vout)


# --------------------------- Pure-JAX reference ------------------------------

def _lstm_cell_ref(x, h, c, layer):
    H = layer["whh_t"].shape[0]
    gates = x @ layer["wih_t"] + h @ layer["whh_t"] + layer["bias2d"][0]
    i_g = jax.nn.sigmoid(gates[:, 0 * H:1 * H])
    f_g = jax.nn.sigmoid(gates[:, 1 * H:2 * H])
    g_g = jnp.tanh(gates[:, 2 * H:3 * H])
    o_g = jax.nn.sigmoid(gates[:, 3 * H:4 * H])
    c_new = f_g * c + i_g * g_g
    h_new = o_g * jnp.tanh(c_new)
    return h_new, c_new


def transliteration_forward_ref(params, src, tgt, tf_flags):
    enc, dec = params["encoder"], params["decoder"]
    B, _ = src.shape
    _, Tt = tgt.shape
    H = enc["layers"][0]["whh_t"].shape[0]
    V = dec["embedding"].shape[0]

    seq = jnp.take(enc["embedding"], src, axis=0).transpose(1, 0, 2)
    hs, cs = [], []
    for layer in enc["layers"]:
        def step(carry, x_t, _layer=layer):
            h, c = carry
            h, c = _lstm_cell_ref(x_t, h, c, _layer)
            return (h, c), h
        (h_f, c_f), seq = lax.scan(step, (jnp.zeros((B, H), jnp.float32),
                                          jnp.zeros((B, H), jnp.float32)), seq)
        hs.append(h_f)
        cs.append(c_f)
    while len(hs) < len(dec["layers"]):
        hs.append(jnp.zeros((B, H), jnp.float32))
        cs.append(jnp.zeros((B, H), jnp.float32))

    outputs = jnp.zeros((B, Tt, V), jnp.float32)
    dec_input = tgt[:, 0]
    for t in range(1, Tt):
        x = jnp.take(dec["embedding"], dec_input, axis=0)
        for l, layer in enumerate(dec["layers"]):
            hs[l], cs[l] = _lstm_cell_ref(x, hs[l], cs[l], layer)
            x = hs[l]
        logits = x @ dec["fc_w_t"] + dec["fc_b2"][0]
        outputs = outputs.at[:, t].set(logits)
        top1 = jnp.argmax(logits, axis=1).astype(tgt.dtype)
        dec_input = jnp.where(tf_flags[t], tgt[:, t], top1)
    return outputs


# ------------------------------ Param init -----------------------------------

def init_params(key, in_vocab, out_vocab, embed_dim, hidden_dim, enc_layers, dec_layers):
    H = hidden_dim
    keys = iter(jax.random.split(key, enc_layers + dec_layers + 4))

    def init_embedding(k, vocab, dim):
        w = 0.1 * jax.random.normal(k, (vocab, dim), jnp.float32)
        return w.at[0].set(0.0)                               # padding_idx=0

    def init_lstm_layer(k, in_dim):
        k0, k1, k2, k3 = jax.random.split(k, 4)
        s = 1.0 / jnp.sqrt(jnp.float32(H))
        w_ih = jax.random.uniform(k0, (4 * H, in_dim), jnp.float32, -s, s)
        w_hh = jax.random.uniform(k1, (4 * H, H), jnp.float32, -s, s)
        b_ih = jax.random.uniform(k2, (4 * H,), jnp.float32, -s, s)
        b_hh = jax.random.uniform(k3, (4 * H,), jnp.float32, -s, s)
        return {"wih_t": jnp.transpose(w_ih),                 # (in_dim, 4H)
                "whh_t": jnp.transpose(w_hh),                 # (H, 4H)
                "bias2d": (b_ih + b_hh).reshape(1, 4 * H)}    # combined bias

    enc = {"embedding": init_embedding(next(keys), in_vocab, embed_dim),
           "layers": [init_lstm_layer(next(keys), embed_dim if l == 0 else H)
                      for l in range(enc_layers)]}
    s = 1.0 / jnp.sqrt(jnp.float32(H))
    dec = {"embedding": init_embedding(next(keys), out_vocab, embed_dim),
           "layers": [init_lstm_layer(next(keys), embed_dim if l == 0 else H)
                      for l in range(dec_layers)],
           "fc_w_t": jnp.transpose(
               jax.random.uniform(next(keys), (out_vocab, H), jnp.float32, -s, s)),
           "fc_b2": jax.random.uniform(next(keys), (1, out_vocab), jnp.float32, -s, s)}
    return {"encoder": enc, "decoder": dec}


# ------------------------------------ main -----------------------------------

if __name__ == "__main__":
    IN_VOCAB, OUT_VOCAB = 33, 29
    EMBED, HIDDEN = 16, 32
    ENC_LAYERS, DEC_LAYERS = 2, 2
    B, SRC_LEN, TGT_LEN = 2, 9, 7

    key = jax.random.PRNGKey(0)
    k_par, k_src, k_tgt, k_tf = jax.random.split(key, 4)
    params = init_params(k_par, IN_VOCAB, OUT_VOCAB, EMBED, HIDDEN,
                         ENC_LAYERS, DEC_LAYERS)

    src = jax.random.randint(k_src, (B, SRC_LEN), 1, IN_VOCAB, dtype=jnp.int32)
    src = src.at[0, -2:].set(0)                      # trailing padding tokens
    tgt = jax.random.randint(k_tgt, (B, TGT_LEN), 1, OUT_VOCAB, dtype=jnp.int32)
    # TODO(synk): Python random.random() teacher forcing has no in-kernel
    # equivalent; it is replaced by fixed Bernoulli flags (ratio 0.5) shared by
    # the kernel and the reference so both make identical choices.
    tf_flags = jax.random.bernoulli(k_tf, 0.5, (TGT_LEN,))

    fwd = jax.jit(transliteration_forward)
    out = fwd(params, src, tgt, tf_flags)
    jax.block_until_ready(out)

    ref = transliteration_forward_ref(params, src, tgt, tf_flags)
    assert out.shape == (B, TGT_LEN, OUT_VOCAB), out.shape
    assert jnp.allclose(out[:, 0], 0.0)
    assert jnp.allclose(out, ref, atol=1e-4, rtol=1e-4), \
        float(jnp.max(jnp.abs(out - ref)))

    print("KERNEL_OK")
</pallas_src>

<mosaic_0001>
module attributes {stable_mosaic.version = 11 : i64} {
  func.func @kernel(%arg0: i32, %arg1: memref<7xi32, #tpu.memory_space<smem>>, %arg2: memref<9x8x1xi32, #tpu.memory_space<vmem>>, %arg3: memref<7x8x1xi32, #tpu.memory_space<vmem>>, %arg4: memref<33x128xf32, #tpu.memory_space<vmem>>, %arg5: memref<32x128xf32, #tpu.memory_space<vmem>>, %arg6: memref<1x128xf32, #tpu.memory_space<vmem>>, %arg7: memref<32x128xf32, #tpu.memory_space<vmem>>, %arg8: memref<32x128xf32, #tpu.memory_space<vmem>>, %arg9: memref<1x128xf32, #tpu.memory_space<vmem>>, %arg10: memref<128x128xf32, #tpu.memory_space<vmem>>, %arg11: memref<32x128xf32, #tpu.memory_space<vmem>>, %arg12: memref<1x128xf32, #tpu.memory_space<vmem>>, %arg13: memref<32x128xf32, #tpu.memory_space<vmem>>, %arg14: memref<32x128xf32, #tpu.memory_space<vmem>>, %arg15: memref<1x128xf32, #tpu.memory_space<vmem>>, %arg16: memref<32x128xf32, #tpu.memory_space<vmem>>, %arg17: memref<1x128xf32, #tpu.memory_space<vmem>>, %arg18: memref<7x8x128xf32, #tpu.memory_space<vmem>>, %arg19: memref<9x8x32xf32, #tpu.memory_space<vmem>>, %arg20: memref<9x8x128xf32, #tpu.memory_space<vmem>>) attributes {dimension_semantics = [#tpu.dimension_semantics<parallel>], iteration_bounds = array<i64: 1>, scalar_prefetch = 1 : i64, scratch_operands = 2 : i64, tpu.core_type = #tpu.core_type<tc>, window_params = [{transform_indices = @transform_0, window_bounds = array<i64: 9, 8, 1>}, {transform_indices = @transform_1, window_bounds = array<i64: 7, 8, 1>}, {pipeline_mode = #tpu.pipeline_mode<synchronous>, transform_indices = @transform_2, window_bounds = array<i64: 33, 128>}, {pipeline_mode = #tpu.pipeline_mode<synchronous>, transform_indices = @transform_3, window_bounds = array<i64: 32, 128>}, {pipeline_mode = #tpu.pipeline_mode<synchronous>, transform_indices = @transform_4, window_bounds = array<i64: 1, 128>}, {pipeline_mode = #tpu.pipeline_mode<synchronous>, transform_indices = @transform_5, window_bounds = array<i64: 32, 128>}, {pipeline_mode = #tpu.pipeline_mode<synchronous>, transform_indices = @transform_6, window_bounds = array<i64: 32, 128>}, {pipeline_mode = #tpu.pipeline_mode<synchronous>, transform_indices = @transform_7, window_bounds = array<i64: 1, 128>}, {pipeline_mode = #tpu.pipeline_mode<synchronous>, transform_indices = @transform_8, window_bounds = array<i64: 128, 128>}, {pipeline_mode = #tpu.pipeline_mode<synchronous>, transform_indices = @transform_9, window_bounds = array<i64: 32, 128>}, {pipeline_mode = #tpu.pipeline_mode<synchronous>, transform_indices = @transform_10, window_bounds = array<i64: 1, 128>}, {pipeline_mode = #tpu.pipeline_mode<synchronous>, transform_indices = @transform_11, window_bounds = array<i64: 32, 128>}, {pipeline_mode = #tpu.pipeline_mode<synchronous>, transform_indices = @transform_12, window_bounds = array<i64: 32, 128>}, {pipeline_mode = #tpu.pipeline_mode<synchronous>, transform_indices = @transform_13, window_bounds = array<i64: 1, 128>}, {pipeline_mode = #tpu.pipeline_mode<synchronous>, transform_indices = @transform_14, window_bounds = array<i64: 32, 128>}, {pipeline_mode = #tpu.pipeline_mode<synchronous>, transform_indices = @transform_15, window_bounds = array<i64: 1, 128>}, {transform_indices = @transform_16, window_bounds = array<i64: 7, 8, 128>}]} {
    %c0 = arith.constant 0 : index
    %c0_0 = arith.constant 0 : index
    %c0_1 = arith.constant 0 : index
    %0 = vector.load %arg2[%c0, %c0_0, %c0_1] : memref<9x8x1xi32, #tpu.memory_space<vmem>>, vector<9x8x1xi32>
    %c0_2 = arith.constant 0 : index
    %c0_3 = arith.constant 0 : index
    %1 = vector.load %arg4[%c0_2, %c0_3] : memref<33x128xf32, #tpu.memory_space<vmem>>, vector<33x128xf32>
    %c0_4 = arith.constant 0 : index
    %c0_5 = arith.constant 0 : index
    %2 = vector.load %arg5[%c0_4, %c0_5] : memref<32x128xf32, #tpu.memory_space<vmem>>, vector<32x128xf32>
    %c0_6 = arith.constant 0 : index
    %c0_7 = arith.constant 0 : index
    %3 = vector.load %arg6[%c0_6, %c0_7] : memref<1x128xf32, #tpu.memory_space<vmem>>, vector<1x128xf32>
    %4 = tpu.iota {dimensions = array<i32: 2>} : vector<9x8x33xi32>
    %5 = vector.broadcast %0 : vector<9x8x1xi32> to vector<9x8x33xi32>
    %6 = arith.cmpi eq, %4, %5 : vector<9x8x33xi32>
    %7 = arith.extui %6 : vector<9x8x33xi1> to vector<9x8x33xi32>
    %8 = arith.sitofp %7 : vector<9x8x33xi32> to vector<9x8x33xf32>
    %9 = vector.shape_cast %8 : vector<9x8x33xf32> to vector<72x33xf32>
    %cst = arith.constant dense<0.000000e+00> : vector<72x128xf32>
    %10 = tpu.matmul %9, %1, %cst {dimension_numbers = #tpu.dot_dimension_numbers<[1], [0], [0], [1], [0, 0, 1, 1], [], []>} : vector<72x33xf32>, vector<33x128xf32>, vector<72x128xf32> -> vector<72x128xf32>
    %11 = vector.broadcast %3 : vector<1x128xf32> to vector<72x128xf32>
    %12 = arith.addf %10, %11 : vector<72x128xf32>
    %13 = vector.shape_cast %12 : vector<72x128xf32> to vector<9x8x128xf32>
    %c0_8 = arith.constant 0 : index
    %c0_9 = arith.constant 0 : index
    %c0_10 = arith.constant 0 : index
    %14 = vector.load %arg20[%c0_8, %c0_9, %c0_10] : memref<9x8x128xf32, #tpu.memory_space<vmem>>, vector<9x8x128xf32>
    tpu.vector_store %arg20[%c0_8, %c0_9, %c0_10], %13 {strides = array<i32>} : memref<9x8x128xf32, #tpu.memory_space<vmem>>, vector<9x8x128xf32>,
    %cst_11 = arith.constant 0.000000e+00 : f32
    %15 = vector.broadcast %cst_11 : f32 to vector<8x32xf32>
    %c0_i32 = arith.constant 0 : i32
    %16 = arith.index_cast %c0_i32 : i32 to index
    %c0_12 = arith.constant 0 : index
    %c0_13 = arith.constant 0 : index
    %17 = vector.load %arg20[%16, %c0_12, %c0_13] : memref<9x8x128xf32, #tpu.memory_space<vmem>>, vector<1x8x128xf32>
    %18 = vector.shape_cast %17 : vector<1x8x128xf32> to vector<8x128xf32>
    %cst_14 = arith.constant dense<0.000000e+00> : vector<8x128xf32>
    %19 = tpu.matmul %15, %2, %cst_14 {dimension_numbers = #tpu.dot_dimension_numbers<[1], [0], [0], [1], [0, 0, 1, 1], [], []>} : vector<8x32xf32>, vector<32x128xf32>, vector<8x128xf32> -> vector<8x128xf32>
    %20 = arith.addf %18, %19 : vector<8x128xf32>
    %21 = vector.extract_strided_slice %20 {offsets = [0, 0], sizes = [8, 32], strides = [1, 1]} : vector<8x128xf32> to vector<8x32xf32>
    %22 = arith.negf %21 : vector<8x32xf32>
    %23 = math.exp %22 : vector<8x32xf32>
    %cst_15 = arith.constant 1.000000e+00 : f32
    %24 = vector.broadcast %cst_15 : f32 to vector<8x32xf32>
    %25 = arith.addf %24, %23 : vector<8x32xf32>
    %26 = arith.divf %24, %25 : vector<8x32xf32>
    %27 = vector.extract_strided_slice %20 {offsets = [0, 32], sizes = [8, 32], strides = [1, 1]} : vector<8x128xf32> to vector<8x32xf32>
    %28 = arith.negf %27 : vector<8x32xf32>
    %29 = math.exp %28 : vector<8x32xf32>
    %cst_16 = arith.constant 1.000000e+00 : f32
    %30 = vector.broadcast %cst_16 : f32 to vector<8x32xf32>
    %31 = arith.addf %30, %29 : vector<8x32xf32>
    %32 = arith.divf %30, %31 : vector<8x32xf32>
    %33 = vector.extract_strided_slice %20 {offsets = [0, 64], sizes = [8, 32], strides = [1, 1]} : vector<8x128xf32> to vector<8x32xf32>
    %34 = math.tanh %33 : vector<8x32xf32>
    %35 = vector.extract_strided_slice %20 {offsets = [0, 96], sizes = [8, 32], strides = [1, 1]} : vector<8x128xf32> to vector<8x32xf32>
    %36 = arith.negf %35 : vector<8x32xf32>
    %37 = math.exp %36 : vector<8x32xf32>
    %cst_17 = arith.constant 1.000000e+00 : f32
    %38 = vector.broadcast %cst_17 : f32 to vector<8x32xf32>
    %39 = arith.addf %38, %37 : vector<8x32xf32>
    %40 = arith.divf %38, %39 : vector<8x32xf32>
    %41 = arith.mulf %32, %15 : vector<8x32xf32>
    %42 = arith.mulf %26, %34 : vector<8x32xf32>
    %43 = arith.addf %41, %42 : vector<8x32xf32>
    %44 = math.tanh %43 : vector<8x32xf32>
    %45 = arith.mulf %40, %44 : vector<8x32xf32>
    %46 = arith.index_cast %c0_i32 : i32 to index
    %c0_18 = arith.constant 0 : index
    %c0_19 = arith.constant 0 : index
    %47 = vector.load %arg19[%46, %c0_18, %c0_19] : memref<9x8x32xf32, #tpu.memory_space<vmem>>, vector<1x8x32xf32>
    %48 = vector.shape_cast %47 : vector<1x8x32xf32> to vector<8x32xf32>
    %49 = vector.shape_cast %45 : vector<8x32xf32> to vector<1x8x32xf32>
    tpu.vector_store %arg19[%46, %c0_18, %c0_19], %49 {strides = array<i32>} : memref<9x8x32xf32, #tpu.memory_space<vmem>>, vector<1x8x32xf32>,
    %c1_i32 = arith.constant 1 : i32
    %50 = arith.index_cast %c1_i32 : i32 to index
    %c0_20 = arith.constant 0 : index
    %c0_21 = arith.constant 0 : index
    %51 = vector.load %arg20[%50, %c0_20, %c0_21] : memref<9x8x128xf32, #tpu.memory_space<vmem>>, vector<1x8x128xf32>
    %52 = vector.shape_cast %51 : vector<1x8x128xf32> to vector<8x128xf32>
    %cst_22 = arith.constant dense<0.000000e+00> : vector<8x128xf32>
    %53 = tpu.matmul %45, %2, %cst_22 {dimension_numbers = #tpu.dot_dimension_numbers<[1], [0], [0], [1], [0, 0, 1, 1], [], []>} : vector<8x32xf32>, vector<32x128xf32>, vector<8x128xf32> -> vector<8x128xf32>
    %54 = arith.addf %52, %53 : vector<8x128xf32>
    %55 = vector.extract_strided_slice %54 {offsets = [0, 0], sizes = [8, 32], strides = [1, 1]} : vector<8x128xf32> to vector<8x32xf32>
    %56 = arith.negf %55 : vector<8x32xf32>
    %57 = math.exp %56 : vector<8x32xf32>
    %cst_23 = arith.constant 1.000000e+00 : f32
    %58 = vector.broadcast %cst_23 : f32 to vector<8x32xf32>
    %59 = arith.addf %58, %57 : vector<8x32xf32>
    %60 = arith.divf %58, %59 : vector<8x32xf32>
    %61 = vector.extract_strided_slice %54 {offsets = [0, 32], sizes = [8, 32], strides = [1, 1]} : vector<8x128xf32> to vector<8x32xf32>
    %62 = arith.negf %61 : vector<8x32xf32>
    %63 = math.exp %62 : vector<8x32xf32>
    %cst_24 = arith.constant 1.000000e+00 : f32
    %64 = vector.broadcast %cst_24 : f32 to vector<8x32xf32>
    %65 = arith.addf %64, %63 : vector<8x32xf32>
    %66 = arith.divf %64, %65 : vector<8x32xf32>
    %67 = vector.extract_strided_slice %54 {offsets = [0, 64], sizes = [8, 32], strides = [1, 1]} : vector<8x128xf32> to vector<8x32xf32>
    %68 = math.tanh %67 : vector<8x32xf32>
    %69 = vector.extract_strided_slice %54 {offsets = [0, 96], sizes = [8, 32], strides = [1, 1]} : vector<8x128xf32> to vector<8x32xf32>
    %70 = arith.negf %69 : vector<8x32xf32>
    %71 = math.exp %70 : vector<8x32xf32>
    %cst_25 = arith.constant 1.000000e+00 : f32
    %72 = vector.broadcast %cst_25 : f32 to vector<8x32xf32>
    %73 = arith.addf %72, %71 : vector<8x32xf32>
    %74 = arith.divf %72, %73 : vector<8x32xf32>
    %75 = arith.mulf %66, %43 : vector<8x32xf32>
    %76 = arith.mulf %60, %68 : vector<8x32xf32>
    %77 = arith.addf %75, %76 : vector<8x32xf32>
    %78 = math.tanh %77 : vector<8x32xf32>
    %79 = arith.mulf %74, %78 : vector<8x32xf32>
    %80 = arith.index_cast %c1_i32 : i32 to index
    %c0_26 = arith.constant 0 : index
    %c0_27 = arith.constant 0 : index
    %81 = vector.load %arg19[%80, %c0_26, %c0_27] : memref<9x8x32xf32, #tpu.memory_space<vmem>>, vector<1x8x32xf32>
    %82 = vector.shape_cast %81 : vector<1x8x32xf32> to vector<8x32xf32>
    %83 = vector.shape_cast %79 : vector<8x32xf32> to vector<1x8x32xf32>
    tpu.vector_store %arg19[%80, %c0_26, %c0_27], %83 {strides = array<i32>} : memref<9x8x32xf32, #tpu.memory_space<vmem>>, vector<1x8x32xf32>,
    %c2_i32 = arith.constant 2 : i32
    %84 = arith.index_cast %c2_i32 : i32 to index
    %c0_28 = arith.constant 0 : index
    %c0_29 = arith.constant 0 : index
    %85 = vector.load %arg20[%84, %c0_28, %c0_29] : memref<9x8x128xf32, #tpu.memory_space<vmem>>, vector<1x8x128xf32>
    %86 = vector.shape_cast %85 : vector<1x8x128xf32> to vector<8x128xf32>
    %cst_30 = arith.constant dense<0.000000e+00> : vector<8x128xf32>
    %87 = tpu.matmul %79, %2, %cst_30 {dimension_numbers = #tpu.dot_dimension_numbers<[1], [0], [0], [1], [0, 0, 1, 1], [], []>} : vector<8x32xf32>, vector<32x128xf32>, vector<8x128xf32> -> vector<8x128xf32>
    %88 = arith.addf %86, %87 : vector<8x128xf32>
    %89 = vector.extract_strided_slice %88 {offsets = [0, 0], sizes = [8, 32], strides = [1, 1]} : vector<8x128xf32> to vector<8x32xf32>
    %90 = arith.negf %89 : vector<8x32xf32>
    %91 = math.exp %90 : vector<8x32xf32>
    %cst_31 = arith.constant 1.000000e+00 : f32
    %92 = vector.broadcast %cst_31 : f32 to vector<8x32xf32>
    %93 = arith.addf %92, %91 : vector<8x32xf32>
    %94 = arith.divf %92, %93 : vector<8x32xf32>
    %95 = vector.extract_strided_slice %88 {offsets = [0, 32], sizes = [8, 32], strides = [1, 1]} : vector<8x128xf32> to vector<8x32xf32>
    %96 = arith.negf %95 : vector<8x32xf32>
    %97 = math.exp %96 : vector<8x32xf32>
    %cst_32 = arith.constant 1.000000e+00 : f32
    %98 = vector.broadcast %cst_32 : f32 to vector<8x32xf32>
    %99 = arith.addf %98, %97 : vector<8x32xf32>
    %100 = arith.divf %98, %99 : vector<8x32xf32>
    %101 = vector.extract_strided_slice %88 {offsets = [0, 64], sizes = [8, 32], strides = [1, 1]} : vector<8x128xf32> to vector<8x32xf32>
    %102 = math.tanh %101 : vector<8x32xf32>
    %103 = vector.extract_strided_slice %88 {offsets = [0, 96], sizes = [8, 32], strides = [1, 1]} : vector<8x128xf32> to vector<8x32xf32>
    %104 = arith.negf %103 : vector<8x32xf32>
    %105 = math.exp %104 : vector<8x32xf32>
    %cst_33 = arith.constant 1.000000e+00 : f32
    %106 = vector.broadcast %cst_33 : f32 to vector<8x32xf32>
    %107 = arith.addf %106, %105 : vector<8x32xf32>
    %108 = arith.divf %106, %107 : vector<8x32xf32>
    %109 = arith.mulf %100, %77 : vector<8x32xf32>
    %110 = arith.mulf %94, %102 : vector<8x32xf32>
    %111 = arith.addf %109, %110 : vector<8x32xf32>
    %112 = math.tanh %111 : vector<8x32xf32>
    %113 = arith.mulf %108, %112 : vector<8x32xf32>
    %114 = arith.index_cast %c2_i32 : i32 to index
    %c0_34 = arith.constant 0 : index
    %c0_35 = arith.constant 0 : index
    %115 = vector.load %arg19[%114, %c0_34, %c0_35] : memref<9x8x32xf32, #tpu.memory_space<vmem>>, vector<1x8x32xf32>
    %116 = vector.shape_cast %115 : vector<1x8x32xf32> to vector<8x32xf32>
    %117 = vector.shape_cast %113 : vector<8x32xf32> to vector<1x8x32xf32>
    tpu.vector_store %arg19[%114, %c0_34, %c0_35], %117 {strides = array<i32>} : memref<9x8x32xf32, #tpu.memory_space<vmem>>, vector<1x8x32xf32>,
    %c3_i32 = arith.constant 3 : i32
    %118 = arith.index_cast %c3_i32 : i32 to index
    %c0_36 = arith.constant 0 : index
    %c0_37 = arith.constant 0 : index
    %119 = vector.load %arg20[%118, %c0_36, %c0_37] : memref<9x8x128xf32, #tpu.memory_space<vmem>>, vector<1x8x128xf32>
    %120 = vector.shape_cast %119 : vector<1x8x128xf32> to vector<8x128xf32>
    %cst_38 = arith.constant dense<0.000000e+00> : vector<8x128xf32>
    %121 = tpu.matmul %113, %2, %cst_38 {dimension_numbers = #tpu.dot_dimension_numbers<[1], [0], [0], [1], [0, 0, 1, 1], [], []>} : vector<8x32xf32>, vector<32x128xf32>, vector<8x128xf32> -> vector<8x128xf32>
    %122 = arith.addf %120, %121 : vector<8x128xf32>
    %123 = vector.extract_strided_slice %122 {offsets = [0, 0], sizes = [8, 32], strides = [1, 1]} : vector<8x128xf32> to vector<8x32xf32>
    %124 = arith.negf %123 : vector<8x32xf32>
    %125 = math.exp %124 : vector<8x32xf32>
    %cst_39 = arith.constant 1.000000e+00 : f32
    %126 = vector.broadcast %cst_39 : f32 to vector<8x32xf32>
    %127 = arith.addf %126, %125 : vector<8x32xf32>
    %128 = arith.divf %126, %127 : vector<8x32xf32>
    %129 = vector.extract_strided_slice %122 {offsets = [0, 32], sizes = [8, 32], strides = [1, 1]} : vector<8x128xf32> to vector<8x32xf32>
    %130 = arith.negf %129 : vector<8x32xf32>
    %131 = math.exp %130 : vector<8x32xf32>
    %cst_40 = arith.constant 1.000000e+00 : f32
    %132 = vector.broadcast %cst_40 : f32 to vector<8x32xf32>
    %133 = arith.addf %132, %131 : vector<8x32xf32>
    %134 = arith.divf %132, %133 : vector<8x32xf32>
    %135 = vector.extract_strided_slice %122 {offsets = [0, 64], sizes = [8, 32], strides = [1, 1]} : vector<8x128xf32> to vector<8x32xf32>
    %136 = math.tanh %135 : vector<8x32xf32>
    %137 = vector.extract_strided_slice %122 {offsets = [0, 96], sizes = [8, 32], strides = [1, 1]} : vector<8x128xf32> to vector<8x32xf32>
    %138 = arith.negf %137 : vector<8x32xf32>
    %139 = math.exp %138 : vector<8x32xf32>
    %cst_41 = arith.constant 1.000000e+00 : f32
    %140 = vector.broadcast %cst_41 : f32 to vector<8x32xf32>
    %141 = arith.addf %140, %139 : vector<8x32xf32>
    %142 = arith.divf %140, %141 : vector<8x32xf32>
    %143 = arith.mulf %134, %111 : vector<8x32xf32>
    %144 = arith.mulf %128, %136 : vector<8x32xf32>
    %145 = arith.addf %143, %144 : vector<8x32xf32>
    %146 = math.tanh %145 : vector<8x32xf32>
    %147 = arith.mulf %142, %146 : vector<8x32xf32>
    %148 = arith.index_cast %c3_i32 : i32 to index
    %c0_42 = arith.constant 0 : index
    %c0_43 = arith.constant 0 : index
    %149 = vector.load %arg19[%148, %c0_42, %c0_43] : memref<9x8x32xf32, #tpu.memory_space<vmem>>, vector<1x8x32xf32>
    %150 = vector.shape_cast %149 : vector<1x8x32xf32> to vector<8x32xf32>
    %151 = vector.shape_cast %147 : vector<8x32xf32> to vector<1x8x32xf32>
    tpu.vector_store %arg19[%148, %c0_42, %c0_43], %151 {strides = array<i32>} : memref<9x8x32xf32, #tpu.memory_space<vmem>>, vector<1x8x32xf32>,
    %c4_i32 = arith.constant 4 : i32
    %152 = arith.index_cast %c4_i32 : i32 to index
    %c0_44 = arith.constant 0 : index
    %c0_45 = arith.constant 0 : index
    %153 = vector.load %arg20[%152, %c0_44, %c0_45] : memref<9x8x128xf32, #tpu.memory_space<vmem>>, vector<1x8x128xf32>
    %154 = vector.shape_cast %153 : vector<1x8x128xf32> to vector<8x128xf32>
    %cst_46 = arith.constant dense<0.000000e+00> : vector<8x128xf32>
    %155 = tpu.matmul %147, %2, %cst_46 {dimension_numbers = #tpu.dot_dimension_numbers<[1], [0], [0], [1], [0, 0, 1, 1], [], []>} : vector<8x32xf32>, vector<32x128xf32>, vector<8x128xf32> -> vector<8x128xf32>
    %156 = arith.addf %154, %155 : vector<8x128xf32>
    %157 = vector.extract_strided_slice %156 {offsets = [0, 0], sizes = [8, 32], strides = [1, 1]} : vector<8x128xf32> to vector<8x32xf32>
    %158 = arith.negf %157 : vector<8x32xf32>
    %159 = math.exp %158 : vector<8x32xf32>
    %cst_47 = arith.constant 1.000000e+00 : f32
    %160 = vector.broadcast %cst_47 : f32 to vector<8x32xf32>
    %161 = arith.addf %160, %159 : vector<8x32xf32>
    %162 = arith.divf %160, %161 : vector<8x32xf32>
    %163 = vector.extract_strided_slice %156 {offsets = [0, 32], sizes = [8, 32], strides = [1, 1]} : vector<8x128xf32> to vector<8x32xf32>
    %164 = arith.negf %163 : vector<8x32xf32>
    %165 = math.exp %164 : vector<8x32xf32>
    %cst_48 = arith.constant 1.000000e+00 : f32
    %166 = vector.broadcast %cst_48 : f32 to vector<8x32xf32>
    %167 = arith.addf %166, %165 : vector<8x32xf32>
    %168 = arith.divf %166, %167 : vector<8x32xf32>
    %169 = vector.extract_strided_slice %156 {offsets = [0, 64], sizes = [8, 32], strides = [1, 1]} : vector<8x128xf32> to vector<8x32xf32>
    %170 = math.tanh %169 : vector<8x32xf32>
    %171 = vector.extract_strided_slice %156 {offsets = [0, 96], sizes = [8, 32], strides = [1, 1]} : vector<8x128xf32> to vector<8x32xf32>
    %172 = arith.negf %171 : vector<8x32xf32>
    %173 = math.exp %172 : vector<8x32xf32>
    %cst_49 = arith.constant 1.000000e+00 : f32
    %174 = vector.broadcast %cst_49 : f32 to vector<8x32xf32>
    %175 = arith.addf %174, %173 : vector<8x32xf32>
    %176 = arith.divf %174, %175 : vector<8x32xf32>
    %177 = arith.mulf %168, %145 : vector<8x32xf32>
    %178 = arith.mulf %162, %170 : vector<8x32xf32>
    %179 = arith.addf %177, %178 : vector<8x32xf32>
    %180 = math.tanh %179 : vector<8x32xf32>
    %181 = arith.mulf %176, %180 : vector<8x32xf32>
    %182 = arith.index_cast %c4_i32 : i32 to index
    %c0_50 = arith.constant 0 : index
    %c0_51 = arith.constant 0 : index
    %183 = vector.load %arg19[%182, %c0_50, %c0_51] : memref<9x8x32xf32, #tpu.memory_space<vmem>>, vector<1x8x32xf32>
    %184 = vector.shape_cast %183 : vector<1x8x32xf32> to vector<8x32xf32>
    %185 = vector.shape_cast %181 : vector<8x32xf32> to vector<1x8x32xf32>
    tpu.vector_store %arg19[%182, %c0_50, %c0_51], %185 {strides = array<i32>} : memref<9x8x32xf32, #tpu.memory_space<vmem>>, vector<1x8x32xf32>,
    %c5_i32 = arith.constant 5 : i32
    %186 = arith.index_cast %c5_i32 : i32 to index
    %c0_52 = arith.constant 0 : index
    %c0_53 = arith.constant 0 : index
    %187 = vector.load %arg20[%186, %c0_52, %c0_53] : memref<9x8x128xf32, #tpu.memory_space<vmem>>, vector<1x8x128xf32>
    %188 = vector.shape_cast %187 : vector<1x8x128xf32> to vector<8x128xf32>
    %cst_54 = arith.constant dense<0.000000e+00> : vector<8x128xf32>
    %189 = tpu.matmul %181, %2, %cst_54 {dimension_numbers = #tpu.dot_dimension_numbers<[1], [0], [0], [1], [0, 0, 1, 1], [], []>} : vector<8x32xf32>, vector<32x128xf32>, vector<8x128xf32> -> vector<8x128xf32>
    %190 = arith.addf %188, %189 : vector<8x128xf32>
    %191 = vector.extract_strided_slice %190 {offsets = [0, 0], sizes = [8, 32], strides = [1, 1]} : vector<8x128xf32> to vector<8x32xf32>
    %192 = arith.negf %191 : vector<8x32xf32>
    %193 = math.exp %192 : vector<8x32xf32>
    %cst_55 = arith.constant 1.000000e+00 : f32
    %194 = vector.broadcast %cst_55 : f32 to vector<8x32xf32>
    %195 = arith.addf %194, %193 : vector<8x32xf32>
    %196 = arith.divf %194, %195 : vector<8x32xf32>
    %197 = vector.extract_strided_slice %190 {offsets = [0, 32], sizes = [8, 32], strides = [1, 1]} : vector<8x128xf32> to vector<8x32xf32>
    %198 = arith.negf %197 : vector<8x32xf32>
    %199 = math.exp %198 : vector<8x32xf32>
    %cst_56 = arith.constant 1.000000e+00 : f32
    %200 = vector.broadcast %cst_56 : f32 to vector<8x32xf32>
    %201 = arith.addf %200, %199 : vector<8x32xf32>
    %202 = arith.divf %200, %201 : vector<8x32xf32>
    %203 = vector.extract_strided_slice %190 {offsets = [0, 64], sizes = [8, 32], strides = [1, 1]} : vector<8x128xf32> to vector<8x32xf32>
    %204 = math.tanh %203 : vector<8x32xf32>
    %205 = vector.extract_strided_slice %190 {offsets = [0, 96], sizes = [8, 32], strides = [1, 1]} : vector<8x128xf32> to vector<8x32xf32>
    %206 = arith.negf %205 : vector<8x32xf32>
    %207 = math.exp %206 : vector<8x32xf32>
    %cst_57 = arith.constant 1.000000e+00 : f32
    %208 = vector.broadcast %cst_57 : f32 to vector<8x32xf32>
    %209 = arith.addf %208, %207 : vector<8x32xf32>
    %210 = arith.divf %208, %209 : vector<8x32xf32>
    %211 = arith.mulf %202, %179 : vector<8x32xf32>
    %212 = arith.mulf %196, %204 : vector<8x32xf32>
    %213 = arith.addf %211, %212 : vector<8x32xf32>
    %214 = math.tanh %213 : vector<8x32xf32>
    %215 = arith.mulf %210, %214 : vector<8x32xf32>
    %216 = arith.index_cast %c5_i32 : i32 to index
    %c0_58 = arith.constant 0 : index
    %c0_59 = arith.constant 0 : index
    %217 = vector.load %arg19[%216, %c0_58, %c0_59] : memref<9x8x32xf32, #tpu.memory_space<vmem>>, vector<1x8x32xf32>
    %218 = vector.shape_cast %217 : vector<1x8x32xf32> to vector<8x32xf32>
    %219 = vector.shape_cast %215 : vector<8x32xf32> to vector<1x8x32xf32>
    tpu.vector_store %arg19[%216, %c0_58, %c0_59], %219 {strides = array<i32>} : memref<9x8x32xf32, #tpu.memory_space<vmem>>, vector<1x8x32xf32>,
    %c6_i32 = arith.constant 6 : i32
    %220 = arith.index_cast %c6_i32 : i32 to index
    %c0_60 = arith.constant 0 : index
    %c0_61 = arith.constant 0 : index
    %221 = vector.load %arg20[%220, %c0_60, %c0_61] : memref<9x8x128xf32, #tpu.memory_space<vmem>>, vector<1x8x128xf32>
    %222 = vector.shape_cast %221 : vector<1x8x128xf32> to vector<8x128xf32>
    %cst_62 = arith.constant dense<0.000000e+00> : vector<8x128xf32>
    %223 = tpu.matmul %215, %2, %cst_62 {dimension_numbers = #tpu.dot_dimension_numbers<[1], [0], [0], [1], [0, 0, 1, 1], [], []>} : vector<8x32xf32>, vector<32x128xf32>, vector<8x128xf32> -> vector<8x128xf32>
    %224 = arith.addf %222, %223 : vector<8x128xf32>
    %225 = vector.extract_strided_slice %224 {offsets = [0, 0], sizes = [8, 32], strides = [1, 1]} : vector<8x128xf32> to vector<8x32xf32>
    %226 = arith.negf %225 : vector<8x32xf32>
    %227 = math.exp %226 : vector<8x32xf32>
    %cst_63 = arith.constant 1.000000e+00 : f32
    %228 = vector.broadcast %cst_63 : f32 to vector<8x32xf32>
    %229 = arith.addf %228, %227 : vector<8x32xf32>
    %230 = arith.divf %228, %229 : vector<8x32xf32>
    %231 = vector.extract_strided_slice %224 {offsets = [0, 32], sizes = [8, 32], strides = [1, 1]} : vector<8x128xf32> to vector<8x32xf32>
    %232 = arith.negf %231 : vector<8x32xf32>
    %233 = math.exp %232 : vector<8x32xf32>
    %cst_64 = arith.constant 1.000000e+00 : f32
    %234 = vector.broadcast %cst_64 : f32 to vector<8x32xf32>
    %235 = arith.addf %234, %233 : vector<8x32xf32>
    %236 = arith.divf %234, %235 : vector<8x32xf32>
    %237 = vector.extract_strided_slice %224 {offsets = [0, 64], sizes = [8, 32], strides = [1, 1]} : vector<8x128xf32> to vector<8x32xf32>
    %238 = math.tanh %237 : vector<8x32xf32>
    %239 = vector.extract_strided_slice %224 {offsets = [0, 96], sizes = [8, 32], strides = [1, 1]} : vector<8x128xf32> to vector<8x32xf32>
    %240 = arith.negf %239 : vector<8x32xf32>
    %241 = math.exp %240 : vector<8x32xf32>
    %cst_65 = arith.constant 1.000000e+00 : f32
    %242 = vector.broadcast %cst_65 : f32 to vector<8x32xf32>
    %243 = arith.addf %242, %241 : vector<8x32xf32>
    %244 = arith.divf %242, %243 : vector<8x32xf32>
    %245 = arith.mulf %236, %213 : vector<8x32xf32>
    %246 = arith.mulf %230, %238 : vector<8x32xf32>
    %247 = arith.addf %245, %246 : vector<8x32xf32>
    %248 = math.tanh %247 : vector<8x32xf32>
    %249 = arith.mulf %244, %248 : vector<8x32xf32>
    %250 = arith.index_cast %c6_i32 : i32 to index
    %c0_66 = arith.constant 0 : index
    %c0_67 = arith.constant 0 : index
    %251 = vector.load %arg19[%250, %c0_66, %c0_67] : memref<9x8x32xf32, #tpu.memory_space<vmem>>, vector<1x8x32xf32>
    %252 = vector.shape_cast %251 : vector<1x8x32xf32> to vector<8x32xf32>
    %253 = vector.shape_cast %249 : vector<8x32xf32> to vector<1x8x32xf32>
    tpu.vector_store %arg19[%250, %c0_66, %c0_67], %253 {strides = array<i32>} : memref<9x8x32xf32, #tpu.memory_space<vmem>>, vector<1x8x32xf32>,
    %c7_i32 = arith.constant 7 : i32
    %254 = arith.index_cast %c7_i32 : i32 to index
    %c0_68 = arith.constant 0 : index
    %c0_69 = arith.constant 0 : index
    %255 = vector.load %arg20[%254, %c0_68, %c0_69] : memref<9x8x128xf32, #tpu.memory_space<vmem>>, vector<1x8x128xf32>
    %256 = vector.shape_cast %255 : vector<1x8x128xf32> to vector<8x128xf32>
    %cst_70 = arith.constant dense<0.000000e+00> : vector<8x128xf32>
    %257 = tpu.matmul %249, %2, %cst_70 {dimension_numbers = #tpu.dot_dimension_numbers<[1], [0], [0], [1], [0, 0, 1, 1], [], []>} : vector<8x32xf32>, vector<32x128xf32>, vector<8x128xf32> -> vector<8x128xf32>
    %258 = arith.addf %256, %257 : vector<8x128xf32>
    %259 = vector.extract_strided_slice %258 {offsets = [0, 0], sizes = [8, 32], strides = [1, 1]} : vector<8x128xf32> to vector<8x32xf32>
    %260 = arith.negf %259 : vector<8x32xf32>
    %261 = math.exp %260 : vector<8x32xf32>
    %cst_71 = arith.constant 1.000000e+00 : f32
    %262 = vector.broadcast %cst_71 : f32 to vector<8x32xf32>
    %263 = arith.addf %262, %261 : vector<8x32xf32>
    %264 = arith.divf %262, %263 : vector<8x32xf32>
    %265 = vector.extract_strided_slice %258 {offsets = [0, 32], sizes = [8, 32], strides = [1, 1]} : vector<8x128xf32> to vector<8x32xf32>
    %266 = arith.negf %265 : vector<8x32xf32>
    %267 = math.exp %266 : vector<8x32xf32>
    %cst_72 = arith.constant 1.000000e+00 : f32
    %268 = vector.broadcast %cst_72 : f32 to vector<8x32xf32>
    %269 = arith.addf %268, %267 : vector<8x32xf32>
    %270 = arith.divf %268, %269 : vector<8x32xf32>
    %271 = vector.extract_strided_slice %258 {offsets = [0, 64], sizes = [8, 32], strides = [1, 1]} : vector<8x128xf32> to vector<8x32xf32>
    %272 = math.tanh %271 : vector<8x32xf32>
    %273 = vector.extract_strided_slice %258 {offsets = [0, 96], sizes = [8, 32], strides = [1, 1]} : vector<8x128xf32> to vector<8x32xf32>
    %274 = arith.negf %273 : vector<8x32xf32>
    %275 = math.exp %274 : vector<8x32xf32>
    %cst_73 = arith.constant 1.000000e+00 : f32
    %276 = vector.broadcast %cst_73 : f32 to vector<8x32xf32>
    %277 = arith.addf %276, %275 : vector<8x32xf32>
    %278 = arith.divf %276, %277 : vector<8x32xf32>
    %279 = arith.mulf %270, %247 : vector<8x32xf32>
    %280 = arith.mulf %264, %272 : vector<8x32xf32>
    %281 = arith.addf %279, %280 : vector<8x32xf32>
    %282 = math.tanh %281 : vector<8x32xf32>
    %283 = arith.mulf %278, %282 : vector<8x32xf32>
    %284 = arith.index_cast %c7_i32 : i32 to index
    %c0_74 = arith.constant 0 : index
    %c0_75 = arith.constant 0 : index
    %285 = vector.load %arg19[%284, %c0_74, %c0_75] : memref<9x8x32xf32, #tpu.memory_space<vmem>>, vector<1x8x32xf32>
    %286 = vector.shape_cast %285 : vector<1x8x32xf32> to vector<8x32xf32>
    %287 = vector.shape_cast %283 : vector<8x32xf32> to vector<1x8x32xf32>
    tpu.vector_store %arg19[%284, %c0_74, %c0_75], %287 {strides = array<i32>} : memref<9x8x32xf32, #tpu.memory_space<vmem>>, vector<1x8x32xf32>,
    %c8_i32 = arith.constant 8 : i32
    %288 = arith.index_cast %c8_i32 : i32 to index
    %c0_76 = arith.constant 0 : index
    %c0_77 = arith.constant 0 : index
    %289 = vector.load %arg20[%288, %c0_76, %c0_77] : memref<9x8x128xf32, #tpu.memory_space<vmem>>, vector<1x8x128xf32>
    %290 = vector.shape_cast %289 : vector<1x8x128xf32> to vector<8x128xf32>
    %cst_78 = arith.constant dense<0.000000e+00> : vector<8x128xf32>
    %291 = tpu.matmul %283, %2, %cst_78 {dimension_numbers = #tpu.dot_dimension_numbers<[1], [0], [0], [1], [0, 0, 1, 1], [], []>} : vector<8x32xf32>, vector<32x128xf32>, vector<8x128xf32> -> vector<8x128xf32>
    %292 = arith.addf %290, %291 : vector<8x128xf32>
    %293 = vector.extract_strided_slice %292 {offsets = [0, 0], sizes = [8, 32], strides = [1, 1]} : vector<8x128xf32> to vector<8x32xf32>
    %294 = arith.negf %293 : vector<8x32xf32>
    %295 = math.exp %294 : vector<8x32xf32>
    %cst_79 = arith.constant 1.000000e+00 : f32
    %296 = vector.broadcast %cst_79 : f32 to vector<8x32xf32>
    %297 = arith.addf %296, %295 : vector<8x32xf32>
    %298 = arith.divf %296, %297 : vector<8x32xf32>
    %299 = vector.extract_strided_slice %292 {offsets = [0, 32], sizes = [8, 32], strides = [1, 1]} : vector<8x128xf32> to vector<8x32xf32>
    %300 = arith.negf %299 : vector<8x32xf32>
    %301 = math.exp %300 : vector<8x32xf32>
    %cst_80 = arith.constant 1.000000e+00 : f32
    %302 = vector.broadcast %cst_80 : f32 to vector<8x32xf32>
    %303 = arith.addf %302, %301 : vector<8x32xf32>
    %304 = arith.divf %302, %303 : vector<8x32xf32>
    %305 = vector.extract_strided_slice %292 {offsets = [0, 64], sizes = [8, 32], strides = [1, 1]} : vector<8x128xf32> to vector<8x32xf32>
    %306 = math.tanh %305 : vector<8x32xf32>
    %307 = vector.extract_strided_slice %292 {offsets = [0, 96], sizes = [8, 32], strides = [1, 1]} : vector<8x128xf32> to vector<8x32xf32>
    %308 = arith.negf %307 : vector<8x32xf32>
    %309 = math.exp %308 : vector<8x32xf32>
    %cst_81 = arith.constant 1.000000e+00 : f32
    %310 = vector.broadcast %cst_81 : f32 to vector<8x32xf32>
    %311 = arith.addf %310, %309 : vector<8x32xf32>
    %312 = arith.divf %310, %311 : vector<8x32xf32>
    %313 = arith.mulf %304, %281 : vector<8x32xf32>
    %314 = arith.mulf %298, %306 : vector<8x32xf32>
    %315 = arith.addf %313, %314 : vector<8x32xf32>
    %316 = math.tanh %315 : vector<8x32xf32>
    %317 = arith.mulf %312, %316 : vector<8x32xf32>
    %318 = arith.index_cast %c8_i32 : i32 to index
    %c0_82 = arith.constant 0 : index
    %c0_83 = arith.constant 0 : index
    %319 = vector.load %arg19[%318, %c0_82, %c0_83] : memref<9x8x32xf32, #tpu.memory_space<vmem>>, vector<1x8x32xf32>
    %320 = vector.shape_cast %319 : vector<1x8x32xf32> to vector<8x32xf32>
    %321 = vector.shape_cast %317 : vector<8x32xf32> to vector<1x8x32xf32>
    tpu.vector_store %arg19[%318, %c0_82, %c0_83], %321 {strides = array<i32>} : memref<9x8x32xf32, #tpu.memory_space<vmem>>, vector<1x8x32xf32>,
    %c9_i32 = arith.constant 9 : i32
    %c0_84 = arith.constant 0 : index
    %c0_85 = arith.constant 0 : index
    %322 = vector.load %arg7[%c0_84, %c0_85] : memref<32x128xf32, #tpu.memory_space<vmem>>, vector<32x128xf32>
    %c0_86 = arith.constant 0 : index
    %c0_87 = arith.constant 0 : index
    %323 = vector.load %arg8[%c0_86, %c0_87] : memref<32x128xf32, #tpu.memory_space<vmem>>, vector<32x128xf32>
    %c0_88 = arith.constant 0 : index
    %c0_89 = arith.constant 0 : index
    %324 = vector.load %arg9[%c0_88, %c0_89] : memref<1x128xf32, #tpu.memory_space<vmem>>, vector<1x128xf32>
    %c0_90 = arith.constant 0 : index
    %c0_91 = arith.constant 0 : index
    %c0_92 = arith.constant 0 : index
    %325 = vector.load %arg19[%c0_90, %c0_91, %c0_92] : memref<9x8x32xf32, #tpu.memory_space<vmem>>, vector<9x8x32xf32>
    %326 = vector.shape_cast %325 : vector<9x8x32xf32> to vector<72x32xf32>
    %cst_93 = arith.constant dense<0.000000e+00> : vector<72x128xf32>
    %327 = tpu.matmul %326, %322, %cst_93 {dimension_numbers = #tpu.dot_dimension_numbers<[1], [0], [0], [1], [0, 0, 1, 1], [], []>} : vector<72x32xf32>, vector<32x128xf32>, vector<72x128xf32> -> vector<72x128xf32>
    %328 = vector.broadcast %324 : vector<1x128xf32> to vector<72x128xf32>
    %329 = arith.addf %327, %328 : vector<72x128xf32>
    %330 = vector.shape_cast %329 : vector<72x128xf32> to vector<9x8x128xf32>
    %c0_94 = arith.constant 0 : index
    %c0_95 = arith.constant 0 : index
    %c0_96 = arith.constant 0 : index
    %331 = vector.load %arg20[%c0_94, %c0_95, %c0_96] : memref<9x8x128xf32, #tpu.memory_space<vmem>>, vector<9x8x128xf32>
    tpu.vector_store %arg20[%c0_94, %c0_95, %c0_96], %330 {strides = array<i32>} : memref<9x8x128xf32, #tpu.memory_space<vmem>>, vector<9x8x128xf32>,
    %cst_97 = arith.constant 0.000000e+00 : f32
    %332 = vector.broadcast %cst_97 : f32 to vector<8x32xf32>
    %c0_i32_98 = arith.constant 0 : i32
    %333 = arith.index_cast %c0_i32_98 : i32 to index
    %c0_99 = arith.constant 0 : index
    %c0_100 = arith.constant 0 : index
    %334 = vector.load %arg20[%333, %c0_99, %c0_100] : memref<9x8x128xf32, #tpu.memory_space<vmem>>, vector<1x8x128xf32>
    %335 = vector.shape_cast %334 : vector<1x8x128xf32> to vector<8x128xf32>
    %cst_101 = arith.constant dense<0.000000e+00> : vector<8x128xf32>
    %336 = tpu.matmul %332, %323, %cst_101 {dimension_numbers = #tpu.dot_dimension_numbers<[1], [0], [0], [1], [0, 0, 1, 1], [], []>} : vector<8x32xf32>, vector<32x128xf32>, vector<8x128xf32> -> vector<8x128xf32>
    %337 = arith.addf %335, %336 : vector<8x128xf32>
    %338 = vector.extract_strided_slice %337 {offsets = [0, 0], sizes = [8, 32], strides = [1, 1]} : vector<8x128xf32> to vector<8x32xf32>
    %339 = arith.negf %338 : vector<8x32xf32>
    %340 = math.exp %339 : vector<8x32xf32>
    %cst_102 = arith.constant 1.000000e+00 : f32
    %341 = vector.broadcast %cst_102 : f32 to vector<8x32xf32>
    %342 = arith.addf %341, %340 : vector<8x32xf32>
    %343 = arith.divf %341, %342 : vector<8x32xf32>
    %344 = vector.extract_strided_slice %337 {offsets = [0, 32], sizes = [8, 32], strides = [1, 1]} : vector<8x128xf32> to vector<8x32xf32>
    %345 = arith.negf %344 : vector<8x32xf32>
    %346 = math.exp %345 : vector<8x32xf32>
    %cst_103 = arith.constant 1.000000e+00 : f32
    %347 = vector.broadcast %cst_103 : f32 to vector<8x32xf32>
    %348 = arith.addf %347, %346 : vector<8x32xf32>
    %349 = arith.divf %347, %348 : vector<8x32xf32>
    %350 = vector.extract_strided_slice %337 {offsets = [0, 64], sizes = [8, 32], strides = [1, 1]} : vector<8x128xf32> to vector<8x32xf32>
    %351 = math.tanh %350 : vector<8x32xf32>
    %352 = vector.extract_strided_slice %337 {offsets = [0, 96], sizes = [8, 32], strides = [1, 1]} : vector<8x128xf32> to vector<8x32xf32>
    %353 = arith.negf %352 : vector<8x32xf32>
    %354 = math.exp %353 : vector<8x32xf32>
    %cst_104 = arith.constant 1.000000e+00 : f32
    %355 = vector.broadcast %cst_104 : f32 to vector<8x32xf32>
    %356 = arith.addf %355, %354 : vector<8x32xf32>
    %357 = arith.divf %355, %356 : vector<8x32xf32>
    %358 = arith.mulf %349, %332 : vector<8x32xf32>
    %359 = arith.mulf %343, %351 : vector<8x32xf32>
    %360 = arith.addf %358, %359 : vector<8x32xf32>
    %361 = math.tanh %360 : vector<8x32xf32>
    %362 = arith.mulf %357, %361 : vector<8x32xf32>
    %c1_i32_105 = arith.constant 1 : i32
    %363 = arith.index_cast %c1_i32_105 : i32 to index
    %c0_106 = arith.constant 0 : index
    %c0_107 = arith.constant 0 : index
    %364 = vector.load %arg20[%363, %c0_106, %c0_107] : memref<9x8x128xf32, #tpu.memory_space<vmem>>, vector<1x8x128xf32>
    %365 = vector.shape_cast %364 : vector<1x8x128xf32> to vector<8x128xf32>
    %cst_108 = arith.constant dense<0.000000e+00> : vector<8x128xf32>
    %366 = tpu.matmul %362, %323, %cst_108 {dimension_numbers = #tpu.dot_dimension_numbers<[1], [0], [0], [1], [0, 0, 1, 1], [], []>} : vector<8x32xf32>, vector<32x128xf32>, vector<8x128xf32> -> vector<8x128xf32>
    %367 = arith.addf %365, %366 : vector<8x128xf32>
    %368 = vector.extract_strided_slice %367 {offsets = [0, 0], sizes = [8, 32], strides = [1, 1]} : vector<8x128xf32> to vector<8x32xf32>
    %369 = arith.negf %368 : vector<8x32xf32>
    %370 = math.exp %369 : vector<8x32xf32>
    %cst_109 = arith.constant 1.000000e+00 : f32
    %371 = vector.broadcast %cst_109 : f32 to vector<8x32xf32>
    %372 = arith.addf %371, %370 : vector<8x32xf32>
    %373 = arith.divf %371, %372 : vector<8x32xf32>
    %374 = vector.extract_strided_slice %367 {offsets = [0, 32], sizes = [8, 32], strides = [1, 1]} : vector<8x128xf32> to vector<8x32xf32>
    %375 = arith.negf %374 : vector<8x32xf32>
    %376 = math.exp %375 : vector<8x32xf32>
    %cst_110 = arith.constant 1.000000e+00 : f32
    %377 = vector.broadcast %cst_110 : f32 to vector<8x32xf32>
    %378 = arith.addf %377, %376 : vector<8x32xf32>
    %379 = arith.divf %377, %378 : vector<8x32xf32>
    %380 = vector.extract_strided_slice %367 {offsets = [0, 64], sizes = [8, 32], strides = [1, 1]} : vector<8x128xf32> to vector<8x32xf32>
    %381 = math.tanh %380 : vector<8x32xf32>
    %382 = vector.extract_strided_slice %367 {offsets = [0, 96], sizes = [8, 32], strides = [1, 1]} : vector<8x128xf32> to vector<8x32xf32>
    %383 = arith.negf %382 : vector<8x32xf32>
    %384 = math.exp %383 : vector<8x32xf32>
    %cst_111 = arith.constant 1.000000e+00 : f32
    %385 = vector.broadcast %cst_111 : f32 to vector<8x32xf32>
    %386 = arith.addf %385, %384 : vector<8x32xf32>
    %387 = arith.divf %385, %386 : vector<8x32xf32>
    %388 = arith.mulf %379, %360 : vector<8x32xf32>
    %389 = arith.mulf %373, %381 : vector<8x32xf32>
    %390 = arith.addf %388, %389 : vector<8x32xf32>
    %391 = math.tanh %390 : vector<8x32xf32>
    %392 = arith.mulf %387, %391 : vector<8x32xf32>
    %c2_i32_112 = arith.constant 2 : i32
    %393 = arith.index_cast %c2_i32_112 : i32 to index
    %c0_113 = arith.constant 0 : index
    %c0_114 = arith.constant 0 : index
    %394 = vector.load %arg20[%393, %c0_113, %c0_114] : memref<9x8x128xf32, #tpu.memory_space<vmem>>, vector<1x8x128xf32>
    %395 = vector.shape_cast %394 : vector<1x8x128xf32> to vector<8x128xf32>
    %cst_115 = arith.constant dense<0.000000e+00> : vector<8x128xf32>
    %396 = tpu.matmul %392, %323, %cst_115 {dimension_numbers = #tpu.dot_dimension_numbers<[1], [0], [0], [1], [0, 0, 1, 1], [], []>} : vector<8x32xf32>, vector<32x128xf32>, vector<8x128xf32> -> vector<8x128xf32>
    %397 = arith.addf %395, %396 : vector<8x128xf32>
    %398 = vector.extract_strided_slice %397 {offsets = [0, 0], sizes = [8, 32], strides = [1, 1]} : vector<8x128xf32> to vector<8x32xf32>
    %399 = arith.negf %398 : vector<8x32xf32>
    %400 = math.exp %399 : vector<8x32xf32>
    %cst_116 = arith.constant 1.000000e+00 : f32
    %401 = vector.broadcast %cst_116 : f32 to vector<8x32xf32>
    %402 = arith.addf %401, %400 : vector<8x32xf32>
    %403 = arith.divf %401, %402 : vector<8x32xf32>
    %404 = vector.extract_strided_slice %397 {offsets = [0, 32], sizes = [8, 32], strides = [1, 1]} : vector<8x128xf32> to vector<8x32xf32>
    %405 = arith.negf %404 : vector<8x32xf32>
    %406 = math.exp %405 : vector<8x32xf32>
    %cst_117 = arith.constant 1.000000e+00 : f32
    %407 = vector.broadcast %cst_117 : f32 to vector<8x32xf32>
    %408 = arith.addf %407, %406 : vector<8x32xf32>
    %409 = arith.divf %407, %408 : vector<8x32xf32>
    %410 = vector.extract_strided_slice %397 {offsets = [0, 64], sizes = [8, 32], strides = [1, 1]} : vector<8x128xf32> to vector<8x32xf32>
    %411 = math.tanh %410 : vector<8x32xf32>
    %412 = vector.extract_strided_slice %397 {offsets = [0, 96], sizes = [8, 32], strides = [1, 1]} : vector<8x128xf32> to vector<8x32xf32>
    %413 = arith.negf %412 : vector<8x32xf32>
    %414 = math.exp %413 : vector<8x32xf32>
    %cst_118 = arith.constant 1.000000e+00 : f32
    %415 = vector.broadcast %cst_118 : f32 to vector<8x32xf32>
    %416 = arith.addf %415, %414 : vector<8x32xf32>
    %417 = arith.divf %415, %416 : vector<8x32xf32>
    %418 = arith.mulf %409, %390 : vector<8x32xf32>
    %419 = arith.mulf %403, %411 : vector<8x32xf32>
    %420 = arith.addf %418, %419 : vector<8x32xf32>
    %421 = math.tanh %420 : vector<8x32xf32>
    %422 = arith.mulf %417, %421 : vector<8x32xf32>
    %c3_i32_119 = arith.constant 3 : i32
    %423 = arith.index_cast %c3_i32_119 : i32 to index
    %c0_120 = arith.constant 0 : index
    %c0_121 = arith.constant 0 : index
    %424 = vector.load %arg20[%423, %c0_120, %c0_121] : memref<9x8x128xf32, #tpu.memory_space<vmem>>, vector<1x8x128xf32>
    %425 = vector.shape_cast %424 : vector<1x8x128xf32> to vector<8x128xf32>
    %cst_122 = arith.constant dense<0.000000e+00> : vector<8x128xf32>
    %426 = tpu.matmul %422, %323, %cst_122 {dimension_numbers = #tpu.dot_dimension_numbers<[1], [0], [0], [1], [0, 0, 1, 1], [], []>} : vector<8x32xf32>, vector<32x128xf32>, vector<8x128xf32> -> vector<8x128xf32>
    %427 = arith.addf %425, %426 : vector<8x128xf32>
    %428 = vector.extract_strided_slice %427 {offsets = [0, 0], sizes = [8, 32], strides = [1, 1]} : vector<8x128xf32> to vector<8x32xf32>
    %429 = arith.negf %428 : vector<8x32xf32>
    %430 = math.exp %429 : vector<8x32xf32>
    %cst_123 = arith.constant 1.000000e+00 : f32
    %431 = vector.broadcast %cst_123 : f32 to vector<8x32xf32>
    %432 = arith.addf %431, %430 : vector<8x32xf32>
    %433 = arith.divf %431, %432 : vector<8x32xf32>
    %434 = vector.extract_strided_slice %427 {offsets = [0, 32], sizes = [8, 32], strides = [1, 1]} : vector<8x128xf32> to vector<8x32xf32>
    %435 = arith.negf %434 : vector<8x32xf32>
    %436 = math.exp %435 : vector<8x32xf32>
    %cst_124 = arith.constant 1.000000e+00 : f32
    %437 = vector.broadcast %cst_124 : f32 to vector<8x32xf32>
    %438 = arith.addf %437, %436 : vector<8x32xf32>
    %439 = arith.divf %437, %438 : vector<8x32xf32>
    %440 = vector.extract_strided_slice %427 {offsets = [0, 64], sizes = [8, 32], strides = [1, 1]} : vector<8x128xf32> to vector<8x32xf32>
    %441 = math.tanh %440 : vector<8x32xf32>
    %442 = vector.extract_strided_slice %427 {offsets = [0, 96], sizes = [8, 32], strides = [1, 1]} : vector<8x128xf32> to vector<8x32xf32>
    %443 = arith.negf %442 : vector<8x32xf32>
    %444 = math.exp %443 : vector<8x32xf32>
    %cst_125 = arith.constant 1.000000e+00 : f32
    %445 = vector.broadcast %cst_125 : f32 to vector<8x32xf32>
    %446 = arith.addf %445, %444 : vector<8x32xf32>
    %447 = arith.divf %445, %446 : vector<8x32xf32>
    %448 = arith.mulf %439, %420 : vector<8x32xf32>
    %449 = arith.mulf %433, %441 : vector<8x32xf32>
    %450 = arith.addf %448, %449 : vector<8x32xf32>
    %451 = math.tanh %450 : vector<8x32xf32>
    %452 = arith.mulf %447, %451 : vector<8x32xf32>
    %c4_i32_126 = arith.constant 4 : i32
    %453 = arith.index_cast %c4_i32_126 : i32 to index
    %c0_127 = arith.constant 0 : index
    %c0_128 = arith.constant 0 : index
    %454 = vector.load %arg20[%453, %c0_127, %c0_128] : memref<9x8x128xf32, #tpu.memory_space<vmem>>, vector<1x8x128xf32>
    %455 = vector.shape_cast %454 : vector<1x8x128xf32> to vector<8x128xf32>
    %cst_129 = arith.constant dense<0.000000e+00> : vector<8x128xf32>
    %456 = tpu.matmul %452, %323, %cst_129 {dimension_numbers = #tpu.dot_dimension_numbers<[1], [0], [0], [1], [0, 0, 1, 1], [], []>} : vector<8x32xf32>, vector<32x128xf32>, vector<8x128xf32> -> vector<8x128xf32>
    %457 = arith.addf %455, %456 : vector<8x128xf32>
    %458 = vector.extract_strided_slice %457 {offsets = [0, 0], sizes = [8, 32], strides = [1, 1]} : vector<8x128xf32> to vector<8x32xf32>
    %459 = arith.negf %458 : vector<8x32xf32>
    %460 = math.exp %459 : vector<8x32xf32>
    %cst_130 = arith.constant 1.000000e+00 : f32
    %461 = vector.broadcast %cst_130 : f32 to vector<8x32xf32>
    %462 = arith.addf %461, %460 : vector<8x32xf32>
    %463 = arith.divf %461, %462 : vector<8x32xf32>
    %464 = vector.extract_strided_slice %457 {offsets = [0, 32], sizes = [8, 32], strides = [1, 1]} : vector<8x128xf32> to vector<8x32xf32>
    %465 = arith.negf %464 : vector<8x32xf32>
    %466 = math.exp %465 : vector<8x32xf32>
    %cst_131 = arith.constant 1.000000e+00 : f32
    %467 = vector.broadcast %cst_131 : f32 to vector<8x32xf32>
    %468 = arith.addf %467, %466 : vector<8x32xf32>
    %469 = arith.divf %467, %468 : vector<8x32xf32>
    %470 = vector.extract_strided_slice %457 {offsets = [0, 64], sizes = [8, 32], strides = [1, 1]} : vector<8x128xf32> to vector<8x32xf32>
    %471 = math.tanh %470 : vector<8x32xf32>
    %472 = vector.extract_strided_slice %457 {offsets = [0, 96], sizes = [8, 32], strides = [1, 1]} : vector<8x128xf32> to vector<8x32xf32>
    %473 = arith.negf %472 : vector<8x32xf32>
    %474 = math.exp %473 : vector<8x32xf32>
    %cst_132 = arith.constant 1.000000e+00 : f32
    %475 = vector.broadcast %cst_132 : f32 to vector<8x32xf32>
    %476 = arith.addf %475, %474 : vector<8x32xf32>
    %477 = arith.divf %475, %476 : vector<8x32xf32>
    %478 = arith.mulf %469, %450 : vector<8x32xf32>
    %479 = arith.mulf %463, %471 : vector<8x32xf32>
    %480 = arith.addf %478, %479 : vector<8x32xf32>
    %481 = math.tanh %480 : vector<8x32xf32>
    %482 = arith.mulf %477, %481 : vector<8x32xf32>
    %c5_i32_133 = arith.constant 5 : i32
    %483 = arith.index_cast %c5_i32_133 : i32 to index
    %c0_134 = arith.constant 0 : index
    %c0_135 = arith.constant 0 : index
    %484 = vector.load %arg20[%483, %c0_134, %c0_135] : memref<9x8x128xf32, #tpu.memory_space<vmem>>, vector<1x8x128xf32>
    %485 = vector.shape_cast %484 : vector<1x8x128xf32> to vector<8x128xf32>
    %cst_136 = arith.constant dense<0.000000e+00> : vector<8x128xf32>
    %486 = tpu.matmul %482, %323, %cst_136 {dimension_numbers = #tpu.dot_dimension_numbers<[1], [0], [0], [1], [0, 0, 1, 1], [], []>} : vector<8x32xf32>, vector<32x128xf32>, vector<8x128xf32> -> vector<8x128xf32>
    %487 = arith.addf %485, %486 : vector<8x128xf32>
    %488 = vector.extract_strided_slice %487 {offsets = [0, 0], sizes = [8, 32], strides = [1, 1]} : vector<8x128xf32> to vector<8x32xf32>
    %489 = arith.negf %488 : vector<8x32xf32>
    %490 = math.exp %489 : vector<8x32xf32>
    %cst_137 = arith.constant 1.000000e+00 : f32
    %491 = vector.broadcast %cst_137 : f32 to vector<8x32xf32>
    %492 = arith.addf %491, %490 : vector<8x32xf32>
    %493 = arith.divf %491, %492 : vector<8x32xf32>
    %494 = vector.extract_strided_slice %487 {offsets = [0, 32], sizes = [8, 32], strides = [1, 1]} : vector<8x128xf32> to vector<8x32xf32>
    %495 = arith.negf %494 : vector<8x32xf32>
    %496 = math.exp %495 : vector<8x32xf32>
    %cst_138 = arith.constant 1.000000e+00 : f32
    %497 = vector.broadcast %cst_138 : f32 to vector<8x32xf32>
    %498 = arith.addf %497, %496 : vector<8x32xf32>
    %499 = arith.divf %497, %498 : vector<8x32xf32>
    %500 = vector.extract_strided_slice %487 {offsets = [0, 64], sizes = [8, 32], strides = [1, 1]} : vector<8x128xf32> to vector<8x32xf32>
    %501 = math.tanh %500 : vector<8x32xf32>
    %502 = vector.extract_strided_slice %487 {offsets = [0, 96], sizes = [8, 32], strides = [1, 1]} : vector<8x128xf32> to vector<8x32xf32>
    %503 = arith.negf %502 : vector<8x32xf32>
    %504 = math.exp %503 : vector<8x32xf32>
    %cst_139 = arith.constant 1.000000e+00 : f32
    %505 = vector.broadcast %cst_139 : f32 to vector<8x32xf32>
    %506 = arith.addf %505, %504 : vector<8x32xf32>
    %507 = arith.divf %505, %506 : vector<8x32xf32>
    %508 = arith.mulf %499, %480 : vector<8x32xf32>
    %509 = arith.mulf %493, %501 : vector<8x32xf32>
    %510 = arith.addf %508, %509 : vector<8x32xf32>
    %511 = math.tanh %510 : vector<8x32xf32>
    %512 = arith.mulf %507, %511 : vector<8x32xf32>
    %c6_i32_140 = arith.constant 6 : i32
    %513 = arith.index_cast %c6_i32_140 : i32 to index
    %c0_141 = arith.constant 0 : index
    %c0_142 = arith.constant 0 : index
    %514 = vector.load %arg20[%513, %c0_141, %c0_142] : memref<9x8x128xf32, #tpu.memory_space<vmem>>, vector<1x8x128xf32>
    %515 = vector.shape_cast %514 : vector<1x8x128xf32> to vector<8x128xf32>
    %cst_143 = arith.constant dense<0.000000e+00> : vector<8x128xf32>
    %516 = tpu.matmul %512, %323, %cst_143 {dimension_numbers = #tpu.dot_dimension_numbers<[1], [0], [0], [1], [0, 0, 1, 1], [], []>} : vector<8x32xf32>, vector<32x128xf32>, vector<8x128xf32> -> vector<8x128xf32>
    %517 = arith.addf %515, %516 : vector<8x128xf32>
    %518 = vector.extract_strided_slice %517 {offsets = [0, 0], sizes = [8, 32], strides = [1, 1]} : vector<8x128xf32> to vector<8x32xf32>
    %519 = arith.negf %518 : vector<8x32xf32>
    %520 = math.exp %519 : vector<8x32xf32>
    %cst_144 = arith.constant 1.000000e+00 : f32
    %521 = vector.broadcast %cst_144 : f32 to vector<8x32xf32>
    %522 = arith.addf %521, %520 : vector<8x32xf32>
    %523 = arith.divf %521, %522 : vector<8x32xf32>
    %524 = vector.extract_strided_slice %517 {offsets = [0, 32], sizes = [8, 32], strides = [1, 1]} : vector<8x128xf32> to vector<8x32xf32>
    %525 = arith.negf %524 : vector<8x32xf32>
    %526 = math.exp %525 : vector<8x32xf32>
    %cst_145 = arith.constant 1.000000e+00 : f32
    %527 = vector.broadcast %cst_145 : f32 to vector<8x32xf32>
    %528 = arith.addf %527, %526 : vector<8x32xf32>
    %529 = arith.divf %527, %528 : vector<8x32xf32>
    %530 = vector.extract_strided_slice %517 {offsets = [0, 64], sizes = [8, 32], strides = [1, 1]} : vector<8x128xf32> to vector<8x32xf32>
    %531 = math.tanh %530 : vector<8x32xf32>
    %532 = vector.extract_strided_slice %517 {offsets = [0, 96], sizes = [8, 32], strides = [1, 1]} : vector<8x128xf32> to vector<8x32xf32>
    %533 = arith.negf %532 : vector<8x32xf32>
    %534 = math.exp %533 : vector<8x32xf32>
    %cst_146 = arith.constant 1.000000e+00 : f32
    %535 = vector.broadcast %cst_146 : f32 to vector<8x32xf32>
    %536 = arith.addf %535, %534 : vector<8x32xf32>
    %537 = arith.divf %535, %536 : vector<8x32xf32>
    %538 = arith.mulf %529, %510 : vector<8x32xf32>
    %539 = arith.mulf %523, %531 : vector<8x32xf32>
    %540 = arith.addf %538, %539 : vector<8x32xf32>
    %541 = math.tanh %540 : vector<8x32xf32>
    %542 = arith.mulf %537, %541 : vector<8x32xf32>
    %c7_i32_147 = arith.constant 7 : i32
    %543 = arith.index_cast %c7_i32_147 : i32 to index
    %c0_148 = arith.constant 0 : index
    %c0_149 = arith.constant 0 : index
    %544 = vector.load %arg20[%543, %c0_148, %c0_149] : memref<9x8x128xf32, #tpu.memory_space<vmem>>, vector<1x8x128xf32>
    %545 = vector.shape_cast %544 : vector<1x8x128xf32> to vector<8x128xf32>
    %cst_150 = arith.constant dense<0.000000e+00> : vector<8x128xf32>
    %546 = tpu.matmul %542, %323, %cst_150 {dimension_numbers = #tpu.dot_dimension_numbers<[1], [0], [0], [1], [0, 0, 1, 1], [], []>} : vector<8x32xf32>, vector<32x128xf32>, vector<8x128xf32> -> vector<8x128xf32>
    %547 = arith.addf %545, %546 : vector<8x128xf32>
    %548 = vector.extract_strided_slice %547 {offsets = [0, 0], sizes = [8, 32], strides = [1, 1]} : vector<8x128xf32> to vector<8x32xf32>
    %549 = arith.negf %548 : vector<8x32xf32>
    %550 = math.exp %549 : vector<8x32xf32>
    %cst_151 = arith.constant 1.000000e+00 : f32
    %551 = vector.broadcast %cst_151 : f32 to vector<8x32xf32>
    %552 = arith.addf %551, %550 : vector<8x32xf32>
    %553 = arith.divf %551, %552 : vector<8x32xf32>
    %554 = vector.extract_strided_slice %547 {offsets = [0, 32], sizes = [8, 32], strides = [1, 1]} : vector<8x128xf32> to vector<8x32xf32>
    %555 = arith.negf %554 : vector<8x32xf32>
    %556 = math.exp %555 : vector<8x32xf32>
    %cst_152 = arith.constant 1.000000e+00 : f32
    %557 = vector.broadcast %cst_152 : f32 to vector<8x32xf32>
    %558 = arith.addf %557, %556 : vector<8x32xf32>
    %559 = arith.divf %557, %558 : vector<8x32xf32>
    %560 = vector.extract_strided_slice %547 {offsets = [0, 64], sizes = [8, 32], strides = [1, 1]} : vector<8x128xf32> to vector<8x32xf32>
    %561 = math.tanh %560 : vector<8x32xf32>
    %562 = vector.extract_strided_slice %547 {offsets = [0, 96], sizes = [8, 32], strides = [1, 1]} : vector<8x128xf32> to vector<8x32xf32>
    %563 = arith.negf %562 : vector<8x32xf32>
    %564 = math.exp %563 : vector<8x32xf32>
    %cst_153 = arith.constant 1.000000e+00 : f32
    %565 = vector.broadcast %cst_153 : f32 to vector<8x32xf32>
    %566 = arith.addf %565, %564 : vector<8x32xf32>
    %567 = arith.divf %565, %566 : vector<8x32xf32>
    %568 = arith.mulf %559, %540 : vector<8x32xf32>
    %569 = arith.mulf %553, %561 : vector<8x32xf32>
    %570 = arith.addf %568, %569 : vector<8x32xf32>
    %571 = math.tanh %570 : vector<8x32xf32>
    %572 = arith.mulf %567, %571 : vector<8x32xf32>
    %c8_i32_154 = arith.constant 8 : i32
    %573 = arith.index_cast %c8_i32_154 : i32 to index
    %c0_155 = arith.constant 0 : index
    %c0_156 = arith.constant 0 : index
    %574 = vector.load %arg20[%573, %c0_155, %c0_156] : memref<9x8x128xf32, #tpu.memory_space<vmem>>, vector<1x8x128xf32>
    %575 = vector.shape_cast %574 : vector<1x8x128xf32> to vector<8x128xf32>
    %cst_157 = arith.constant dense<0.000000e+00> : vector<8x128xf32>
    %576 = tpu.matmul %572, %323, %cst_157 {dimension_numbers = #tpu.dot_dimension_numbers<[1], [0], [0], [1], [0, 0, 1, 1], [], []>} : vector<8x32xf32>, vector<32x128xf32>, vector<8x128xf32> -> vector<8x128xf32>
    %577 = arith.addf %575, %576 : vector<8x128xf32>
    %578 = vector.extract_strided_slice %577 {offsets = [0, 0], sizes = [8, 32], strides = [1, 1]} : vector<8x128xf32> to vector<8x32xf32>
    %579 = arith.negf %578 : vector<8x32xf32>
    %580 = math.exp %579 : vector<8x32xf32>
    %cst_158 = arith.constant 1.000000e+00 : f32
    %581 = vector.broadcast %cst_158 : f32 to vector<8x32xf32>
    %582 = arith.addf %581, %580 : vector<8x32xf32>
    %583 = arith.divf %581, %582 : vector<8x32xf32>
    %584 = vector.extract_strided_slice %577 {offsets = [0, 32], sizes = [8, 32], strides = [1, 1]} : vector<8x128xf32> to vector<8x32xf32>
    %585 = arith.negf %584 : vector<8x32xf32>
    %586 = math.exp %585 : vector<8x32xf32>
    %cst_159 = arith.constant 1.000000e+00 : f32
    %587 = vector.broadcast %cst_159 : f32 to vector<8x32xf32>
    %588 = arith.addf %587, %586 : vector<8x32xf32>
    %589 = arith.divf %587, %588 : vector<8x32xf32>
    %590 = vector.extract_strided_slice %577 {offsets = [0, 64], sizes = [8, 32], strides = [1, 1]} : vector<8x128xf32> to vector<8x32xf32>
    %591 = math.tanh %590 : vector<8x32xf32>
    %592 = vector.extract_strided_slice %577 {offsets = [0, 96], sizes = [8, 32], strides = [1, 1]} : vector<8x128xf32> to vector<8x32xf32>
    %593 = arith.negf %592 : vector<8x32xf32>
    %594 = math.exp %593 : vector<8x32xf32>
    %cst_160 = arith.constant 1.000000e+00 : f32
    %595 = vector.broadcast %cst_160 : f32 to vector<8x32xf32>
    %596 = arith.addf %595, %594 : vector<8x32xf32>
    %597 = arith.divf %595, %596 : vector<8x32xf32>
    %598 = arith.mulf %589, %570 : vector<8x32xf32>
    %599 = arith.mulf %583, %591 : vector<8x32xf32>
    %600 = arith.addf %598, %599 : vector<8x32xf32>
    %601 = math.tanh %600 : vector<8x32xf32>
    %602 = arith.mulf %597, %601 : vector<8x32xf32>
    %c9_i32_161 = arith.constant 9 : i32
    %c0_162 = arith.constant 0 : index
    %c0_163 = arith.constant 0 : index
    %603 = vector.load %arg10[%c0_162, %c0_163] : memref<128x128xf32, #tpu.memory_space<vmem>>, vector<128x128xf32>
    %c0_164 = arith.constant 0 : index
    %c0_165 = arith.constant 0 : index
    %604 = vector.load %arg11[%c0_164, %c0_165] : memref<32x128xf32, #tpu.memory_space<vmem>>, vector<32x128xf32>
    %c0_166 = arith.constant 0 : index
    %c0_167 = arith.constant 0 : index
    %605 = vector.load %arg12[%c0_166, %c0_167] : memref<1x128xf32, #tpu.memory_space<vmem>>, vector<1x128xf32>
    %c0_168 = arith.constant 0 : index
    %c0_169 = arith.constant 0 : index
    %606 = vector.load %arg13[%c0_168, %c0_169] : memref<32x128xf32, #tpu.memory_space<vmem>>, vector<32x128xf32>
    %c0_170 = arith.constant 0 : index
    %c0_171 = arith.constant 0 : index
    %607 = vector.load %arg14[%c0_170, %c0_171] : memref<32x128xf32, #tpu.memory_space<vmem>>, vector<32x128xf32>
    %c0_172 = arith.constant 0 : index
    %c0_173 = arith.constant 0 : index
    %608 = vector.load %arg15[%c0_172, %c0_173] : memref<1x128xf32, #tpu.memory_space<vmem>>, vector<1x128xf32>
    %c0_174 = arith.constant 0 : index
    %c0_175 = arith.constant 0 : index
    %609 = vector.load %arg16[%c0_174, %c0_175] : memref<32x128xf32, #tpu.memory_space<vmem>>, vector<32x128xf32>
    %c0_176 = arith.constant 0 : index
    %c0_177 = arith.constant 0 : index
    %610 = vector.load %arg17[%c0_176, %c0_177] : memref<1x128xf32, #tpu.memory_space<vmem>>, vector<1x128xf32>
    %611 = tpu.iota {dimensions = array<i32: 1>} : vector<8x128xi32>
    %612 = arith.sitofp %611 : vector<8x128xi32> to vector<8x128xf32>
    %cst_178 = arith.constant 0.000000e+00 : f32
    %613 = vector.broadcast %cst_178 : f32 to vector<8x128xf32>
    %c0_179 = arith.constant 0 : index
    %c0_180 = arith.constant 0 : index
    %c0_181 = arith.constant 0 : index
    %614 = vector.load %arg18[%c0_179, %c0_180, %c0_181] : memref<7x8x128xf32, #tpu.memory_space<vmem>>, vector<1x8x128xf32>
    %615 = vector.shape_cast %614 : vector<1x8x128xf32> to vector<8x128xf32>
    %616 = vector.shape_cast %613 : vector<8x128xf32> to vector<1x8x128xf32>
    tpu.vector_store %arg18[%c0_179, %c0_180, %c0_181], %616 {strides = array<i32>} : memref<7x8x128xf32, #tpu.memory_space<vmem>>, vector<1x8x128xf32>,
    %c0_182 = arith.constant 0 : index
    %c0_183 = arith.constant 0 : index
    %c0_184 = arith.constant 0 : index
    %617 = vector.load %arg3[%c0_182, %c0_183, %c0_184] : memref<7x8x1xi32, #tpu.memory_space<vmem>>, vector<1x8x1xi32>
    %618 = vector.shape_cast %617 : vector<1x8x1xi32> to vector<8x1xi32>
    %619 = vector.broadcast %618 : vector<8x1xi32> to vector<8x128xi32>
    %620 = arith.cmpi eq, %611, %619 : vector<8x128xi32>
    %621 = arith.extui %620 : vector<8x128xi1> to vector<8x128xi32>
    %622 = arith.sitofp %621 : vector<8x128xi32> to vector<8x128xf32>
    %c1_i32_185 = arith.constant 1 : i32
    %cst_186 = arith.constant dense<0.000000e+00> : vector<8x128xf32>
    %623 = tpu.matmul %622, %603, %cst_186 {dimension_numbers = #tpu.dot_dimension_numbers<[1], [0], [0], [1], [0, 0, 1, 1], [], []>} : vector<8x128xf32>, vector<128x128xf32>, vector<8x128xf32> -> vector<8x128xf32>
    %cst_187 = arith.constant dense<0.000000e+00> : vector<8x128xf32>
    %624 = tpu.matmul %317, %604, %cst_187 {dimension_numbers = #tpu.dot_dimension_numbers<[1], [0], [0], [1], [0, 0, 1, 1], [], []>} : vector<8x32xf32>, vector<32x128xf32>, vector<8x128xf32> -> vector<8x128xf32>
    %625 = arith.addf %623, %624 : vector<8x128xf32>
    %626 = vector.broadcast %605 : vector<1x128xf32> to vector<8x128xf32>
    %627 = arith.addf %625, %626 : vector<8x128xf32>
    %628 = vector.extract_strided_slice %627 {offsets = [0, 0], sizes = [8, 32], strides = [1, 1]} : vector<8x128xf32> to vector<8x32xf32>
    %629 = arith.negf %628 : vector<8x32xf32>
    %630 = math.exp %629 : vector<8x32xf32>
    %cst_188 = arith.constant 1.000000e+00 : f32
    %631 = vector.broadcast %cst_188 : f32 to vector<8x32xf32>
    %632 = arith.addf %631, %630 : vector<8x32xf32>
    %633 = arith.divf %631, %632 : vector<8x32xf32>
    %634 = vector.extract_strided_slice %627 {offsets = [0, 32], sizes = [8, 32], strides = [1, 1]} : vector<8x128xf32> to vector<8x32xf32>
    %635 = arith.negf %634 : vector<8x32xf32>
    %636 = math.exp %635 : vector<8x32xf32>
    %cst_189 = arith.constant 1.000000e+00 : f32
    %637 = vector.broadcast %cst_189 : f32 to vector<8x32xf32>
    %638 = arith.addf %637, %636 : vector<8x32xf32>
    %639 = arith.divf %637, %638 : vector<8x32xf32>
    %640 = vector.extract_strided_slice %627 {offsets = [0, 64], sizes = [8, 32], strides = [1, 1]} : vector<8x128xf32> to vector<8x32xf32>
    %641 = math.tanh %640 : vector<8x32xf32>
    %642 = vector.extract_strided_slice %627 {offsets = [0, 96], sizes = [8, 32], strides = [1, 1]} : vector<8x128xf32> to vector<8x32xf32>
    %643 = arith.negf %642 : vector<8x32xf32>
    %644 = math.exp %643 : vector<8x32xf32>
    %cst_190 = arith.constant 1.000000e+00 : f32
    %645 = vector.broadcast %cst_190 : f32 to vector<8x32xf32>
    %646 = arith.addf %645, %644 : vector<8x32xf32>
    %647 = arith.divf %645, %646 : vector<8x32xf32>
    %648 = arith.mulf %639, %315 : vector<8x32xf32>
    %649 = arith.mulf %633, %641 : vector<8x32xf32>
    %650 = arith.addf %648, %649 : vector<8x32xf32>
    %651 = math.tanh %650 : vector<8x32xf32>
    %652 = arith.mulf %647, %651 : vector<8x32xf32>
    %cst_191 = arith.constant dense<0.000000e+00> : vector<8x128xf32>
    %653 = tpu.matmul %652, %606, %cst_191 {dimension_numbers = #tpu.dot_dimension_numbers<[1], [0], [0], [1], [0, 0, 1, 1], [], []>} : vector<8x32xf32>, vector<32x128xf32>, vector<8x128xf32> -> vector<8x128xf32>
    %cst_192 = arith.constant dense<0.000000e+00> : vector<8x128xf32>
    %654 = tpu.matmul %602, %607, %cst_192 {dimension_numbers = #tpu.dot_dimension_numbers<[1], [0], [0], [1], [0, 0, 1, 1], [], []>} : vector<8x32xf32>, vector<32x128xf32>, vector<8x128xf32> -> vector<8x128xf32>
    %655 = arith.addf %653, %654 : vector<8x128xf32>
    %656 = vector.broadcast %608 : vector<1x128xf32> to vector<8x128xf32>
    %657 = arith.addf %655, %656 : vector<8x128xf32>
    %658 = vector.extract_strided_slice %657 {offsets = [0, 0], sizes = [8, 32], strides = [1, 1]} : vector<8x128xf32> to vector<8x32xf32>
    %659 = arith.negf %658 : vector<8x32xf32>
    %660 = math.exp %659 : vector<8x32xf32>
    %cst_193 = arith.constant 1.000000e+00 : f32
    %661 = vector.broadcast %cst_193 : f32 to vector<8x32xf32>
    %662 = arith.addf %661, %660 : vector<8x32xf32>
    %663 = arith.divf %661, %662 : vector<8x32xf32>
    %664 = vector.extract_strided_slice %657 {offsets = [0, 32], sizes = [8, 32], strides = [1, 1]} : vector<8x128xf32> to vector<8x32xf32>
    %665 = arith.negf %664 : vector<8x32xf32>
    %666 = math.exp %665 : vector<8x32xf32>
    %cst_194 = arith.constant 1.000000e+00 : f32
    %667 = vector.broadcast %cst_194 : f32 to vector<8x32xf32>
    %668 = arith.addf %667, %666 : vector<8x32xf32>
    %669 = arith.divf %667, %668 : vector<8x32xf32>
    %670 = vector.extract_strided_slice %657 {offsets = [0, 64], sizes = [8, 32], strides = [1, 1]} : vector<8x128xf32> to vector<8x32xf32>
    %671 = math.tanh %670 : vector<8x32xf32>
    %672 = vector.extract_strided_slice %657 {offsets = [0, 96], sizes = [8, 32], strides = [1, 1]} : vector<8x128xf32> to vector<8x32xf32>
    %673 = arith.negf %672 : vector<8x32xf32>
    %674 = math.exp %673 : vector<8x32xf32>
    %cst_195 = arith.constant 1.000000e+00 : f32
    %675 = vector.broadcast %cst_195 : f32 to vector<8x32xf32>
    %676 = arith.addf %675, %674 : vector<8x32xf32>
    %677 = arith.divf %675, %676 : vector<8x32xf32>
    %678 = arith.mulf %669, %600 : vector<8x32xf32>
    %679 = arith.mulf %663, %671 : vector<8x32xf32>
    %680 = arith.addf %678, %679 : vector<8x32xf32>
    %681 = math.tanh %680 : vector<8x32xf32>
    %682 = arith.mulf %677, %681 : vector<8x32xf32>
    %cst_196 = arith.constant dense<0.000000e+00> : vector<8x128xf32>
    %683 = tpu.matmul %682, %609, %cst_196 {dimension_numbers = #tpu.dot_dimension_numbers<[1], [0], [0], [1], [0, 0, 1, 1], [], []>} : vector<8x32xf32>, vector<32x128xf32>, vector<8x128xf32> -> vector<8x128xf32>
    %684 = vector.broadcast %610 : vector<1x128xf32> to vector<8x128xf32>
    %685 = arith.addf %683, %684 : vector<8x128xf32>
    %686 = arith.index_cast %c1_i32_185 : i32 to index
    %c0_197 = arith.constant 0 : index
    %c0_198 = arith.constant 0 : index
    %687 = vector.load %arg18[%686, %c0_197, %c0_198] : memref<7x8x128xf32, #tpu.memory_space<vmem>>, vector<1x8x128xf32>
    %688 = vector.shape_cast %687 : vector<1x8x128xf32> to vector<8x128xf32>
    %689 = vector.shape_cast %685 : vector<8x128xf32> to vector<1x8x128xf32>
    tpu.vector_store %arg18[%686, %c0_197, %c0_198], %689 {strides = array<i32>} : memref<7x8x128xf32, #tpu.memory_space<vmem>>, vector<1x8x128xf32>,
    %cst_199 = arith.constant dense<0xFF800000> : vector<8xf32>
    %690 = vector.multi_reduction <maximumf>, %685, %cst_199 [1] : vector<8x128xf32> to vector<8xf32>
    %691 = vector.shape_cast %690 : vector<8xf32> to vector<8x1xf32>
    %692 = vector.broadcast %691 : vector<8x1xf32> to vector<8x128xf32>
    %693 = arith.cmpf oge, %685, %692 : vector<8x128xf32>
    %cst_200 = arith.constant 1.280000e+02 : f32
    %694 = vector.broadcast %cst_200 : f32 to vector<8x128xf32>
    %695 = arith.select %693, %612, %694 : vector<8x128xi1>, vector<8x128xf32>
    %cst_201 = arith.constant dense<0x7F800000> : vector<8xf32>
    %696 = vector.multi_reduction <minimumf>, %695, %cst_201 [1] : vector<8x128xf32> to vector<8xf32>
    %697 = vector.shape_cast %696 : vector<8xf32> to vector<8x1xf32>
    %698 = vector.broadcast %697 : vector<8x1xf32> to vector<8x128xf32>
    %699 = arith.cmpf oeq, %612, %698 : vector<8x128xf32>
    %700 = arith.extui %699 : vector<8x128xi1> to vector<8x128xi32>
    %701 = arith.sitofp %700 : vector<8x128xi32> to vector<8x128xf32>
    %702 = arith.index_cast %c1_i32_185 : i32 to index
    %c0_202 = arith.constant 0 : index
    %c0_203 = arith.constant 0 : index
    %703 = vector.load %arg3[%702, %c0_202, %c0_203] : memref<7x8x1xi32, #tpu.memory_space<vmem>>, vector<1x8x1xi32>
    %704 = vector.shape_cast %703 : vector<1x8x1xi32> to vector<8x1xi32>
    %705 = vector.broadcast %704 : vector<8x1xi32> to vector<8x128xi32>
    %706 = arith.cmpi eq, %611, %705 : vector<8x128xi32>
    %707 = arith.extui %706 : vector<8x128xi1> to vector<8x128xi32>
    %708 = arith.sitofp %707 : vector<8x128xi32> to vector<8x128xf32>
    %709 = arith.index_cast %c1_i32_185 : i32 to index
    %710 = memref.load %arg1[%709] : memref<7xi32, #tpu.memory_space<smem>>
    %c0_i32_204 = arith.constant 0 : i32
    %711 = arith.cmpi ne, %710, %c0_i32_204 : i32
    %712 = arith.extui %711 : i1 to i32
    %713 = arith.sitofp %712 : i32 to f32
    %714 = vector.broadcast %713 : f32 to vector<8x128xf32>
    %715 = arith.mulf %714, %708 : vector<8x128xf32>
    %cst_205 = arith.constant 1.000000e+00 : f32
    %716 = arith.subf %cst_205, %713 : f32
    %717 = vector.broadcast %716 : f32 to vector<8x128xf32>
    %718 = arith.mulf %717, %701 : vector<8x128xf32>
    %719 = arith.addf %715, %718 : vector<8x128xf32>
    %c2_i32_206 = arith.constant 2 : i32
    %cst_207 = arith.constant dense<0.000000e+00> : vector<8x128xf32>
    %720 = tpu.matmul %719, %603, %cst_207 {dimension_numbers = #tpu.dot_dimension_numbers<[1], [0], [0], [1], [0, 0, 1, 1], [], []>} : vector<8x128xf32>, vector<128x128xf32>, vector<8x128xf32> -> vector<8x128xf32>
    %cst_208 = arith.constant dense<0.000000e+00> : vector<8x128xf32>
    %721 = tpu.matmul %652, %604, %cst_208 {dimension_numbers = #tpu.dot_dimension_numbers<[1], [0], [0], [1], [0, 0, 1, 1], [], []>} : vector<8x32xf32>, vector<32x128xf32>, vector<8x128xf32> -> vector<8x128xf32>
    %722 = arith.addf %720, %721 : vector<8x128xf32>
    %723 = vector.broadcast %605 : vector<1x128xf32> to vector<8x128xf32>
    %724 = arith.addf %722, %723 : vector<8x128xf32>
    %725 = vector.extract_strided_slice %724 {offsets = [0, 0], sizes = [8, 32], strides = [1, 1]} : vector<8x128xf32> to vector<8x32xf32>
    %726 = arith.negf %725 : vector<8x32xf32>
    %727 = math.exp %726 : vector<8x32xf32>
    %cst_209 = arith.constant 1.000000e+00 : f32
    %728 = vector.broadcast %cst_209 : f32 to vector<8x32xf32>
    %729 = arith.addf %728, %727 : vector<8x32xf32>
    %730 = arith.divf %728, %729 : vector<8x32xf32>
    %731 = vector.extract_strided_slice %724 {offsets = [0, 32], sizes = [8, 32], strides = [1, 1]} : vector<8x128xf32> to vector<8x32xf32>
    %732 = arith.negf %731 : vector<8x32xf32>
    %733 = math.exp %732 : vector<8x32xf32>
    %cst_210 = arith.constant 1.000000e+00 : f32
    %734 = vector.broadcast %cst_210 : f32 to vector<8x32xf32>
    %735 = arith.addf %734, %733 : vector<8x32xf32>
    %736 = arith.divf %734, %735 : vector<8x32xf32>
    %737 = vector.extract_strided_slice %724 {offsets = [0, 64], sizes = [8, 32], strides = [1, 1]} : vector<8x128xf32> to vector<8x32xf32>
    %738 = math.tanh %737 : vector<8x32xf32>
    %739 = vector.extract_strided_slice %724 {offsets = [0, 96], sizes = [8, 32], strides = [1, 1]} : vector<8x128xf32> to vector<8x32xf32>
    %740 = arith.negf %739 : vector<8x32xf32>
    %741 = math.exp %740 : vector<8x32xf32>
    %cst_211 = arith.constant 1.000000e+00 : f32
    %742 = vector.broadcast %cst_211 : f32 to vector<8x32xf32>
    %743 = arith.addf %742, %741 : vector<8x32xf32>
    %744 = arith.divf %742, %743 : vector<8x32xf32>
    %745 = arith.mulf %736, %650 : vector<8x32xf32>
    %746 = arith.mulf %730, %738 : vector<8x32xf32>
    %747 = arith.addf %745, %746 : vector<8x32xf32>
    %748 = math.tanh %747 : vector<8x32xf32>
    %749 = arith.mulf %744, %748 : vector<8x32xf32>
    %cst_212 = arith.constant dense<0.000000e+00> : vector<8x128xf32>
    %750 = tpu.matmul %749, %606, %cst_212 {dimension_numbers = #tpu.dot_dimension_numbers<[1], [0], [0], [1], [0, 0, 1, 1], [], []>} : vector<8x32xf32>, vector<32x128xf32>, vector<8x128xf32> -> vector<8x128xf32>
    %cst_213 = arith.constant dense<0.000000e+00> : vector<8x128xf32>
    %751 = tpu.matmul %682, %607, %cst_213 {dimension_numbers = #tpu.dot_dimension_numbers<[1], [0], [0], [1], [0, 0, 1, 1], [], []>} : vector<8x32xf32>, vector<32x128xf32>, vector<8x128xf32> -> vector<8x128xf32>
    %752 = arith.addf %750, %751 : vector<8x128xf32>
    %753 = vector.broadcast %608 : vector<1x128xf32> to vector<8x128xf32>
    %754 = arith.addf %752, %753 : vector<8x128xf32>
    %755 = vector.extract_strided_slice %754 {offsets = [0, 0], sizes = [8, 32], strides = [1, 1]} : vector<8x128xf32> to vector<8x32xf32>
    %756 = arith.negf %755 : vector<8x32xf32>
    %757 = math.exp %756 : vector<8x32xf32>
    %cst_214 = arith.constant 1.000000e+00 : f32
    %758 = vector.broadcast %cst_214 : f32 to vector<8x32xf32>
    %759 = arith.addf %758, %757 : vector<8x32xf32>
    %760 = arith.divf %758, %759 : vector<8x32xf32>
    %761 = vector.extract_strided_slice %754 {offsets = [0, 32], sizes = [8, 32], strides = [1, 1]} : vector<8x128xf32> to vector<8x32xf32>
    %762 = arith.negf %761 : vector<8x32xf32>
    %763 = math.exp %762 : vector<8x32xf32>
    %cst_215 = arith.constant 1.000000e+00 : f32
    %764 = vector.broadcast %cst_215 : f32 to vector<8x32xf32>
    %765 = arith.addf %764, %763 : vector<8x32xf32>
    %766 = arith.divf %764, %765 : vector<8x32xf32>
    %767 = vector.extract_strided_slice %754 {offsets = [0, 64], sizes = [8, 32], strides = [1, 1]} : vector<8x128xf32> to vector<8x32xf32>
    %768 = math.tanh %767 : vector<8x32xf32>
    %769 = vector.extract_strided_slice %754 {offsets = [0, 96], sizes = [8, 32], strides = [1, 1]} : vector<8x128xf32> to vector<8x32xf32>
    %770 = arith.negf %769 : vector<8x32xf32>
    %771 = math.exp %770 : vector<8x32xf32>
    %cst_216 = arith.constant 1.000000e+00 : f32
    %772 = vector.broadcast %cst_216 : f32 to vector<8x32xf32>
    %773 = arith.addf %772, %771 : vector<8x32xf32>
    %774 = arith.divf %772, %773 : vector<8x32xf32>
    %775 = arith.mulf %766, %680 : vector<8x32xf32>
    %776 = arith.mulf %760, %768 : vector<8x32xf32>
    %777 = arith.addf %775, %776 : vector<8x32xf32>
    %778 = math.tanh %777 : vector<8x32xf32>
    %779 = arith.mulf %774, %778 : vector<8x32xf32>
    %cst_217 = arith.constant dense<0.000000e+00> : vector<8x128xf32>
    %780 = tpu.matmul %779, %609, %cst_217 {dimension_numbers = #tpu.dot_dimension_numbers<[1], [0], [0], [1], [0, 0, 1, 1], [], []>} : vector<8x32xf32>, vector<32x128xf32>, vector<8x128xf32> -> vector<8x128xf32>
    %781 = vector.broadcast %610 : vector<1x128xf32> to vector<8x128xf32>
    %782 = arith.addf %780, %781 : vector<8x128xf32>
    %783 = arith.index_cast %c2_i32_206 : i32 to index
    %c0_218 = arith.constant 0 : index
    %c0_219 = arith.constant 0 : index
    %784 = vector.load %arg18[%783, %c0_218, %c0_219] : memref<7x8x128xf32, #tpu.memory_space<vmem>>, vector<1x8x128xf32>
    %785 = vector.shape_cast %784 : vector<1x8x128xf32> to vector<8x128xf32>
    %786 = vector.shape_cast %782 : vector<8x128xf32> to vector<1x8x128xf32>
    tpu.vector_store %arg18[%783, %c0_218, %c0_219], %786 {strides = array<i32>} : memref<7x8x128xf32, #tpu.memory_space<vmem>>, vector<1x8x128xf32>,
    %cst_220 = arith.constant dense<0xFF800000> : vector<8xf32>
    %787 = vector.multi_reduction <maximumf>, %782, %cst_220 [1] : vector<8x128xf32> to vector<8xf32>
    %788 = vector.shape_cast %787 : vector<8xf32> to vector<8x1xf32>
    %789 = vector.broadcast %788 : vector<8x1xf32> to vector<8x128xf32>
    %790 = arith.cmpf oge, %782, %789 : vector<8x128xf32>
    %cst_221 = arith.constant 1.280000e+02 : f32
    %791 = vector.broadcast %cst_221 : f32 to vector<8x128xf32>
    %792 = arith.select %790, %612, %791 : vector<8x128xi1>, vector<8x128xf32>
    %cst_222 = arith.constant dense<0x7F800000> : vector<8xf32>
    %793 = vector.multi_reduction <minimumf>, %792, %cst_222 [1] : vector<8x128xf32> to vector<8xf32>
    %794 = vector.shape_cast %793 : vector<8xf32> to vector<8x1xf32>
    %795 = vector.broadcast %794 : vector<8x1xf32> to vector<8x128xf32>
    %796 = arith.cmpf oeq, %612, %795 : vector<8x128xf32>
    %797 = arith.extui %796 : vector<8x128xi1> to vector<8x128xi32>
    %798 = arith.sitofp %797 : vector<8x128xi32> to vector<8x128xf32>
    %799 = arith.index_cast %c2_i32_206 : i32 to index
    %c0_223 = arith.constant 0 : index
    %c0_224 = arith.constant 0 : index
    %800 = vector.load %arg3[%799, %c0_223, %c0_224] : memref<7x8x1xi32, #tpu.memory_space<vmem>>, vector<1x8x1xi32>
    %801 = vector.shape_cast %800 : vector<1x8x1xi32> to vector<8x1xi32>
    %802 = vector.broadcast %801 : vector<8x1xi32> to vector<8x128xi32>
    %803 = arith.cmpi eq, %611, %802 : vector<8x128xi32>
    %804 = arith.extui %803 : vector<8x128xi1> to vector<8x128xi32>
    %805 = arith.sitofp %804 : vector<8x128xi32> to vector<8x128xf32>
    %806 = arith.index_cast %c2_i32_206 : i32 to index
    %807 = memref.load %arg1[%806] : memref<7xi32, #tpu.memory_space<smem>>
    %c0_i32_225 = arith.constant 0 : i32
    %808 = arith.cmpi ne, %807, %c0_i32_225 : i32
    %809 = arith.extui %808 : i1 to i32
    %810 = arith.sitofp %809 : i32 to f32
    %811 = vector.broadcast %810 : f32 to vector<8x128xf32>
    %812 = arith.mulf %811, %805 : vector<8x128xf32>
    %cst_226 = arith.constant 1.000000e+00 : f32
    %813 = arith.subf %cst_226, %810 : f32
    %814 = vector.broadcast %813 : f32 to vector<8x128xf32>
    %815 = arith.mulf %814, %798 : vector<8x128xf32>
    %816 = arith.addf %812, %815 : vector<8x128xf32>
    %c3_i32_227 = arith.constant 3 : i32
    %cst_228 = arith.constant dense<0.000000e+00> : vector<8x128xf32>
    %817 = tpu.matmul %816, %603, %cst_228 {dimension_numbers = #tpu.dot_dimension_numbers<[1], [0], [0], [1], [0, 0, 1, 1], [], []>} : vector<8x128xf32>, vector<128x128xf32>, vector<8x128xf32> -> vector<8x128xf32>
    %cst_229 = arith.constant dense<0.000000e+00> : vector<8x128xf32>
    %818 = tpu.matmul %749, %604, %cst_229 {dimension_numbers = #tpu.dot_dimension_numbers<[1], [0], [0], [1], [0, 0, 1, 1], [], []>} : vector<8x32xf32>, vector<32x128xf32>, vector<8x128xf32> -> vector<8x128xf32>
    %819 = arith.addf %817, %818 : vector<8x128xf32>
    %820 = vector.broadcast %605 : vector<1x128xf32> to vector<8x128xf32>
    %821 = arith.addf %819, %820 : vector<8x128xf32>
    %822 = vector.extract_strided_slice %821 {offsets = [0, 0], sizes = [8, 32], strides = [1, 1]} : vector<8x128xf32> to vector<8x32xf32>
    %823 = arith.negf %822 : vector<8x32xf32>
    %824 = math.exp %823 : vector<8x32xf32>
    %cst_230 = arith.constant 1.000000e+00 : f32
    %825 = vector.broadcast %cst_230 : f32 to vector<8x32xf32>
    %826 = arith.addf %825, %824 : vector<8x32xf32>
    %827 = arith.divf %825, %826 : vector<8x32xf32>
    %828 = vector.extract_strided_slice %821 {offsets = [0, 32], sizes = [8, 32], strides = [1, 1]} : vector<8x128xf32> to vector<8x32xf32>
    %829 = arith.negf %828 : vector<8x32xf32>
    %830 = math.exp %829 : vector<8x32xf32>
    %cst_231 = arith.constant 1.000000e+00 : f32
    %831 = vector.broadcast %cst_231 : f32 to vector<8x32xf32>
    %832 = arith.addf %831, %830 : vector<8x32xf32>
    %833 = arith.divf %831, %832 : vector<8x32xf32>
    %834 = vector.extract_strided_slice %821 {offsets = [0, 64], sizes = [8, 32], strides = [1, 1]} : vector<8x128xf32> to vector<8x32xf32>
    %835 = math.tanh %834 : vector<8x32xf32>
    %836 = vector.extract_strided_slice %821 {offsets = [0, 96], sizes = [8, 32], strides = [1, 1]} : vector<8x128xf32> to vector<8x32xf32>
    %837 = arith.negf %836 : vector<8x32xf32>
    %838 = math.exp %837 : vector<8x32xf32>
    %cst_232 = arith.constant 1.000000e+00 : f32
    %839 = vector.broadcast %cst_232 : f32 to vector<8x32xf32>
    %840 = arith.addf %839, %838 : vector<8x32xf32>
    %841 = arith.divf %839, %840 : vector<8x32xf32>
    %842 = arith.mulf %833, %747 : vector<8x32xf32>
    %843 = arith.mulf %827, %835 : vector<8x32xf32>
    %844 = arith.addf %842, %843 : vector<8x32xf32>
    %845 = math.tanh %844 : vector<8x32xf32>
    %846 = arith.mulf %841, %845 : vector<8x32xf32>
    %cst_233 = arith.constant dense<0.000000e+00> : vector<8x128xf32>
    %847 = tpu.matmul %846, %606, %cst_233 {dimension_numbers = #tpu.dot_dimension_numbers<[1], [0], [0], [1], [0, 0, 1, 1], [], []>} : vector<8x32xf32>, vector<32x128xf32>, vector<8x128xf32> -> vector<8x128xf32>
    %cst_234 = arith.constant dense<0.000000e+00> : vector<8x128xf32>
    %848 = tpu.matmul %779, %607, %cst_234 {dimension_numbers = #tpu.dot_dimension_numbers<[1], [0], [0], [1], [0, 0, 1, 1], [], []>} : vector<8x32xf32>, vector<32x128xf32>, vector<8x128xf32> -> vector<8x128xf32>
    %849 = arith.addf %847, %848 : vector<8x128xf32>
    %850 = vector.broadcast %608 : vector<1x128xf32> to vector<8x128xf32>
    %851 = arith.addf %849, %850 : vector<8x128xf32>
    %852 = vector.extract_strided_slice %851 {offsets = [0, 0], sizes = [8, 32], strides = [1, 1]} : vector<8x128xf32> to vector<8x32xf32>
    %853 = arith.negf %852 : vector<8x32xf32>
    %854 = math.exp %853 : vector<8x32xf32>
    %cst_235 = arith.constant 1.000000e+00 : f32
    %855 = vector.broadcast %cst_235 : f32 to vector<8x32xf32>
    %856 = arith.addf %855, %854 : vector<8x32xf32>
    %857 = arith.divf %855, %856 : vector<8x32xf32>
    %858 = vector.extract_strided_slice %851 {offsets = [0, 32], sizes = [8, 32], strides = [1, 1]} : vector<8x128xf32> to vector<8x32xf32>
    %859 = arith.negf %858 : vector<8x32xf32>
    %860 = math.exp %859 : vector<8x32xf32>
    %cst_236 = arith.constant 1.000000e+00 : f32
    %861 = vector.broadcast %cst_236 : f32 to vector<8x32xf32>
    %862 = arith.addf %861, %860 : vector<8x32xf32>
    %863 = arith.divf %861, %862 : vector<8x32xf32>
    %864 = vector.extract_strided_slice %851 {offsets = [0, 64], sizes = [8, 32], strides = [1, 1]} : vector<8x128xf32> to vector<8x32xf32>
    %865 = math.tanh %864 : vector<8x32xf32>
    %866 = vector.extract_strided_slice %851 {offsets = [0, 96], sizes = [8, 32], strides = [1, 1]} : vector<8x128xf32> to vector<8x32xf32>
    %867 = arith.negf %866 : vector<8x32xf32>
    %868 = math.exp %867 : vector<8x32xf32>
    %cst_237 = arith.constant 1.000000e+00 : f32
    %869 = vector.broadcast %cst_237 : f32 to vector<8x32xf32>
    %870 = arith.addf %869, %868 : vector<8x32xf32>
    %871 = arith.divf %869, %870 : vector<8x32xf32>
    %872 = arith.mulf %863, %777 : vector<8x32xf32>
    %873 = arith.mulf %857, %865 : vector<8x32xf32>
    %874 = arith.addf %872, %873 : vector<8x32xf32>
    %875 = math.tanh %874 : vector<8x32xf32>
    %876 = arith.mulf %871, %875 : vector<8x32xf32>
    %cst_238 = arith.constant dense<0.000000e+00> : vector<8x128xf32>
    %877 = tpu.matmul %876, %609, %cst_238 {dimension_numbers = #tpu.dot_dimension_numbers<[1], [0], [0], [1], [0, 0, 1, 1], [], []>} : vector<8x32xf32>, vector<32x128xf32>, vector<8x128xf32> -> vector<8x128xf32>
    %878 = vector.broadcast %610 : vector<1x128xf32> to vector<8x128xf32>
    %879 = arith.addf %877, %878 : vector<8x128xf32>
    %880 = arith.index_cast %c3_i32_227 : i32 to index
    %c0_239 = arith.constant 0 : index
    %c0_240 = arith.constant 0 : index
    %881 = vector.load %arg18[%880, %c0_239, %c0_240] : memref<7x8x128xf32, #tpu.memory_space<vmem>>, vector<1x8x128xf32>
    %882 = vector.shape_cast %881 : vector<1x8x128xf32> to vector<8x128xf32>
    %883 = vector.shape_cast %879 : vector<8x128xf32> to vector<1x8x128xf32>
    tpu.vector_store %arg18[%880, %c0_239, %c0_240], %883 {strides = array<i32>} : memref<7x8x128xf32, #tpu.memory_space<vmem>>, vector<1x8x128xf32>,
    %cst_241 = arith.constant dense<0xFF800000> : vector<8xf32>
    %884 = vector.multi_reduction <maximumf>, %879, %cst_241 [1] : vector<8x128xf32> to vector<8xf32>
    %885 = vector.shape_cast %884 : vector<8xf32> to vector<8x1xf32>
    %886 = vector.broadcast %885 : vector<8x1xf32> to vector<8x128xf32>
    %887 = arith.cmpf oge, %879, %886 : vector<8x128xf32>
    %cst_242 = arith.constant 1.280000e+02 : f32
    %888 = vector.broadcast %cst_242 : f32 to vector<8x128xf32>
    %889 = arith.select %887, %612, %888 : vector<8x128xi1>, vector<8x128xf32>
    %cst_243 = arith.constant dense<0x7F800000> : vector<8xf32>
    %890 = vector.multi_reduction <minimumf>, %889, %cst_243 [1] : vector<8x128xf32> to vector<8xf32>
    %891 = vector.shape_cast %890 : vector<8xf32> to vector<8x1xf32>
    %892 = vector.broadcast %891 : vector<8x1xf32> to vector<8x128xf32>
    %893 = arith.cmpf oeq, %612, %892 : vector<8x128xf32>
    %894 = arith.extui %893 : vector<8x128xi1> to vector<8x128xi32>
    %895 = arith.sitofp %894 : vector<8x128xi32> to vector<8x128xf32>
    %896 = arith.index_cast %c3_i32_227 : i32 to index
    %c0_244 = arith.constant 0 : index
    %c0_245 = arith.constant 0 : index
    %897 = vector.load %arg3[%896, %c0_244, %c0_245] : memref<7x8x1xi32, #tpu.memory_space<vmem>>, vector<1x8x1xi32>
    %898 = vector.shape_cast %897 : vector<1x8x1xi32> to vector<8x1xi32>
    %899 = vector.broadcast %898 : vector<8x1xi32> to vector<8x128xi32>
    %900 = arith.cmpi eq, %611, %899 : vector<8x128xi32>
    %901 = arith.extui %900 : vector<8x128xi1> to vector<8x128xi32>
    %902 = arith.sitofp %901 : vector<8x128xi32> to vector<8x128xf32>
    %903 = arith.index_cast %c3_i32_227 : i32 to index
    %904 = memref.load %arg1[%903] : memref<7xi32, #tpu.memory_space<smem>>
    %c0_i32_246 = arith.constant 0 : i32
    %905 = arith.cmpi ne, %904, %c0_i32_246 : i32
    %906 = arith.extui %905 : i1 to i32
    %907 = arith.sitofp %906 : i32 to f32
    %908 = vector.broadcast %907 : f32 to vector<8x128xf32>
    %909 = arith.mulf %908, %902 : vector<8x128xf32>
    %cst_247 = arith.constant 1.000000e+00 : f32
    %910 = arith.subf %cst_247, %907 : f32
    %911 = vector.broadcast %910 : f32 to vector<8x128xf32>
    %912 = arith.mulf %911, %895 : vector<8x128xf32>
    %913 = arith.addf %909, %912 : vector<8x128xf32>
    %c4_i32_248 = arith.constant 4 : i32
    %cst_249 = arith.constant dense<0.000000e+00> : vector<8x128xf32>
    %914 = tpu.matmul %913, %603, %cst_249 {dimension_numbers = #tpu.dot_dimension_numbers<[1], [0], [0], [1], [0, 0, 1, 1], [], []>} : vector<8x128xf32>, vector<128x128xf32>, vector<8x128xf32> -> vector<8x128xf32>
    %cst_250 = arith.constant dense<0.000000e+00> : vector<8x128xf32>
    %915 = tpu.matmul %846, %604, %cst_250 {dimension_numbers = #tpu.dot_dimension_numbers<[1], [0], [0], [1], [0, 0, 1, 1], [], []>} : vector<8x32xf32>, vector<32x128xf32>, vector<8x128xf32> -> vector<8x128xf32>
    %916 = arith.addf %914, %915 : vector<8x128xf32>
    %917 = vector.broadcast %605 : vector<1x128xf32> to vector<8x128xf32>
    %918 = arith.addf %916, %917 : vector<8x128xf32>
    %919 = vector.extract_strided_slice %918 {offsets = [0, 0], sizes = [8, 32], strides = [1, 1]} : vector<8x128xf32> to vector<8x32xf32>
    %920 = arith.negf %919 : vector<8x32xf32>
    %921 = math.exp %920 : vector<8x32xf32>
    %cst_251 = arith.constant 1.000000e+00 : f32
    %922 = vector.broadcast %cst_251 : f32 to vector<8x32xf32>
    %923 = arith.addf %922, %921 : vector<8x32xf32>
    %924 = arith.divf %922, %923 : vector<8x32xf32>
    %925 = vector.extract_strided_slice %918 {offsets = [0, 32], sizes = [8, 32], strides = [1, 1]} : vector<8x128xf32> to vector<8x32xf32>
    %926 = arith.negf %925 : vector<8x32xf32>
    %927 = math.exp %926 : vector<8x32xf32>
    %cst_252 = arith.constant 1.000000e+00 : f32
    %928 = vector.broadcast %cst_252 : f32 to vector<8x32xf32>
    %929 = arith.addf %928, %927 : vector<8x32xf32>
    %930 = arith.divf %928, %929 : vector<8x32xf32>
    %931 = vector.extract_strided_slice %918 {offsets = [0, 64], sizes = [8, 32], strides = [1, 1]} : vector<8x128xf32> to vector<8x32xf32>
    %932 = math.tanh %931 : vector<8x32xf32>
    %933 = vector.extract_strided_slice %918 {offsets = [0, 96], sizes = [8, 32], strides = [1, 1]} : vector<8x128xf32> to vector<8x32xf32>
    %934 = arith.negf %933 : vector<8x32xf32>
    %935 = math.exp %934 : vector<8x32xf32>
    %cst_253 = arith.constant 1.000000e+00 : f32
    %936 = vector.broadcast %cst_253 : f32 to vector<8x32xf32>
    %937 = arith.addf %936, %935 : vector<8x32xf32>
    %938 = arith.divf %936, %937 : vector<8x32xf32>
    %939 = arith.mulf %930, %844 : vector<8x32xf32>
    %940 = arith.mulf %924, %932 : vector<8x32xf32>
    %941 = arith.addf %939, %940 : vector<8x32xf32>
    %942 = math.tanh %941 : vector<8x32xf32>
    %943 = arith.mulf %938, %942 : vector<8x32xf32>
    %cst_254 = arith.constant dense<0.000000e+00> : vector<8x128xf32>
    %944 = tpu.matmul %943, %606, %cst_254 {dimension_numbers = #tpu.dot_dimension_numbers<[1], [0], [0], [1], [0, 0, 1, 1], [], []>} : vector<8x32xf32>, vector<32x128xf32>, vector<8x128xf32> -> vector<8x128xf32>
    %cst_255 = arith.constant dense<0.000000e+00> : vector<8x128xf32>
    %945 = tpu.matmul %876, %607, %cst_255 {dimension_numbers = #tpu.dot_dimension_numbers<[1], [0], [0], [1], [0, 0, 1, 1], [], []>} : vector<8x32xf32>, vector<32x128xf32>, vector<8x128xf32> -> vector<8x128xf32>
    %946 = arith.addf %944, %945 : vector<8x128xf32>
    %947 = vector.broadcast %608 : vector<1x128xf32> to vector<8x128xf32>
    %948 = arith.addf %946, %947 : vector<8x128xf32>
    %949 = vector.extract_strided_slice %948 {offsets = [0, 0], sizes = [8, 32], strides = [1, 1]} : vector<8x128xf32> to vector<8x32xf32>
    %950 = arith.negf %949 : vector<8x32xf32>
    %951 = math.exp %950 : vector<8x32xf32>
    %cst_256 = arith.constant 1.000000e+00 : f32
    %952 = vector.broadcast %cst_256 : f32 to vector<8x32xf32>
    %953 = arith.addf %952, %951 : vector<8x32xf32>
    %954 = arith.divf %952, %953 : vector<8x32xf32>
    %955 = vector.extract_strided_slice %948 {offsets = [0, 32], sizes = [8, 32], strides = [1, 1]} : vector<8x128xf32> to vector<8x32xf32>
    %956 = arith.negf %955 : vector<8x32xf32>
    %957 = math.exp %956 : vector<8x32xf32>
    %cst_257 = arith.constant 1.000000e+00 : f32
    %958 = vector.broadcast %cst_257 : f32 to vector<8x32xf32>
    %959 = arith.addf %958, %957 : vector<8x32xf32>
    %960 = arith.divf %958, %959 : vector<8x32xf32>
    %961 = vector.extract_strided_slice %948 {offsets = [0, 64], sizes = [8, 32], strides = [1, 1]} : vector<8x128xf32> to vector<8x32xf32>
    %962 = math.tanh %961 : vector<8x32xf32>
    %963 = vector.extract_strided_slice %948 {offsets = [0, 96], sizes = [8, 32], strides = [1, 1]} : vector<8x128xf32> to vector<8x32xf32>
    %964 = arith.negf %963 : vector<8x32xf32>
    %965 = math.exp %964 : vector<8x32xf32>
    %cst_258 = arith.constant 1.000000e+00 : f32
    %966 = vector.broadcast %cst_258 : f32 to vector<8x32xf32>
    %967 = arith.addf %966, %965 : vector<8x32xf32>
    %968 = arith.divf %966, %967 : vector<8x32xf32>
    %969 = arith.mulf %960, %874 : vector<8x32xf32>
    %970 = arith.mulf %954, %962 : vector<8x32xf32>
    %971 = arith.addf %969, %970 : vector<8x32xf32>
    %972 = math.tanh %971 : vector<8x32xf32>
    %973 = arith.mulf %968, %972 : vector<8x32xf32>
    %cst_259 = arith.constant dense<0.000000e+00> : vector<8x128xf32>
    %974 = tpu.matmul %973, %609, %cst_259 {dimension_numbers = #tpu.dot_dimension_numbers<[1], [0], [0], [1], [0, 0, 1, 1], [], []>} : vector<8x32xf32>, vector<32x128xf32>, vector<8x128xf32> -> vector<8x128xf32>
    %975 = vector.broadcast %610 : vector<1x128xf32> to vector<8x128xf32>
    %976 = arith.addf %974, %975 : vector<8x128xf32>
    %977 = arith.index_cast %c4_i32_248 : i32 to index
    %c0_260 = arith.constant 0 : index
    %c0_261 = arith.constant 0 : index
    %978 = vector.load %arg18[%977, %c0_260, %c0_261] : memref<7x8x128xf32, #tpu.memory_space<vmem>>, vector<1x8x128xf32>
    %979 = vector.shape_cast %978 : vector<1x8x128xf32> to vector<8x128xf32>
    %980 = vector.shape_cast %976 : vector<8x128xf32> to vector<1x8x128xf32>
    tpu.vector_store %arg18[%977, %c0_260, %c0_261], %980 {strides = array<i32>} : memref<7x8x128xf32, #tpu.memory_space<vmem>>, vector<1x8x128xf32>,
    %cst_262 = arith.constant dense<0xFF800000> : vector<8xf32>
    %981 = vector.multi_reduction <maximumf>, %976, %cst_262 [1] : vector<8x128xf32> to vector<8xf32>
    %982 = vector.shape_cast %981 : vector<8xf32> to vector<8x1xf32>
    %983 = vector.broadcast %982 : vector<8x1xf32> to vector<8x128xf32>
    %984 = arith.cmpf oge, %976, %983 : vector<8x128xf32>
    %cst_263 = arith.constant 1.280000e+02 : f32
    %985 = vector.broadcast %cst_263 : f32 to vector<8x128xf32>
    %986 = arith.select %984, %612, %985 : vector<8x128xi1>, vector<8x128xf32>
    %cst_264 = arith.constant dense<0x7F800000> : vector<8xf32>
    %987 = vector.multi_reduction <minimumf>, %986, %cst_264 [1] : vector<8x128xf32> to vector<8xf32>
    %988 = vector.shape_cast %987 : vector<8xf32> to vector<8x1xf32>
    %989 = vector.broadcast %988 : vector<8x1xf32> to vector<8x128xf32>
    %990 = arith.cmpf oeq, %612, %989 : vector<8x128xf32>
    %991 = arith.extui %990 : vector<8x128xi1> to vector<8x128xi32>
    %992 = arith.sitofp %991 : vector<8x128xi32> to vector<8x128xf32>
    %993 = arith.index_cast %c4_i32_248 : i32 to index
    %c0_265 = arith.constant 0 : index
    %c0_266 = arith.constant 0 : index
    %994 = vector.load %arg3[%993, %c0_265, %c0_266] : memref<7x8x1xi32, #tpu.memory_space<vmem>>, vector<1x8x1xi32>
    %995 = vector.shape_cast %994 : vector<1x8x1xi32> to vector<8x1xi32>
    %996 = vector.broadcast %995 : vector<8x1xi32> to vector<8x128xi32>
    %997 = arith.cmpi eq, %611, %996 : vector<8x128xi32>
    %998 = arith.extui %997 : vector<8x128xi1> to vector<8x128xi32>
    %999 = arith.sitofp %998 : vector<8x128xi32> to vector<8x128xf32>
    %1000 = arith.index_cast %c4_i32_248 : i32 to index
    %1001 = memref.load %arg1[%1000] : memref<7xi32, #tpu.memory_space<smem>>
    %c0_i32_267 = arith.constant 0 : i32
    %1002 = arith.cmpi ne, %1001, %c0_i32_267 : i32
    %1003 = arith.extui %1002 : i1 to i32
    %1004 = arith.sitofp %1003 : i32 to f32
    %1005 = vector.broadcast %1004 : f32 to vector<8x128xf32>
    %1006 = arith.mulf %1005, %999 : vector<8x128xf32>
    %cst_268 = arith.constant 1.000000e+00 : f32
    %1007 = arith.subf %cst_268, %1004 : f32
    %1008 = vector.broadcast %1007 : f32 to vector<8x128xf32>
    %1009 = arith.mulf %1008, %992 : vector<8x128xf32>
    %1010 = arith.addf %1006, %1009 : vector<8x128xf32>
    %c5_i32_269 = arith.constant 5 : i32
    %cst_270 = arith.constant dense<0.000000e+00> : vector<8x128xf32>
    %1011 = tpu.matmul %1010, %603, %cst_270 {dimension_numbers = #tpu.dot_dimension_numbers<[1], [0], [0], [1], [0, 0, 1, 1], [], []>} : vector<8x128xf32>, vector<128x128xf32>, vector<8x128xf32> -> vector<8x128xf32>
    %cst_271 = arith.constant dense<0.000000e+00> : vector<8x128xf32>
    %1012 = tpu.matmul %943, %604, %cst_271 {dimension_numbers = #tpu.dot_dimension_numbers<[1], [0], [0], [1], [0, 0, 1, 1], [], []>} : vector<8x32xf32>, vector<32x128xf32>, vector<8x128xf32> -> vector<8x128xf32>
    %1013 = arith.addf %1011, %1012 : vector<8x128xf32>
    %1014 = vector.broadcast %605 : vector<1x128xf32> to vector<8x128xf32>
    %1015 = arith.addf %1013, %1014 : vector<8x128xf32>
    %1016 = vector.extract_strided_slice %1015 {offsets = [0, 0], sizes = [8, 32], strides = [1, 1]} : vector<8x128xf32> to vector<8x32xf32>
    %1017 = arith.negf %1016 : vector<8x32xf32>
    %1018 = math.exp %1017 : vector<8x32xf32>
    %cst_272 = arith.constant 1.000000e+00 : f32
    %1019 = vector.broadcast %cst_272 : f32 to vector<8x32xf32>
    %1020 = arith.addf %1019, %1018 : vector<8x32xf32>
    %1021 = arith.divf %1019, %1020 : vector<8x32xf32>
    %1022 = vector.extract_strided_slice %1015 {offsets = [0, 32], sizes = [8, 32], strides = [1, 1]} : vector<8x128xf32> to vector<8x32xf32>
    %1023 = arith.negf %1022 : vector<8x32xf32>
    %1024 = math.exp %1023 : vector<8x32xf32>
    %cst_273 = arith.constant 1.000000e+00 : f32
    %1025 = vector.broadcast %cst_273 : f32 to vector<8x32xf32>
    %1026 = arith.addf %1025, %1024 : vector<8x32xf32>
    %1027 = arith.divf %1025, %1026 : vector<8x32xf32>
    %1028 = vector.extract_strided_slice %1015 {offsets = [0, 64], sizes = [8, 32], strides = [1, 1]} : vector<8x128xf32> to vector<8x32xf32>
    %1029 = math.tanh %1028 : vector<8x32xf32>
    %1030 = vector.extract_strided_slice %1015 {offsets = [0, 96], sizes = [8, 32], strides = [1, 1]} : vector<8x128xf32> to vector<8x32xf32>
    %1031 = arith.negf %1030 : vector<8x32xf32>
    %1032 = math.exp %1031 : vector<8x32xf32>
    %cst_274 = arith.constant 1.000000e+00 : f32
    %1033 = vector.broadcast %cst_274 : f32 to vector<8x32xf32>
    %1034 = arith.addf %1033, %1032 : vector<8x32xf32>
    %1035 = arith.divf %1033, %1034 : vector<8x32xf32>
    %1036 = arith.mulf %1027, %941 : vector<8x32xf32>
    %1037 = arith.mulf %1021, %1029 : vector<8x32xf32>
    %1038 = arith.addf %1036, %1037 : vector<8x32xf32>
    %1039 = math.tanh %1038 : vector<8x32xf32>
    %1040 = arith.mulf %1035, %1039 : vector<8x32xf32>
    %cst_275 = arith.constant dense<0.000000e+00> : vector<8x128xf32>
    %1041 = tpu.matmul %1040, %606, %cst_275 {dimension_numbers = #tpu.dot_dimension_numbers<[1], [0], [0], [1], [0, 0, 1, 1], [], []>} : vector<8x32xf32>, vector<32x128xf32>, vector<8x128xf32> -> vector<8x128xf32>
    %cst_276 = arith.constant dense<0.000000e+00> : vector<8x128xf32>
    %1042 = tpu.matmul %973, %607, %cst_276 {dimension_numbers = #tpu.dot_dimension_numbers<[1], [0], [0], [1], [0, 0, 1, 1], [], []>} : vector<8x32xf32>, vector<32x128xf32>, vector<8x128xf32> -> vector<8x128xf32>
    %1043 = arith.addf %1041, %1042 : vector<8x128xf32>
    %1044 = vector.broadcast %608 : vector<1x128xf32> to vector<8x128xf32>
    %1045 = arith.addf %1043, %1044 : vector<8x128xf32>
    %1046 = vector.extract_strided_slice %1045 {offsets = [0, 0], sizes = [8, 32], strides = [1, 1]} : vector<8x128xf32> to vector<8x32xf32>
    %1047 = arith.negf %1046 : vector<8x32xf32>
    %1048 = math.exp %1047 : vector<8x32xf32>
    %cst_277 = arith.constant 1.000000e+00 : f32
    %1049 = vector.broadcast %cst_277 : f32 to vector<8x32xf32>
    %1050 = arith.addf %1049, %1048 : vector<8x32xf32>
    %1051 = arith.divf %1049, %1050 : vector<8x32xf32>
    %1052 = vector.extract_strided_slice %1045 {offsets = [0, 32], sizes = [8, 32], strides = [1, 1]} : vector<8x128xf32> to vector<8x32xf32>
    %1053 = arith.negf %1052 : vector<8x32xf32>
    %1054 = math.exp %1053 : vector<8x32xf32>
    %cst_278 = arith.constant 1.000000e+00 : f32
    %1055 = vector.broadcast %cst_278 : f32 to vector<8x32xf32>
    %1056 = arith.addf %1055, %1054 : vector<8x32xf32>
    %1057 = arith.divf %1055, %1056 : vector<8x32xf32>
    %1058 = vector.extract_strided_slice %1045 {offsets = [0, 64], sizes = [8, 32], strides = [1, 1]} : vector<8x128xf32> to vector<8x32xf32>
    %1059 = math.tanh %1058 : vector<8x32xf32>
    %1060 = vector.extract_strided_slice %1045 {offsets = [0, 96], sizes = [8, 32], strides = [1, 1]} : vector<8x128xf32> to vector<8x32xf32>
    %1061 = arith.negf %1060 : vector<8x32xf32>
    %1062 = math.exp %1061 : vector<8x32xf32>
    %cst_279 = arith.constant 1.000000e+00 : f32
    %1063 = vector.broadcast %cst_279 : f32 to vector<8x32xf32>
    %1064 = arith.addf %1063, %1062 : vector<8x32xf32>
    %1065 = arith.divf %1063, %1064 : vector<8x32xf32>
    %1066 = arith.mulf %1057, %971 : vector<8x32xf32>
    %1067 = arith.mulf %1051, %1059 : vector<8x32xf32>
    %1068 = arith.addf %1066, %1067 : vector<8x32xf32>
    %1069 = math.tanh %1068 : vector<8x32xf32>
    %1070 = arith.mulf %1065, %1069 : vector<8x32xf32>
    %cst_280 = arith.constant dense<0.000000e+00> : vector<8x128xf32>
    %1071 = tpu.matmul %1070, %609, %cst_280 {dimension_numbers = #tpu.dot_dimension_numbers<[1], [0], [0], [1], [0, 0, 1, 1], [], []>} : vector<8x32xf32>, vector<32x128xf32>, vector<8x128xf32> -> vector<8x128xf32>
    %1072 = vector.broadcast %610 : vector<1x128xf32> to vector<8x128xf32>
    %1073 = arith.addf %1071, %1072 : vector<8x128xf32>
    %1074 = arith.index_cast %c5_i32_269 : i32 to index
    %c0_281 = arith.constant 0 : index
    %c0_282 = arith.constant 0 : index
    %1075 = vector.load %arg18[%1074, %c0_281, %c0_282] : memref<7x8x128xf32, #tpu.memory_space<vmem>>, vector<1x8x128xf32>
    %1076 = vector.shape_cast %1075 : vector<1x8x128xf32> to vector<8x128xf32>
    %1077 = vector.shape_cast %1073 : vector<8x128xf32> to vector<1x8x128xf32>
    tpu.vector_store %arg18[%1074, %c0_281, %c0_282], %1077 {strides = array<i32>} : memref<7x8x128xf32, #tpu.memory_space<vmem>>, vector<1x8x128xf32>,
    %cst_283 = arith.constant dense<0xFF800000> : vector<8xf32>
    %1078 = vector.multi_reduction <maximumf>, %1073, %cst_283 [1] : vector<8x128xf32> to vector<8xf32>
    %1079 = vector.shape_cast %1078 : vector<8xf32> to vector<8x1xf32>
    %1080 = vector.broadcast %1079 : vector<8x1xf32> to vector<8x128xf32>
    %1081 = arith.cmpf oge, %1073, %1080 : vector<8x128xf32>
    %cst_284 = arith.constant 1.280000e+02 : f32
    %1082 = vector.broadcast %cst_284 : f32 to vector<8x128xf32>
    %1083 = arith.select %1081, %612, %1082 : vector<8x128xi1>, vector<8x128xf32>
    %cst_285 = arith.constant dense<0x7F800000> : vector<8xf32>
    %1084 = vector.multi_reduction <minimumf>, %1083, %cst_285 [1] : vector<8x128xf32> to vector<8xf32>
    %1085 = vector.shape_cast %1084 : vector<8xf32> to vector<8x1xf32>
    %1086 = vector.broadcast %1085 : vector<8x1xf32> to vector<8x128xf32>
    %1087 = arith.cmpf oeq, %612, %1086 : vector<8x128xf32>
    %1088 = arith.extui %1087 : vector<8x128xi1> to vector<8x128xi32>
    %1089 = arith.sitofp %1088 : vector<8x128xi32> to vector<8x128xf32>
    %1090 = arith.index_cast %c5_i32_269 : i32 to index
    %c0_286 = arith.constant 0 : index
    %c0_287 = arith.constant 0 : index
    %1091 = vector.load %arg3[%1090, %c0_286, %c0_287] : memref<7x8x1xi32, #tpu.memory_space<vmem>>, vector<1x8x1xi32>
    %1092 = vector.shape_cast %1091 : vector<1x8x1xi32> to vector<8x1xi32>
    %1093 = vector.broadcast %1092 : vector<8x1xi32> to vector<8x128xi32>
    %1094 = arith.cmpi eq, %611, %1093 : vector<8x128xi32>
    %1095 = arith.extui %1094 : vector<8x128xi1> to vector<8x128xi32>
    %1096 = arith.sitofp %1095 : vector<8x128xi32> to vector<8x128xf32>
    %1097 = arith.index_cast %c5_i32_269 : i32 to index
    %1098 = memref.load %arg1[%1097] : memref<7xi32, #tpu.memory_space<smem>>
    %c0_i32_288 = arith.constant 0 : i32
    %1099 = arith.cmpi ne, %1098, %c0_i32_288 : i32
    %1100 = arith.extui %1099 : i1 to i32
    %1101 = arith.sitofp %1100 : i32 to f32
    %1102 = vector.broadcast %1101 : f32 to vector<8x128xf32>
    %1103 = arith.mulf %1102, %1096 : vector<8x128xf32>
    %cst_289 = arith.constant 1.000000e+00 : f32
    %1104 = arith.subf %cst_289, %1101 : f32
    %1105 = vector.broadcast %1104 : f32 to vector<8x128xf32>
    %1106 = arith.mulf %1105, %1089 : vector<8x128xf32>
    %1107 = arith.addf %1103, %1106 : vector<8x128xf32>
    %c6_i32_290 = arith.constant 6 : i32
    %cst_291 = arith.constant dense<0.000000e+00> : vector<8x128xf32>
    %1108 = tpu.matmul %1107, %603, %cst_291 {dimension_numbers = #tpu.dot_dimension_numbers<[1], [0], [0], [1], [0, 0, 1, 1], [], []>} : vector<8x128xf32>, vector<128x128xf32>, vector<8x128xf32> -> vector<8x128xf32>
    %cst_292 = arith.constant dense<0.000000e+00> : vector<8x128xf32>
    %1109 = tpu.matmul %1040, %604, %cst_292 {dimension_numbers = #tpu.dot_dimension_numbers<[1], [0], [0], [1], [0, 0, 1, 1], [], []>} : vector<8x32xf32>, vector<32x128xf32>, vector<8x128xf32> -> vector<8x128xf32>
    %1110 = arith.addf %1108, %1109 : vector<8x128xf32>
    %1111 = vector.broadcast %605 : vector<1x128xf32> to vector<8x128xf32>
    %1112 = arith.addf %1110, %1111 : vector<8x128xf32>
    %1113 = vector.extract_strided_slice %1112 {offsets = [0, 0], sizes = [8, 32], strides = [1, 1]} : vector<8x128xf32> to vector<8x32xf32>
    %1114 = arith.negf %1113 : vector<8x32xf32>
    %1115 = math.exp %1114 : vector<8x32xf32>
    %cst_293 = arith.constant 1.000000e+00 : f32
    %1116 = vector.broadcast %cst_293 : f32 to vector<8x32xf32>
    %1117 = arith.addf %1116, %1115 : vector<8x32xf32>
    %1118 = arith.divf %1116, %1117 : vector<8x32xf32>
    %1119 = vector.extract_strided_slice %1112 {offsets = [0, 32], sizes = [8, 32], strides = [1, 1]} : vector<8x128xf32> to vector<8x32xf32>
    %1120 = arith.negf %1119 : vector<8x32xf32>
    %1121 = math.exp %1120 : vector<8x32xf32>
    %cst_294 = arith.constant 1.000000e+00 : f32
    %1122 = vector.broadcast %cst_294 : f32 to vector<8x32xf32>
    %1123 = arith.addf %1122, %1121 : vector<8x32xf32>
    %1124 = arith.divf %1122, %1123 : vector<8x32xf32>
    %1125 = vector.extract_strided_slice %1112 {offsets = [0, 64], sizes = [8, 32], strides = [1, 1]} : vector<8x128xf32> to vector<8x32xf32>
    %1126 = math.tanh %1125 : vector<8x32xf32>
    %1127 = vector.extract_strided_slice %1112 {offsets = [0, 96], sizes = [8, 32], strides = [1, 1]} : vector<8x128xf32> to vector<8x32xf32>
    %1128 = arith.negf %1127 : vector<8x32xf32>
    %1129 = math.exp %1128 : vector<8x32xf32>
    %cst_295 = arith.constant 1.000000e+00 : f32
    %1130 = vector.broadcast %cst_295 : f32 to vector<8x32xf32>
    %1131 = arith.addf %1130, %1129 : vector<8x32xf32>
    %1132 = arith.divf %1130, %1131 : vector<8x32xf32>
    %1133 = arith.mulf %1124, %1038 : vector<8x32xf32>
    %1134 = arith.mulf %1118, %1126 : vector<8x32xf32>
    %1135 = arith.addf %1133, %1134 : vector<8x32xf32>
    %1136 = math.tanh %1135 : vector<8x32xf32>
    %1137 = arith.mulf %1132, %1136 : vector<8x32xf32>
    %cst_296 = arith.constant dense<0.000000e+00> : vector<8x128xf32>
    %1138 = tpu.matmul %1137, %606, %cst_296 {dimension_numbers = #tpu.dot_dimension_numbers<[1], [0], [0], [1], [0, 0, 1, 1], [], []>} : vector<8x32xf32>, vector<32x128xf32>, vector<8x128xf32> -> vector<8x128xf32>
    %cst_297 = arith.constant dense<0.000000e+00> : vector<8x128xf32>
    %1139 = tpu.matmul %1070, %607, %cst_297 {dimension_numbers = #tpu.dot_dimension_numbers<[1], [0], [0], [1], [0, 0, 1, 1], [], []>} : vector<8x32xf32>, vector<32x128xf32>, vector<8x128xf32> -> vector<8x128xf32>
    %1140 = arith.addf %1138, %1139 : vector<8x128xf32>
    %1141 = vector.broadcast %608 : vector<1x128xf32> to vector<8x128xf32>
    %1142 = arith.addf %1140, %1141 : vector<8x128xf32>
    %1143 = vector.extract_strided_slice %1142 {offsets = [0, 0], sizes = [8, 32], strides = [1, 1]} : vector<8x128xf32> to vector<8x32xf32>
    %1144 = arith.negf %1143 : vector<8x32xf32>
    %1145 = math.exp %1144 : vector<8x32xf32>
    %cst_298 = arith.constant 1.000000e+00 : f32
    %1146 = vector.broadcast %cst_298 : f32 to vector<8x32xf32>
    %1147 = arith.addf %1146, %1145 : vector<8x32xf32>
    %1148 = arith.divf %1146, %1147 : vector<8x32xf32>
    %1149 = vector.extract_strided_slice %1142 {offsets = [0, 32], sizes = [8, 32], strides = [1, 1]} : vector<8x128xf32> to vector<8x32xf32>
    %1150 = arith.negf %1149 : vector<8x32xf32>
    %1151 = math.exp %1150 : vector<8x32xf32>
    %cst_299 = arith.constant 1.000000e+00 : f32
    %1152 = vector.broadcast %cst_299 : f32 to vector<8x32xf32>
    %1153 = arith.addf %1152, %1151 : vector<8x32xf32>
    %1154 = arith.divf %1152, %1153 : vector<8x32xf32>
    %1155 = vector.extract_strided_slice %1142 {offsets = [0, 64], sizes = [8, 32], strides = [1, 1]} : vector<8x128xf32> to vector<8x32xf32>
    %1156 = math.tanh %1155 : vector<8x32xf32>
    %1157 = vector.extract_strided_slice %1142 {offsets = [0, 96], sizes = [8, 32], strides = [1, 1]} : vector<8x128xf32> to vector<8x32xf32>
    %1158 = arith.negf %1157 : vector<8x32xf32>
    %1159 = math.exp %1158 : vector<8x32xf32>
    %cst_300 = arith.constant 1.000000e+00 : f32
    %1160 = vector.broadcast %cst_300 : f32 to vector<8x32xf32>
    %1161 = arith.addf %1160, %1159 : vector<8x32xf32>
    %1162 = arith.divf %1160, %1161 : vector<8x32xf32>
    %1163 = arith.mulf %1154, %1068 : vector<8x32xf32>
    %1164 = arith.mulf %1148, %1156 : vector<8x32xf32>
    %1165 = arith.addf %1163, %1164 : vector<8x32xf32>
    %1166 = math.tanh %1165 : vector<8x32xf32>
    %1167 = arith.mulf %1162, %1166 : vector<8x32xf32>
    %cst_301 = arith.constant dense<0.000000e+00> : vector<8x128xf32>
    %1168 = tpu.matmul %1167, %609, %cst_301 {dimension_numbers = #tpu.dot_dimension_numbers<[1], [0], [0], [1], [0, 0, 1, 1], [], []>} : vector<8x32xf32>, vector<32x128xf32>, vector<8x128xf32> -> vector<8x128xf32>
    %1169 = vector.broadcast %610 : vector<1x128xf32> to vector<8x128xf32>
    %1170 = arith.addf %1168, %1169 : vector<8x128xf32>
    %1171 = arith.index_cast %c6_i32_290 : i32 to index
    %c0_302 = arith.constant 0 : index
    %c0_303 = arith.constant 0 : index
    %1172 = vector.load %arg18[%1171, %c0_302, %c0_303] : memref<7x8x128xf32, #tpu.memory_space<vmem>>, vector<1x8x128xf32>
    %1173 = vector.shape_cast %1172 : vector<1x8x128xf32> to vector<8x128xf32>
    %1174 = vector.shape_cast %1170 : vector<8x128xf32> to vector<1x8x128xf32>
    tpu.vector_store %arg18[%1171, %c0_302, %c0_303], %1174 {strides = array<i32>} : memref<7x8x128xf32, #tpu.memory_space<vmem>>, vector<1x8x128xf32>,
    %cst_304 = arith.constant dense<0xFF800000> : vector<8xf32>
    %1175 = vector.multi_reduction <maximumf>, %1170, %cst_304 [1] : vector<8x128xf32> to vector<8xf32>
    %1176 = vector.shape_cast %1175 : vector<8xf32> to vector<8x1xf32>
    %1177 = vector.broadcast %1176 : vector<8x1xf32> to vector<8x128xf32>
    %1178 = arith.cmpf oge, %1170, %1177 : vector<8x128xf32>
    %cst_305 = arith.constant 1.280000e+02 : f32
    %1179 = vector.broadcast %cst_305 : f32 to vector<8x128xf32>
    %1180 = arith.select %1178, %612, %1179 : vector<8x128xi1>, vector<8x128xf32>
    %cst_306 = arith.constant dense<0x7F800000> : vector<8xf32>
    %1181 = vector.multi_reduction <minimumf>, %1180, %cst_306 [1] : vector<8x128xf32> to vector<8xf32>
    %1182 = vector.shape_cast %1181 : vector<8xf32> to vector<8x1xf32>
    %1183 = vector.broadcast %1182 : vector<8x1xf32> to vector<8x128xf32>
    %1184 = arith.cmpf oeq, %612, %1183 : vector<8x128xf32>
    %1185 = arith.extui %1184 : vector<8x128xi1> to vector<8x128xi32>
    %1186 = arith.sitofp %1185 : vector<8x128xi32> to vector<8x128xf32>
    %1187 = arith.index_cast %c6_i32_290 : i32 to index
    %c0_307 = arith.constant 0 : index
    %c0_308 = arith.constant 0 : index
    %1188 = vector.load %arg3[%1187, %c0_307, %c0_308] : memref<7x8x1xi32, #tpu.memory_space<vmem>>, vector<1x8x1xi32>
    %1189 = vector.shape_cast %1188 : vector<1x8x1xi32> to vector<8x1xi32>
    %1190 = vector.broadcast %1189 : vector<8x1xi32> to vector<8x128xi32>
    %1191 = arith.cmpi eq, %611, %1190 : vector<8x128xi32>
    %1192 = arith.extui %1191 : vector<8x128xi1> to vector<8x128xi32>
    %1193 = arith.sitofp %1192 : vector<8x128xi32> to vector<8x128xf32>
    %1194 = arith.index_cast %c6_i32_290 : i32 to index
    %1195 = memref.load %arg1[%1194] : memref<7xi32, #tpu.memory_space<smem>>
    %c0_i32_309 = arith.constant 0 : i32
    %1196 = arith.cmpi ne, %1195, %c0_i32_309 : i32
    %1197 = arith.extui %1196 : i1 to i32
    %1198 = arith.sitofp %1197 : i32 to f32
    %1199 = vector.broadcast %1198 : f32 to vector<8x128xf32>
    %1200 = arith.mulf %1199, %1193 : vector<8x128xf32>
    %cst_310 = arith.constant 1.000000e+00 : f32
    %1201 = arith.subf %cst_310, %1198 : f32
    %1202 = vector.broadcast %1201 : f32 to vector<8x128xf32>
    %1203 = arith.mulf %1202, %1186 : vector<8x128xf32>
    %1204 = arith.addf %1200, %1203 : vector<8x128xf32>
    %c6_i32_311 = arith.constant 6 : i32
    return
  }
  func.func @transform_0(%arg0: i32, %arg1: memref<7xi32, #tpu.memory_space<smem>>) -> (i32, i32, i32) {
    %c0_i32 = arith.constant 0 : i32
    %c0_i32_0 = arith.constant 0 : i32
    %c0_i32_1 = arith.constant 0 : i32
    return %c0_i32, %arg0, %c0_i32_0 : i32, i32, i32
  }
  func.func @transform_1(%arg0: i32, %arg1: memref<7xi32, #tpu.memory_space<smem>>) -> (i32, i32, i32) {
    %c0_i32 = arith.constant 0 : i32
    %c0_i32_0 = arith.constant 0 : i32
    %c0_i32_1 = arith.constant 0 : i32
    return %c0_i32, %arg0, %c0_i32_0 : i32, i32, i32
  }
  func.func @transform_2(%arg0: i32, %arg1: memref<7xi32, #tpu.memory_space<smem>>) -> (i32, i32) {
    %c0_i32 = arith.constant 0 : i32
    %c0_i32_0 = arith.constant 0 : i32
    %c0_i32_1 = arith.constant 0 : i32
    return %c0_i32, %c0_i32_0 : i32, i32
  }
  func.func @transform_3(%arg0: i32, %arg1: memref<7xi32, #tpu.memory_space<smem>>) -> (i32, i32) {
    %c0_i32 = arith.constant 0 : i32
    %c0_i32_0 = arith.constant 0 : i32
    %c0_i32_1 = arith.constant 0 : i32
    return %c0_i32, %c0_i32_0 : i32, i32
  }
  func.func @transform_4(%arg0: i32, %arg1: memref<7xi32, #tpu.memory_space<smem>>) -> (i32, i32) {
    %c0_i32 = arith.constant 0 : i32
    %c0_i32_0 = arith.constant 0 : i32
    %c0_i32_1 = arith.constant 0 : i32
    return %c0_i32, %c0_i32_0 : i32, i32
  }
  func.func @transform_5(%arg0: i32, %arg1: memref<7xi32, #tpu.memory_space<smem>>) -> (i32, i32) {
    %c0_i32 = arith.constant 0 : i32
    %c0_i32_0 = arith.constant 0 : i32
    %c0_i32_1 = arith.constant 0 : i32
    return %c0_i32, %c0_i32_0 : i32, i32
  }
  func.func @transform_6(%arg0: i32, %arg1: memref<7xi32, #tpu.memory_space<smem>>) -> (i32, i32) {
    %c0_i32 = arith.constant 0 : i32
    %c0_i32_0 = arith.constant 0 : i32
    %c0_i32_1 = arith.constant 0 : i32
    return %c0_i32, %c0_i32_0 : i32, i32
  }
  func.func @transform_7(%arg0: i32, %arg1: memref<7xi32, #tpu.memory_space<smem>>) -> (i32, i32) {
    %c0_i32 = arith.constant 0 : i32
    %c0_i32_0 = arith.constant 0 : i32
    %c0_i32_1 = arith.constant 0 : i32
    return %c0_i32, %c0_i32_0 : i32, i32
  }
  func.func @transform_8(%arg0: i32, %arg1: memref<7xi32, #tpu.memory_space<smem>>) -> (i32, i32) {
    %c0_i32 = arith.constant 0 : i32
    %c0_i32_0 = arith.constant 0 : i32
    %c0_i32_1 = arith.constant 0 : i32
    return %c0_i32, %c0_i32_0 : i32, i32
  }
  func.func @transform_9(%arg0: i32, %arg1: memref<7xi32, #tpu.memory_space<smem>>) -> (i32, i32) {
    %c0_i32 = arith.constant 0 : i32
    %c0_i32_0 = arith.constant 0 : i32
    %c0_i32_1 = arith.constant 0 : i32
    return %c0_i32, %c0_i32_0 : i32, i32
  }
  func.func @transform_10(%arg0: i32, %arg1: memref<7xi32, #tpu.memory_space<smem>>) -> (i32, i32) {
    %c0_i32 = arith.constant 0 : i32
    %c0_i32_0 = arith.constant 0 : i32
    %c0_i32_1 = arith.constant 0 : i32
    return %c0_i32, %c0_i32_0 : i32, i32
  }
  func.func @transform_11(%arg0: i32, %arg1: memref<7xi32, #tpu.memory_space<smem>>) -> (i32, i32) {
    %c0_i32 = arith.constant 0 : i32
    %c0_i32_0 = arith.constant 0 : i32
    %c0_i32_1 = arith.constant 0 : i32
    return %c0_i32, %c0_i32_0 : i32, i32
  }
  func.func @transform_12(%arg0: i32, %arg1: memref<7xi32, #tpu.memory_space<smem>>) -> (i32, i32) {
    %c0_i32 = arith.constant 0 : i32
    %c0_i32_0 = arith.constant 0 : i32
    %c0_i32_1 = arith.constant 0 : i32
    return %c0_i32, %c0_i32_0 : i32, i32
  }
  func.func @transform_13(%arg0: i32, %arg1: memref<7xi32, #tpu.memory_space<smem>>) -> (i32, i32) {
    %c0_i32 = arith.constant 0 : i32
    %c0_i32_0 = arith.constant 0 : i32
    %c0_i32_1 = arith.constant 0 : i32
    return %c0_i32, %c0_i32_0 : i32, i32
  }
  func.func @transform_14(%arg0: i32, %arg1: memref<7xi32, #tpu.memory_space<smem>>) -> (i32, i32) {
    %c0_i32 = arith.constant 0 : i32
    %c0_i32_0 = arith.constant 0 : i32
    %c0_i32_1 = arith.constant 0 : i32
    return %c0_i32, %c0_i32_0 : i32, i32
  }
  func.func @transform_15(%arg0: i32, %arg1: memref<7xi32, #tpu.memory_space<smem>>) -> (i32, i32) {
    %c0_i32 = arith.constant 0 : i32
    %c0_i32_0 = arith.constant 0 : i32
    %c0_i32_1 = arith.constant 0 : i32
    return %c0_i32, %c0_i32_0 : i32, i32
  }
  func.func @transform_16(%arg0: i32, %arg1: memref<7xi32, #tpu.memory_space<smem>>) -> (i32, i32, i32) {
    %c0_i32 = arith.constant 0 : i32
    %c0_i32_0 = arith.constant 0 : i32
    %c0_i32_1 = arith.constant 0 : i32
    return %c0_i32, %arg0, %c0_i32_0 : i32, i32, i32
  }
}

</mosaic_0001>

<bundles_post_ra>
// kernel: transliteration_forward.1
= control target key start
LH: loop header
LB: loop body
LE: loop exit
PB: predicated region body
PF: predicated region fallthrough
CT: control target
= control target key end

     0   :  { %s8181_s0 = inlined_call_operand.vmem [shape: s32[7], index: 0, kind: input, shape index: {}]   ;;  %s8182_s1 = inlined_call_operand.vmem [shape: s32[9,8,1], index: 1, kind: input, shape index: {}]   ;;  %s8183_s2 = inlined_call_operand.vmem [shape: s32[7,8,1], index: 2, kind: input, shape index: {}]   ;;  %s8184_s3 = inlined_call_operand.vmem [shape: f32[33,128], index: 3, kind: input, shape index: {}]   ;;  %s8185_s4 = inlined_call_operand.vmem [shape: f32[32,128], index: 4, kind: input, shape index: {}]   ;;  %s8186_s5 = inlined_call_operand.vmem [shape: f32[1,128], index: 5, kind: input, shape index: {}]   ;;  %s8187_s6 = inlined_call_operand.vmem [shape: f32[32,128], index: 6, kind: input, shape index: {}]   ;;  %s8188_s7 = inlined_call_operand.vmem [shape: f32[32,128], index: 7, kind: input, shape index: {}]   ;;  %s8189_s8 = inlined_call_operand.vmem [shape: f32[1,128], index: 8, kind: input, shape index: {}]   ;;  %s8190_s9 = inlined_call_operand.vmem [shape: f32[128,128], index: 9, kind: input, shape index: {}]   ;;  %s8191_s10 = inlined_call_operand.vmem [shape: f32[32,128], index: 10, kind: input, shape index: {}]   ;;  %s8192_s11 = inlined_call_operand.vmem [shape: f32[1,128], index: 11, kind: input, shape index: {}]   ;;  %s8193_s12 = inlined_call_operand.vmem [shape: f32[32,128], index: 12, kind: input, shape index: {}]   ;;  %s8194_s13 = inlined_call_operand.vmem [shape: f32[32,128], index: 13, kind: input, shape index: {}]   ;;  %s8195_s14 = inlined_call_operand.vmem [shape: f32[1,128], index: 14, kind: input, shape index: {}]   ;;  %s8196_s15 = inlined_call_operand.vmem [shape: f32[32,128], index: 15, kind: input, shape index: {}]   ;;  %s8197_s16 = inlined_call_operand.vmem [shape: f32[1,128], index: 16, kind: input, shape index: {}]   ;;  %s8198_s17 = inlined_call_operand.vmem [shape: f32[7,8,128], index: 17, kind: output, shape index: {}]  }
   0x1   :  { %8201 = sst [smem:[#allocation7_spill]] %s8181_s0 }
   0x2   :  { %8202 = sst [smem:[#allocation8_spill]] %s8182_s1 }
   0x3   :  { %8203 = sst [smem:[#allocation9_spill]] %s8192_s11 }
   0x4   :  { %s8204_s26 = sld [smem:[#allocation7_spill]] }
   0xa   :  { %s22_s11 = sshll.u32 %s8204_s26, 4  ;;  %s23_s11 = int_to_ptr.vmem [resolvable:$true] %s22_s11 }
   0xb   :  { %s6492_s27 = scalar_lea.vmem %s23_s11, 16  ;;  %p6497_p1 = scmp.lt.s32.totalorder %s23_s11, %s23_s11 }
   0xc   :  { %p6493_p0 = scmp.ne.s32.totalorder %s23_s11, %s6492_s27  ;;  %p6498_p2 = scmp.lt.s32.totalorder %s6492_s27, %s6492_s27 }
   0xe   :  { %p6499_p3 = por %p6498_p2, %p6497_p1 }
  0x10   :  { %p6500_p4 = pnand %p6499_p3, %p6493_p0 }
  0x12   :  { %6503 = shalt.err (!%p6500_p4)  }
  0x13   :  { %s6506_s28 = smov [#allocation5]  }
  0x14   :  { %25 = dma.vmem_to_smem %s23_s11, 16, %s6506_s28, [#allocation4] }
  0x15   :  { %6504 = dma.done.wait [#allocation4], 16 }
  0x16   :  { %6505 = vsyncadd [#allocation4], 4294967280 }
  0x17   :  { %27 = sfence }
  0x18   :  { %s8205_s30 = sld [smem:[#allocation8_spill]]  ;;  %v73_v1 = vld [vmem:[%s8184_s3 + $0x20] sm:$0x1]  ;;  %vm169_vm0 = vcmask 1040384   ;;  %v6507_v2 = vmov 0   ;;  %v6508_v3 = vmov 0.0   ;;  %v79_v12 = vlaneseq }
  0x19   :  { %6212 = vset.pattern.permute.xlu0 %v6507_v2  ;;  %5461 = vmatprep.subr.mxu0 %v6508_v3  ;;  %2347 = vst [vmem:[%s8198_s17] sm:$0xff] %v6508_v3  ;;  %v72_v4 = vld [vmem:[%s8184_s3 + $0x18] sm:$0xff]  ;;  %v71_v6 = vld [vmem:[%s8184_s3 + $0x10] sm:$0xff]  ;;  %v70_v8 = vld [vmem:[%s8184_s3 + $0x8] sm:$0xff]  ;;  %vm6509_vm1 = vmmov 0   ;;  %vm141_vm2 = vcmask 269312   ;;  %s6510_s21 = smov 64  }
  0x1a   :  { %v6623_v5 = vld [vmem:[%s8185_s4 + $0x18] sm:$0xff]  ;;  %5462 = vmatpush3.msk.msra.mxu0 %vm169_vm0, %v73_v1  ;;  %5498 = vmatprep.subr.mxu1 %v6508_v3  ;;  %v6633_v7 = vld [vmem:[%s8185_s4 + $0x10] sm:$0xff]  ;;  %v6644_v9 = vld [vmem:[%s8185_s4 + $0x8] sm:$0xff]  ;;  %v6678_v13 = vand.u32 127, %v79_v12  ;;  %vm293_vm5 = vcmask 261120   ;;  %s8206_s25 = sld [smem:[#allocation9_spill]] }
  0x1b   :  { %5463 = vmatprep.subr.mxu0 %v6508_v3  ;;  %5499 = vmatpush3.msra.mxu1 %v6623_v5  ;;  %v69_v10 = vld [vmem:[%s8184_s3] sm:$0xff]  ;;  %s5081_s29 = sld [smem:[#allocation5 + $0x2]] }
  0x1c   :  { %5464 = vmatpush3.msra.mxu0 %v72_v4  ;;  %5500 = vmatprep.subr.mxu1 %v6508_v3  ;;  %v6656_v11 = vld [vmem:[%s8185_s4] sm:$0xff]  ;;  %s5092_s26 = sld [smem:[#allocation5 + $0x3]] }
  0x1d   :  { %5465 = vmatprep.subr.mxu0 %v6508_v3  ;;  %5501 = vmatpush3.msra.mxu1 %v6633_v7  ;;  %v6696_v18 = vld [vmem:[%s8186_s5] ss:$0 sm:$0xff]  ;;  %s6511_s5 = smov 32   ;;  %s5103_s4 = sld [smem:[#allocation5 + $0x4]] }
  0x1e   :  { %v60_v0 = vld [vmem:[%s8205_s30] sm:$0xff]  ;;  %5466 = vmatpush3.msra.mxu0 %v71_v6  ;;  %5502 = vmatprep.subr.mxu1 %v6508_v3  ;;  %v61_v24 = vld [vmem:[%s8205_s30 + $0x8] sm:$0xff]  ;;  %v62_v53 = vld [vmem:[%s8205_s30 + $0x10] sm:$0xff] }
  0x1f   :  { %82 = vperm.xlu0 %6212, %v60_v0   ;;  %5467 = vmatprep.subr.mxu0 %v6508_v3 }
  0x20   :  { %5468 = vmatpush3.msra.mxu0 %v70_v8  ;;  %5503 = vmatpush3.msra.mxu1 %v6644_v9 }
  0x21   :  { %5469 = vmatprep.subr.mxu0 %v6508_v3  ;;  %5504 = vmatprep.subr.mxu1 %v6508_v3  ;;  %p3249_p6 = scmp.ne.s32.totalorder %s5081_s29, 0 }
  0x22   :  { %5470 = vmatpush3.msra.mxu0 %v69_v10  ;;  %5471 = vmatprep.mubr.msk.f32.mxu0 %vm6509_vm1, %v6508_v3  ;;  %p3688_p7 = scmp.ne.s32.totalorder %s5092_s26, 0 }
  0x23   :  { %5505 = vmatpush3.msra.mxu1 %v6656_v11  ;;  %5506 = vmatprep.mubr.msk.f32.mxu1 %vm6509_vm1, %v6508_v3  ;;  %s3250_s0 = scalar_select %p3249_p6, 1, 0 }
  0x24   :  { %5507 = vmatmul.mubr.f32.vlgmr.msra.gmra.mxu1 %v6508_v3  ;;  %5509 = vmatprep.subr.mxu1 %v6508_v3  ;;  %s3689_s27 = scalar_select %p3688_p7, 1, 0 }
  0x25   :  { %5510 = vmatpush3.msra.mxu1 %v6623_v5  ;;  %5517 = vmatprep.mubr.msk.f32.mxu1 %vm6509_vm1, %v6508_v3  ;;  %s3251_s18 = scvt.s32.f32 %s3250_s0  ;;  %p4127_p8 = scmp.ne.s32.totalorder %s5103_s4, 0 }
  0x26   :  { %5511 = vmatprep.subr.mxu1 %v6508_v3  ;;  %6213 = vset.pattern.permute.xlu1 %v6507_v2  ;;  %s3690_s28 = scvt.s32.f32 %s3689_s27 }
  0x27   :  { %5512 = vmatpush3.msra.mxu1 %v6633_v7  ;;  %5553 = vmatprep.subr.mxu0 %v6508_v3  ;;  %s3254_s19 = ssub.f32 1.0, %s3251_s18 }
  0x28   :  { %5513 = vmatprep.subr.mxu1 %v6508_v3 }
  0x29   :  { %5514 = vmatpush3.msra.mxu1 %v6644_v9 }
  0x2a   :  { %5515 = vmatprep.subr.mxu1 %v6508_v3 }
  0x2b   :  { %5516 = vmatpush3.msra.mxu1 %v6656_v11 }
  0x2c   :  { %5520 = vmatprep.subr.mxu1 %v6508_v3 }
  0x9a   :  { %v83_v14 = vpop.permute.xlu0 %82 }
  0x9b   :  { %vm108_vm3 = vcmp.eq.s32.totalorder %v6678_v13, %v83_v14 }
  0x9c   :  { %v4991_v15 = vsel %vm108_vm3, 1.0, %v6508_v3 }
  0x9d   :  { %5472 = vmatmul.mubr.msk.f32.vlgmr.msra.gmra.mxu0 %vm141_vm2, %v4991_v15 }
  0x9e   :  { %5474 = vmatprep.mubr.msk.f32.mxu0 %vm6509_vm1, %v6508_v3  ;;  %5554 = vmatpush3.msra.mxu0 %v6623_v5 }
  0x9f   :  { %5555 = vmatprep.subr.mxu0 %v6508_v3 }
  0xa0   :  { %5556 = vmatpush3.msra.mxu0 %v6633_v7 }
  0xa1   :  { %5557 = vmatprep.subr.mxu0 %v6508_v3 }
  0xa2   :  { %5558 = vmatpush3.msra.mxu0 %v6644_v9 }
  0xa3   :  { %5559 = vmatprep.subr.mxu0 %v6508_v3 }
  0xa4   :  { %5560 = vmatpush3.msra.mxu0 %v6656_v11 }
  0xa5   :  { %5575 = vmatprep.subr.mxu0 %v6508_v3 }
  0xe4   :  { %v363_v16 = vpop.f32.mrf.mxu1 }
  0xe6   :  { %v5508_v17 = vpop.f32.mrf.mxu1 }
 0x15d   :  { %v239_v19 = vpop.f32.mrf.mxu0 }
 0x15e   :  { %v240_v20 = vadd.f32 %v6696_v18, %v239_v19  ;;  %v63_v19 = vld [vmem:[%s8205_s30 + $0x18] sm:$0xff] }
 0x15f   :  { %v5473_v21 = vpop.f32.mrf.mxu0 }
 0x160   :  { %v367_v22 = vadd.f32 %v363_v16, %v240_v20 }
 0x162   :  { %6214 = vtanh.f32 %v367_v22  ;;  %v5011_v25 = vmul.f32 -1.442695, %v367_v22 }
 0x164   :  { %6216 = vpow2.f32 %v5011_v25 }
 0x16f   :  { %v6215_v23 = vpop.eup %6214 }
 0x170   :  { %377 = vrot.lane.b32.xlu0 %v6215_v23, %s6510_s21 }
 0x171   :  { %v6217_v26 = vpop.eup %6216 }
 0x172   :  { %v371_v27 = vadd.f32 1.0, %v6217_v26 }
 0x174   :  { %85 = vperm.xlu0 %6212, %v61_v24   ;;  %6218 = vrcp.f32 %v371_v27 }
 0x181   :  { %v6219_v28 = vpop.eup %6218 }
 0x182   :  { %v375_v33 = vmul.f32 0.0, %v6219_v28 }
 0x1e2   :  { %v378_v29 = vpop.permute.xlu0 %377 }
 0x1e3   :  { %v380_v30 = vmul.f32 %v6219_v28, %v378_v29 }
 0x1e5   :  { %382 = vrot.lane.b32.xlu1 %v380_v30, %s6511_s5 }
 0x1ef   :  { %v86_v31 = vpop.permute.xlu0 %85 }
 0x1f0   :  { %vm109_vm4 = vcmp.eq.s32.totalorder %v6678_v13, %v86_v31 }
 0x1f1   :  { %v4992_v32 = vsel %vm109_vm4, 1.0, %v6508_v3 }
 0x1f2   :  { %5475 = vmatmul.mubr.msk.f32.gmra.mxu0 %vm141_vm2, %v4992_v32 }
 0x1f3   :  { %5477 = vmatprep.mubr.msk.f32.mxu0 %vm6509_vm1, %v6508_v3 }
 0x257   :  { %v383_v34 = vpop.permute.xlu1 %382 }
 0x258   :  { %v385_v35 = vadd.f32 %v383_v34, %v375_v33 }
 0x25a   :  { %6220 = vtanh.f32 %v385_v35 }
 0x267   :  { %v6221_v36 = vpop.eup %6220 }
 0x268   :  { %388 = vrot.lane.b32.xlu1 %v6221_v36, %s6510_s21 }
 0x2b2   :  { %v244_v37 = vpop.f32.mrf.mxu0 }
 0x2b3   :  { %v245_v42 = vadd.f32 %v6696_v18, %v244_v37 }
 0x2b4   :  { %v5476_v38 = vpop.f32.mrf.mxu0 }
 0x2da   :  { %v389_v39 = vpop.permute.xlu1 %388 }
 0x2db   :  { %v391_v40 = vmul.f32 %v6219_v28, %v389_v39 }
 0x2dd   :  { %393 = vrot.lane.b32.xlu1 %v391_v40, %s6511_s5 }
 0x34f   :  { %v394_v41 = vpop.permute.xlu1 %393 }
 0x350   :  { %396 = vst.msk [vmem:[#allocation2] sm:$0xff] %vm293_vm5, %v394_v41  ;;  %5518 = vmatmul.mubr.msk.f32.vlgmr.msra.gmra.mxu1 %vm293_vm5, %v394_v41 }
 0x351   :  { %5521 = vmatpush3.msra.mxu1 %v6623_v5  ;;  %5528 = vmatprep.mubr.msk.f32.mxu1 %vm6509_vm1, %v6508_v3 }
 0x352   :  { %5522 = vmatprep.subr.mxu1 %v6508_v3 }
 0x353   :  { %5523 = vmatpush3.msra.mxu1 %v6633_v7 }
 0x354   :  { %5524 = vmatprep.subr.mxu1 %v6508_v3 }
 0x355   :  { %5525 = vmatpush3.msra.mxu1 %v6644_v9 }
 0x356   :  { %5526 = vmatprep.subr.mxu1 %v6508_v3 }
 0x357   :  { %5527 = vmatpush3.msra.mxu1 %v6656_v11 }
 0x358   :  { %5531 = vmatprep.subr.mxu1 %v6508_v3 }
 0x410   :  { %v467_v43 = vpop.f32.mrf.mxu1 }
 0x411   :  { %v471_v44 = vadd.f32 %v467_v43, %v245_v42  ;;  %v64_v42 = vld [vmem:[%s8205_s30 + $0x20] sm:$0xff] }
 0x412   :  { %v5519_v45 = vpop.f32.mrf.mxu1 }
 0x413   :  { %6222 = vtanh.f32 %v471_v44  ;;  %v5013_v47 = vmul.f32 -1.442695, %v471_v44 }
 0x415   :  { %6224 = vpow2.f32 %v5013_v47 }
 0x420   :  { %v6223_v46 = vpop.eup %6222 }
 0x421   :  { %481 = vrot.lane.b32.xlu0 %v6223_v46, %s6510_s21 }
 0x422   :  { %v6225_v48 = vpop.eup %6224 }
 0x423   :  { %v475_v49 = vadd.f32 1.0, %v6225_v48 }
 0x425   :  { %6226 = vrcp.f32 %v475_v49 }
 0x432   :  { %v6227_v50 = vpop.eup %6226 }
 0x433   :  { %v479_v54 = vmul.f32 %v6227_v50, %v385_v35 }
 0x493   :  { %v482_v51 = vpop.permute.xlu0 %481 }
 0x494   :  { %v484_v52 = vmul.f32 %v6227_v50, %v482_v51 }
 0x496   :  { %486 = vrot.lane.b32.xlu1 %v484_v52, %s6511_s5 }
 0x49a   :  { %88 = vperm.xlu1 %6213, %v62_v53  }
 0x508   :  { %v487_v55 = vpop.permute.xlu1 %486 }
 0x509   :  { %v489_v56 = vadd.f32 %v487_v55, %v479_v54 }
 0x50b   :  { %6228 = vtanh.f32 %v489_v56 }
 0x515   :  { %v89_v57 = vpop.permute.xlu1 %88 }
 0x516   :  { %vm110_vm6 = vcmp.eq.s32.totalorder %v6678_v13, %v89_v57 }
 0x517   :  { %v4993_v58 = vsel %vm110_vm6, 1.0, %v6508_v3 }
 0x518   :  { %v6229_v59 = vpop.eup %6228  ;;  %5478 = vmatmul.mubr.msk.f32.gmra.mxu0 %vm141_vm2, %v4993_v58 }
 0x519   :  { %492 = vrot.lane.b32.xlu0 %v6229_v59, %s6510_s21  ;;  %5480 = vmatprep.mubr.msk.f32.mxu0 %vm6509_vm1, %v6508_v3 }
 0x58b   :  { %v493_v60 = vpop.permute.xlu0 %492 }
 0x58c   :  { %v495_v61 = vmul.f32 %v6227_v50, %v493_v60 }
 0x58e   :  { %497 = vrot.lane.b32.xlu0 %v495_v61, %s6511_s5 }
 0x5d8   :  { %v249_v62 = vpop.f32.mrf.mxu0 }
 0x5d9   :  { %v250_v1 = vadd.f32 %v6696_v18, %v249_v62 }
 0x5da   :  { %v5479_v63 = vpop.f32.mrf.mxu0 }
 0x600   :  { %v498_v0 = vpop.permute.xlu0 %497 }
 0x601   :  { %501 = vst.msk [vmem:[#allocation2 + $0x8] sm:$0xff] %vm293_vm5, %v498_v0  ;;  %5529 = vmatmul.mubr.msk.f32.vlgmr.msra.gmra.mxu1 %vm293_vm5, %v498_v0 }
 0x602   :  { %5532 = vmatpush3.msra.mxu1 %v6623_v5  ;;  %5539 = vmatprep.mubr.msk.f32.mxu1 %vm6509_vm1, %v6508_v3 }
 0x603   :  { %5533 = vmatprep.subr.mxu1 %v6508_v3 }
 0x604   :  { %5534 = vmatpush3.msra.mxu1 %v6633_v7 }
 0x605   :  { %5535 = vmatprep.subr.mxu1 %v6508_v3 }
 0x606   :  { %5536 = vmatpush3.msra.mxu1 %v6644_v9 }
 0x607   :  { %5537 = vmatprep.subr.mxu1 %v6508_v3 }
 0x608   :  { %5538 = vmatpush3.msra.mxu1 %v6656_v11 }
 0x609   :  { %5542 = vmatprep.subr.mxu1 %v6508_v3 }
 0x6c1   :  { %v572_v2 = vpop.f32.mrf.mxu1 }
 0x6c2   :  { %v576_v4 = vadd.f32 %v572_v2, %v250_v1  ;;  %v65_v1 = vld [vmem:[%s8205_s30 + $0x28] sm:$0xff]  ;;  %v67_v2 = vld [vmem:[%s8205_s30 + $0x38] sm:$0xff] }
 0x6c3   :  { %v5530_v6 = vpop.f32.mrf.mxu1 }
 0x6c4   :  { %6230 = vtanh.f32 %v576_v4  ;;  %v5015_v10 = vmul.f32 -1.442695, %v576_v4 }
 0x6c6   :  { %6232 = vpow2.f32 %v5015_v10 }
 0x6d1   :  { %v6231_v8 = vpop.eup %6230 }
 0x6d2   :  { %586 = vrot.lane.b32.xlu1 %v6231_v8, %s6510_s21 }
 0x6d3   :  { %v6233_v12 = vpop.eup %6232 }
 0x6d4   :  { %v580_v14 = vadd.f32 1.0, %v6233_v12 }
 0x6d6   :  { %6234 = vrcp.f32 %v580_v14 }
 0x6e3   :  { %v6235_v15 = vpop.eup %6234 }
 0x6e4   :  { %v584_v20 = vmul.f32 %v6235_v15, %v489_v56 }
 0x744   :  { %v587_v16 = vpop.permute.xlu1 %586 }
 0x745   :  { %v589_v17 = vmul.f32 %v6235_v15, %v587_v16  ;;  %v68_v16 = vld [vmem:[%s8205_s30 + $0x40] sm:$0xff] }
 0x747   :  { %591 = vrot.lane.b32.xlu0 %v589_v17, %s6511_s5 }
 0x74b   :  { %91 = vperm.xlu0 %6212, %v63_v19  }
 0x7b9   :  { %v592_v21 = vpop.permute.xlu0 %591 }
 0x7ba   :  { %v594_v22 = vadd.f32 %v592_v21, %v584_v20 }
 0x7bc   :  { %6236 = vtanh.f32 %v594_v22 }
 0x7c6   :  { %v92_v23 = vpop.permute.xlu0 %91 }
 0x7c7   :  { %vm111_vm7 = vcmp.eq.s32.totalorder %v6678_v13, %v92_v23 }
 0x7c8   :  { %v4994_v24 = vsel %vm111_vm7, 1.0, %v6508_v3 }
 0x7c9   :  { %v6237_v25 = vpop.eup %6236  ;;  %5481 = vmatmul.mubr.msk.f32.gmra.mxu0 %vm141_vm2, %v4994_v24 }
 0x7ca   :  { %597 = vrot.lane.b32.xlu1 %v6237_v25, %s6510_s21  ;;  %5483 = vmatprep.mubr.msk.f32.mxu0 %vm6509_vm1, %v6508_v3 }
 0x83c   :  { %v598_v26 = vpop.permute.xlu1 %597 }
 0x83d   :  { %v600_v27 = vmul.f32 %v6235_v15, %v598_v26  ;;  %v66_v15 = vld [vmem:[%s8205_s30 + $0x30] sm:$0xff]  ;;  %s5070_s30 = sld [smem:[#allocation5 + $0x1]] }
 0x83f   :  { %602 = vrot.lane.b32.xlu1 %v600_v27, %s6511_s5 }
 0x843   :  { %p2810_p5 = scmp.ne.s32.totalorder %s5070_s30, 0 }
 0x844   :  { %s4128_s30 = scalar_select %p4127_p8, 1, 0 }
 0x845   :  { %s2811_s22 = scalar_select %p2810_p5, 1, 0 }
 0x847   :  { %s2812_s23 = scvt.s32.f32 %s2811_s22 }
 0x849   :  { %s2815_s24 = ssub.f32 1.0, %s2812_s23 }
 0x889   :  { %v254_v28 = vpop.f32.mrf.mxu0 }
 0x88a   :  { %v255_v31 = vadd.f32 %v6696_v18, %v254_v28 }
 0x88b   :  { %v5482_v29 = vpop.f32.mrf.mxu0 }
 0x8b1   :  { %v603_v30 = vpop.permute.xlu1 %602 }
 0x8b2   :  { %606 = vst.msk [vmem:[#allocation2 + $0x10] sm:$0xff] %vm293_vm5, %v603_v30  ;;  %5540 = vmatmul.mubr.msk.f32.vlgmr.msra.gmra.mxu1 %vm293_vm5, %v603_v30 }
 0x8b3   :  { %5543 = vmatpush3.msra.mxu1 %v6623_v5  ;;  %5550 = vmatprep.mubr.msk.f32.mxu1 %vm6509_vm1, %v6508_v3 }
 0x8b4   :  { %5544 = vmatprep.subr.mxu1 %v6508_v3 }
 0x8b5   :  { %5545 = vmatpush3.msra.mxu1 %v6633_v7 }
 0x8b6   :  { %5546 = vmatprep.subr.mxu1 %v6508_v3 }
 0x8b7   :  { %5547 = vmatpush3.msra.mxu1 %v6644_v9 }
 0x8b8   :  { %5548 = vmatprep.subr.mxu1 %v6508_v3 }
 0x8b9   :  { %5549 = vmatpush3.msra.mxu1 %v6656_v11 }
 0x8ba   :  { %5564 = vmatprep.subr.mxu1 %v6508_v3 }
 0x972   :  { %v677_v32 = vpop.f32.mrf.mxu1 }
 0x973   :  { %v681_v33 = vadd.f32 %v677_v32, %v255_v31 }
 0x974   :  { %v5541_v34 = vpop.f32.mrf.mxu1 }
 0x975   :  { %6238 = vtanh.f32 %v681_v33  ;;  %v5017_v36 = vmul.f32 -1.442695, %v681_v33 }
 0x977   :  { %6240 = vpow2.f32 %v5017_v36 }
 0x982   :  { %v6239_v35 = vpop.eup %6238 }
 0x983   :  { %691 = vrot.lane.b32.xlu0 %v6239_v35, %s6510_s21 }
 0x984   :  { %v6241_v37 = vpop.eup %6240 }
 0x985   :  { %v685_v38 = vadd.f32 1.0, %v6241_v37 }
 0x987   :  { %6242 = vrcp.f32 %v685_v38 }
 0x994   :  { %v6243_v39 = vpop.eup %6242 }
 0x995   :  { %v689_v43 = vmul.f32 %v6243_v39, %v594_v22 }
 0x9f5   :  { %v692_v40 = vpop.permute.xlu0 %691 }
 0x9f6   :  { %v694_v41 = vmul.f32 %v6243_v39, %v692_v40 }
 0x9f8   :  { %696 = vrot.lane.b32.xlu1 %v694_v41, %s6511_s5 }
 0x9fc   :  { %94 = vperm.xlu1 %6213, %v64_v42  }
 0xa6a   :  { %v697_v44 = vpop.permute.xlu1 %696 }
 0xa6b   :  { %v699_v45 = vadd.f32 %v697_v44, %v689_v43 }
 0xa6d   :  { %6244 = vtanh.f32 %v699_v45 }
 0xa77   :  { %v95_v46 = vpop.permute.xlu1 %94 }
 0xa78   :  { %vm112_vm8 = vcmp.eq.s32.totalorder %v6678_v13, %v95_v46 }
 0xa79   :  { %v4995_v47 = vsel %vm112_vm8, 1.0, %v6508_v3 }
 0xa7a   :  { %v6245_v48 = vpop.eup %6244  ;;  %5484 = vmatmul.mubr.msk.f32.gmra.mxu0 %vm141_vm2, %v4995_v47 }
 0xa7b   :  { %702 = vrot.lane.b32.xlu0 %v6245_v48, %s6510_s21  ;;  %5486 = vmatprep.mubr.msk.f32.mxu0 %vm6509_vm1, %v6508_v3 }
 0xaed   :  { %v703_v49 = vpop.permute.xlu0 %702 }
 0xaee   :  { %v705_v50 = vmul.f32 %v6243_v39, %v703_v49 }
 0xaf0   :  { %707 = vrot.lane.b32.xlu0 %v705_v50, %s6511_s5 }
 0xb3a   :  { %v259_v51 = vpop.f32.mrf.mxu0 }
 0xb3b   :  { %v260_v54 = vadd.f32 %v6696_v18, %v259_v51 }
 0xb3c   :  { %v5485_v52 = vpop.f32.mrf.mxu0 }
 0xb62   :  { %v708_v53 = vpop.permute.xlu0 %707 }
 0xb63   :  { %711 = vst.msk [vmem:[#allocation2 + $0x18] sm:$0xff] %vm293_vm5, %v708_v53  ;;  %5551 = vmatmul.mubr.msk.f32.vlgmr.msra.gmra.mxu1 %vm293_vm5, %v708_v53 }
 0xb64   :  { %5565 = vmatpush3.msra.mxu1 %v6623_v5  ;;  %5572 = vmatprep.mubr.msk.f32.mxu1 %vm6509_vm1, %v6508_v3 }
 0xb65   :  { %5566 = vmatprep.subr.mxu1 %v6508_v3 }
 0xb66   :  { %5567 = vmatpush3.msra.mxu1 %v6633_v7 }
 0xb67   :  { %5568 = vmatprep.subr.mxu1 %v6508_v3 }
 0xb68   :  { %5569 = vmatpush3.msra.mxu1 %v6644_v9 }
 0xb69   :  { %5570 = vmatprep.subr.mxu1 %v6508_v3 }
 0xb6a   :  { %5571 = vmatpush3.msra.mxu1 %v6656_v11 }
 0xb6b   :  { %5586 = vmatprep.subr.mxu1 %v6508_v3 }
 0xc23   :  { %v782_v55 = vpop.f32.mrf.mxu1 }
 0xc24   :  { %v786_v56 = vadd.f32 %v782_v55, %v260_v54 }
 0xc25   :  { %v5552_v57 = vpop.f32.mrf.mxu1 }
 0xc26   :  { %6246 = vtanh.f32 %v786_v56  ;;  %v5019_v59 = vmul.f32 -1.442695, %v786_v56 }
 0xc28   :  { %6248 = vpow2.f32 %v5019_v59 }
 0xc33   :  { %v6247_v58 = vpop.eup %6246 }
 0xc34   :  { %796 = vrot.lane.b32.xlu1 %v6247_v58, %s6510_s21 }
 0xc35   :  { %v6249_v60 = vpop.eup %6248 }
 0xc36   :  { %v790_v61 = vadd.f32 1.0, %v6249_v60 }
 0xc38   :  { %6250 = vrcp.f32 %v790_v61 }
 0xc45   :  { %v6251_v62 = vpop.eup %6250 }
 0xc46   :  { %v794_v4 = vmul.f32 %v6251_v62, %v699_v45 }
 0xca6   :  { %v797_v63 = vpop.permute.xlu1 %796 }
 0xca7   :  { %v799_v0 = vmul.f32 %v6251_v62, %v797_v63 }
 0xca9   :  { %801 = vrot.lane.b32.xlu0 %v799_v0, %s6511_s5 }
 0xcad   :  { %97 = vperm.xlu0 %6212, %v65_v1  }
 0xcb1   :  { %103 = vperm.xlu0 %6212, %v67_v2   ;;  %v1240_v2 = vld [vmem:[%s8187_s6 + $0x18] sm:$0xff] }
 0xd1b   :  { %v802_v6 = vpop.permute.xlu0 %801 }
 0xd1c   :  { %v6807_v8 = vadd.f32 %v802_v6, %v794_v4  ;;  %v1239_v6 = vld [vmem:[%s8187_s6 + $0x10] sm:$0xff] }
 0xd1e   :  { %6252 = vtanh.f32 %v6807_v8 }
 0xd28   :  { %v98_v10 = vpop.permute.xlu0 %97 }
 0xd29   :  { %vm113_vm9 = vcmp.eq.s32.totalorder %v6678_v13, %v98_v10  ;;  %v1237_v10 = vld [vmem:[%s8187_s6] sm:$0xff] }
 0xd2a   :  { %v4996_v12 = vsel %vm113_vm9, 1.0, %v6508_v3 }
 0xd2b   :  { %v6253_v14 = vpop.eup %6252  ;;  %5487 = vmatmul.mubr.msk.f32.gmra.mxu0 %vm141_vm2, %v4996_v12  ;;  %v1246_v12 = vld [vmem:[#allocation2] sm:$0xff] }
 0xd2c   :  { %807 = vrot.lane.b32.xlu1 %v6253_v14, %s6510_s21  ;;  %5489 = vmatprep.mubr.msk.f32.mxu0 %vm6509_vm1, %v6508_v3  ;;  %v104_v20 = vpop.permute.xlu0 %103  ;;  %v1247_v14 = vld [vmem:[#allocation2 + $0x8] sm:$0xff] }
 0xd2d   :  { %vm115_vm11 = vcmp.eq.s32.totalorder %v6678_v13, %v104_v20 }
 0xd2e   :  { %v4998_v24 = vsel %vm115_vm11, 1.0, %v6508_v3 }
 0xd30   :  { %100 = vperm.xlu1 %6213, %v66_v15   ;;  %v1248_v15 = vld [vmem:[#allocation2 + $0x10] sm:$0xff] }
 0xd34   :  { %106 = vperm.xlu1 %6213, %v68_v16   ;;  %v1249_v16 = vld [vmem:[#allocation2 + $0x18] sm:$0xff] }
 0xd9e   :  { %v808_v17 = vpop.permute.xlu1 %807 }
 0xd9f   :  { %v810_v19 = vmul.f32 %v6251_v62, %v808_v17 }
 0xda1   :  { %812 = vrot.lane.b32.xlu0 %v810_v19, %s6511_s5 }
 0xdab   :  { %v101_v21 = vpop.permute.xlu1 %100 }
 0xdac   :  { %vm114_vm10 = vcmp.eq.s32.totalorder %v6678_v13, %v101_v21 }
 0xdad   :  { %v4997_v22 = vsel %vm114_vm10, 1.0, %v6508_v3 }
 0xdae   :  { %5490 = vmatmul.mubr.msk.f32.gmra.mxu0 %vm141_vm2, %v4997_v22 }
 0xdaf   :  { %v107_v23 = vpop.permute.xlu1 %106  ;;  %5492 = vmatprep.mubr.msk.f32.mxu0 %vm6509_vm1, %v6508_v3 }
 0xdb0   :  { %vm116_vm12 = vcmp.eq.s32.totalorder %v6678_v13, %v107_v23 }
 0xdb1   :  { %v4999_v25 = vsel %vm116_vm12, 1.0, %v6508_v3 }
 0xdb2   :  { %5493 = vmatmul.mubr.msk.f32.gmra.mxu0 %vm141_vm2, %v4998_v24 }
 0xdb3   :  { %5495 = vmatprep.mubr.msk.f32.mxu0 %vm6509_vm1, %v6508_v3 }
 0xdb6   :  { %5496 = vmatmul.mubr.msk.f32.gmra.mxu0 %vm141_vm2, %v4999_v25 }
 0xdb7   :  { %5561 = vmatprep.mubr.msk.f32.mxu0 %vm6509_vm1, %v6508_v3 }
 0xdeb   :  { %v264_v26 = vpop.f32.mrf.mxu0 }
 0xdec   :  { %v265_v35 = vadd.f32 %v6696_v18, %v264_v26 }
 0xded   :  { %v5488_v27 = vpop.f32.mrf.mxu0 }
 0xe13   :  { %v813_v28 = vpop.permute.xlu0 %812 }
 0xe14   :  { %816 = vst.msk [vmem:[#allocation2 + $0x20] sm:$0xff] %vm293_vm5, %v813_v28  ;;  %5562 = vmatmul.mubr.msk.f32.vlgmr.msra.gmra.mxu0 %vm293_vm5, %v813_v28 }
 0xe15   :  { %5576 = vmatpush3.msra.mxu0 %v6623_v5  ;;  %5583 = vmatprep.mubr.msk.f32.mxu0 %vm6509_vm1, %v6508_v3 }
 0xe16   :  { %5577 = vmatprep.subr.mxu0 %v6508_v3 }
 0xe17   :  { %5578 = vmatpush3.msra.mxu0 %v6633_v7 }
 0xe18   :  { %5579 = vmatprep.subr.mxu0 %v6508_v3 }
 0xe19   :  { %5580 = vmatpush3.msra.mxu0 %v6644_v9 }
 0xe1a   :  { %5581 = vmatprep.subr.mxu0 %v6508_v3 }
 0xe1b   :  { %5582 = vmatpush3.msra.mxu0 %v6656_v11  ;;  %v1250_v17 = vld [vmem:[#allocation2 + $0x20] sm:$0xff] }
 0xe1c   :  { %5597 = vmatprep.subr.mxu0 %v6508_v3 }
 0xe6e   :  { %v269_v29 = vpop.f32.mrf.mxu0 }
 0xe6f   :  { %v270_v53 = vadd.f32 %v6696_v18, %v269_v29 }
 0xe70   :  { %v5491_v30 = vpop.f32.mrf.mxu0 }
 0xe72   :  { %v6850_v31 = vpop.f32.mrf.mxu0 }
 0xe73   :  { %v275_v21 = vadd.f32 %v6696_v18, %v6850_v31 }
 0xe74   :  { %v5494_v32 = vpop.f32.mrf.mxu0 }
 0xe76   :  { %v6852_v33 = vpop.f32.mrf.mxu0 }
 0xe78   :  { %v5497_v34 = vpop.f32.mrf.mxu0 }
 0xed4   :  { %v887_v36 = vpop.f32.mrf.mxu0 }
 0xed5   :  { %v891_v37 = vadd.f32 %v887_v36, %v265_v35 }
 0xed6   :  { %v5563_v38 = vpop.f32.mrf.mxu0 }
 0xed7   :  { %6254 = vtanh.f32 %v891_v37  ;;  %v5021_v40 = vmul.f32 -1.442695, %v891_v37 }
 0xed9   :  { %6256 = vpow2.f32 %v5021_v40 }
 0xee4   :  { %v6255_v39 = vpop.eup %6254 }
 0xee5   :  { %901 = vrot.lane.b32.xlu1 %v6255_v39, %s6510_s21 }
 0xee6   :  { %v6257_v41 = vpop.eup %6256 }
 0xee7   :  { %v895_v42 = vadd.f32 1.0, %v6257_v41 }
 0xee9   :  { %6258 = vrcp.f32 %v895_v42 }
 0xef6   :  { %v6259_v43 = vpop.eup %6258 }
 0xef7   :  { %v899_v46 = vmul.f32 %v6259_v43, %v6807_v8  ;;  %v1238_v8 = vld [vmem:[%s8187_s6 + $0x8] sm:$0xff]  ;;  %s3693_s6 = ssub.f32 1.0, %s3690_s28 }
 0xf57   :  { %v902_v44 = vpop.permute.xlu1 %901 }
 0xf58   :  { %v904_v45 = vmul.f32 %v6259_v43, %v902_v44 }
 0xf5a   :  { %906 = vrot.lane.b32.xlu0 %v904_v45, %s6511_s5 }
 0xfcc   :  { %v907_v47 = vpop.permute.xlu0 %906 }
 0xfcd   :  { %v909_v48 = vadd.f32 %v907_v47, %v899_v46 }
 0xfcf   :  { %6260 = vtanh.f32 %v909_v48 }
 0xfdc   :  { %v6261_v49 = vpop.eup %6260 }
 0xfdd   :  { %912 = vrot.lane.b32.xlu1 %v6261_v49, %s6510_s21 }
0x104f   :  { %v913_v50 = vpop.permute.xlu1 %912 }
0x1050   :  { %v915_v51 = vmul.f32 %v6259_v43, %v913_v50 }
0x1052   :  { %917 = vrot.lane.b32.xlu0 %v915_v51, %s6511_s5  ;;  %v6947_v51 = vld [vmem:[%s8188_s7 + $0x18] sm:$0xff] }
0x10c4   :  { %v918_v52 = vpop.permute.xlu0 %917 }
0x10c5   :  { %921 = vst.msk [vmem:[#allocation2 + $0x28] sm:$0xff] %vm293_vm5, %v918_v52  ;;  %5573 = vmatmul.mubr.msk.f32.vlgmr.msra.gmra.mxu1 %vm293_vm5, %v918_v52  ;;  %v6953_v52 = vld [vmem:[%s8188_s7 + $0x10] sm:$0xff] }
0x10c6   :  { %5587 = vmatpush3.msra.mxu1 %v6623_v5  ;;  %5594 = vmatprep.mubr.msk.f32.mxu1 %vm6509_vm1, %v6508_v3 }
0x10c7   :  { %5588 = vmatprep.subr.mxu1 %v6508_v3 }
0x10c8   :  { %5589 = vmatpush3.msra.mxu1 %v6633_v7 }
0x10c9   :  { %5590 = vmatprep.subr.mxu1 %v6508_v3 }
0x10ca   :  { %5591 = vmatpush3.msra.mxu1 %v6644_v9 }
0x10cb   :  { %5592 = vmatprep.subr.mxu1 %v6508_v3 }
0x10cc   :  { %5593 = vmatpush3.msra.mxu1 %v6656_v11  ;;  %v1251_v19 = vld [vmem:[#allocation2 + $0x28] sm:$0xff] }
0x10cd   :  { %5632 = vmatprep.subr.mxu1 %v6508_v3 }
0x1185   :  { %v992_v5 = vpop.f32.mrf.mxu1 }
0x1186   :  { %v996_v54 = vadd.f32 %v992_v5, %v270_v53  ;;  %v6960_v53 = vld [vmem:[%s8188_s7 + $0x8] sm:$0xff]  ;;  %v6967_v5 = vld [vmem:[%s8188_s7] sm:$0xff] }
0x1187   :  { %v5574_v55 = vpop.f32.mrf.mxu1 }
0x1188   :  { %6262 = vtanh.f32 %v996_v54  ;;  %v5023_v7 = vmul.f32 -1.442695, %v996_v54 }
0x118a   :  { %6264 = vpow2.f32 %v5023_v7 }
0x1195   :  { %v6263_v56 = vpop.eup %6262 }
0x1196   :  { %1006 = vrot.lane.b32.xlu1 %v6263_v56, %s6510_s21 }
0x1197   :  { %v6265_v57 = vpop.eup %6264 }
0x1198   :  { %v1000_v58 = vadd.f32 1.0, %v6265_v57  ;;  %v280_v57 = vadd.f32 %v6696_v18, %v6852_v33 }
0x119a   :  { %6266 = vrcp.f32 %v1000_v58 }
0x11a7   :  { %v6267_v9 = vpop.eup %6266 }
0x11a8   :  { %v1004_v11 = vmul.f32 %v6267_v9, %v909_v48 }
0x1208   :  { %v1007_v59 = vpop.permute.xlu1 %1006 }
0x1209   :  { %v1009_v60 = vmul.f32 %v6267_v9, %v1007_v59 }
0x120b   :  { %1011 = vrot.lane.b32.xlu0 %v1009_v60, %s6511_s5  ;;  %v7006_v60 = vld [vmem:[%s8189_s8] ss:$0 sm:$0xff] }
0x127d   :  { %v1012_v61 = vpop.permute.xlu0 %1011 }
0x127e   :  { %v6875_v62 = vadd.f32 %v1012_v61, %v1004_v11 }
0x1280   :  { %6268 = vtanh.f32 %v6875_v62 }
0x128d   :  { %v6269_v63 = vpop.eup %6268 }
0x128e   :  { %1017 = vrot.lane.b32.xlu1 %v6269_v63, %s6510_s21 }
0x1300   :  { %v1018_v0 = vpop.permute.xlu1 %1017 }
0x1301   :  { %v1020_v1 = vmul.f32 %v6267_v9, %v1018_v0 }
0x1303   :  { %1022 = vrot.lane.b32.xlu0 %v1020_v1, %s6511_s5 }
0x1375   :  { %v1023_v4 = vpop.permute.xlu0 %1022 }
0x1376   :  { %1026 = vst.msk [vmem:[#allocation2 + $0x30] sm:$0xff] %vm293_vm5, %v1023_v4  ;;  %5584 = vmatmul.mubr.msk.f32.vlgmr.msra.gmra.mxu0 %vm293_vm5, %v1023_v4 }
0x1377   :  { %5598 = vmatpush3.msra.mxu0 %v1240_v2  ;;  %5605 = vmatprep.mubr.msk.f32.mxu0 %vm6509_vm1, %v6508_v3 }
0x1378   :  { %5599 = vmatprep.subr.mxu0 %v6508_v3 }
0x1379   :  { %5600 = vmatpush3.msra.mxu0 %v1239_v6 }
0x137a   :  { %5601 = vmatprep.subr.mxu0 %v6508_v3 }
0x137b   :  { %5602 = vmatpush3.msra.mxu0 %v1238_v8 }
0x137c   :  { %5603 = vmatprep.subr.mxu0 %v6508_v3 }
0x137d   :  { %5604 = vmatpush3.msra.mxu0 %v1237_v10  ;;  %v1252_v20 = vld [vmem:[#allocation2 + $0x30] sm:$0xff] }
0x137e   :  { %5606 = vmatmul.mubr.msk.f32.vlgmr.msra.gmra.mxu0 %vm293_vm5, %v1246_v12  ;;  %5687 = vmatprep.subr.mxu0 %v6508_v3 }
0x137f   :  { %5608 = vmatprep.mubr.msk.f32.mxu0 %vm6509_vm1, %v6508_v3  ;;  %5688 = vmatpush3.msra.mxu0 %v6947_v51 }
0x1380   :  { %5689 = vmatprep.subr.mxu0 %v6508_v3 }
0x1381   :  { %5690 = vmatpush3.msra.mxu0 %v6953_v52 }
0x1382   :  { %5609 = vmatmul.mubr.msk.f32.gmra.mxu0 %vm293_vm5, %v1247_v14  ;;  %5691 = vmatprep.subr.mxu0 %v6508_v3 }
0x1383   :  { %5611 = vmatprep.mubr.msk.f32.mxu0 %vm6509_vm1, %v6508_v3  ;;  %5692 = vmatpush3.msra.mxu0 %v6960_v53 }
0x1384   :  { %5693 = vmatprep.subr.mxu0 %v6508_v3 }
0x1385   :  { %5694 = vmatpush3.msra.mxu0 %v6967_v5 }
0x1386   :  { %5612 = vmatmul.mubr.msk.f32.gmra.mxu0 %vm293_vm5, %v1248_v15  ;;  %5709 = vmatprep.subr.mxu0 %v6508_v3 }
0x1387   :  { %5614 = vmatprep.mubr.msk.f32.mxu0 %vm6509_vm1, %v6508_v3 }
0x138a   :  { %5615 = vmatmul.mubr.msk.f32.gmra.mxu0 %vm293_vm5, %v1249_v16 }
0x138b   :  { %5617 = vmatprep.mubr.msk.f32.mxu0 %vm6509_vm1, %v6508_v3 }
0x138e   :  { %5618 = vmatmul.mubr.msk.f32.gmra.mxu0 %vm293_vm5, %v1250_v17 }
0x138f   :  { %5620 = vmatprep.mubr.msk.f32.mxu0 %vm6509_vm1, %v6508_v3 }
0x1392   :  { %5621 = vmatmul.mubr.msk.f32.gmra.mxu0 %vm293_vm5, %v1251_v19 }
0x1393   :  { %5623 = vmatprep.mubr.msk.f32.mxu0 %vm6509_vm1, %v6508_v3 }
0x1396   :  { %5624 = vmatmul.mubr.msk.f32.gmra.mxu0 %vm293_vm5, %v1252_v20  ;;  %v7021_v20 = vld [vmem:[%s8198_s17] sm:$0xff] }
0x1397   :  { %5626 = vmatprep.mubr.msk.f32.mxu0 %vm6509_vm1, %v6508_v3 }
0x1436   :  { %v1097_v22 = vpop.f32.mrf.mxu0 }
0x1437   :  { %v1101_v23 = vadd.f32 %v1097_v22, %v275_v21 }
0x1438   :  { %v5585_v24 = vpop.f32.mrf.mxu0 }
0x1439   :  { %6270 = vtanh.f32 %v1101_v23  ;;  %v5025_v41 = vmul.f32 -1.442695, %v1101_v23 }
0x143b   :  { %6272 = vpow2.f32 %v5025_v41 }
0x143e   :  { %v6923_v25 = vpop.f32.mrf.mxu0 }
0x143f   :  { %v1355_v11 = vadd.f32 %v7006_v60, %v6923_v25 }
0x1440   :  { %v5607_v26 = vpop.f32.mrf.mxu0 }
0x1442   :  { %v6925_v27 = vpop.f32.mrf.mxu0 }
0x1443   :  { %v1360_v21 = vadd.f32 %v7006_v60, %v6925_v27 }
0x1444   :  { %v5610_v28 = vpop.f32.mrf.mxu0 }
0x1446   :  { %v6271_v29 = vpop.eup %6270  ;;  %v6927_v30 = vpop.f32.mrf.mxu0 }
0x1447   :  { %1111 = vrot.lane.b32.xlu1 %v6271_v29, %s6510_s21 }
0x1448   :  { %v5613_v32 = vpop.f32.mrf.mxu0  ;;  %v6273_v42 = vpop.eup %6272 }
0x1449   :  { %v1105_v43 = vadd.f32 1.0, %v6273_v42 }
0x144a   :  { %v6930_v34 = vpop.f32.mrf.mxu0 }
0x144b   :  { %6274 = vrcp.f32 %v1105_v43 }
0x144c   :  { %v5616_v35 = vpop.f32.mrf.mxu0 }
0x144e   :  { %v6932_v31 = vpop.f32.mrf.mxu0 }
0x1450   :  { %v5619_v36 = vpop.f32.mrf.mxu0 }
0x1452   :  { %v6934_v37 = vpop.f32.mrf.mxu0 }
0x1454   :  { %v5622_v38 = vpop.f32.mrf.mxu0 }
0x1456   :  { %v6936_v39 = vpop.f32.mrf.mxu0 }
0x1458   :  { %v5625_v40 = vpop.f32.mrf.mxu0  ;;  %v6275_v44 = vpop.eup %6274 }
0x1459   :  { %v1109_v47 = vmul.f32 %v6275_v44, %v6875_v62 }
0x14b9   :  { %v1112_v45 = vpop.permute.xlu1 %1111 }
0x14ba   :  { %v1114_v46 = vmul.f32 %v6275_v44, %v1112_v45  ;;  %v1365_v45 = vadd.f32 %v7006_v60, %v6927_v30 }
0x14bc   :  { %1116 = vrot.lane.b32.xlu0 %v1114_v46, %s6511_s5 }
0x152e   :  { %v1117_v48 = vpop.permute.xlu0 %1116 }
0x152f   :  { %v6940_v49 = vadd.f32 %v1117_v48, %v1109_v47 }
0x1531   :  { %6276 = vtanh.f32 %v6940_v49 }
0x153e   :  { %v6277_v50 = vpop.eup %6276 }
0x153f   :  { %1122 = vrot.lane.b32.xlu1 %v6277_v50, %s6510_s21 }
0x15b1   :  { %v1123_v54 = vpop.permute.xlu1 %1122 }
0x15b2   :  { %v1125_v55 = vmul.f32 %v6275_v44, %v1123_v54 }
0x15b4   :  { %1127 = vrot.lane.b32.xlu0 %v1125_v55, %s6511_s5 }
0x1626   :  { %v1128_v56 = vpop.permute.xlu0 %1127 }
0x1627   :  { %1131 = vst.msk [vmem:[#allocation2 + $0x38] sm:$0xff] %vm293_vm5, %v1128_v56  ;;  %5595 = vmatmul.mubr.msk.f32.vlgmr.msra.gmra.mxu1 %vm293_vm5, %v1128_v56 }
0x1628   :  { %5633 = vmatpush3.msra.mxu1 %v6947_v51  ;;  %5640 = vmatprep.mubr.msk.f32.mxu1 %vm6509_vm1, %v6508_v3 }
0x1629   :  { %5634 = vmatprep.subr.mxu1 %v6508_v3 }
0x162a   :  { %5635 = vmatpush3.msra.mxu1 %v6953_v52 }
0x162b   :  { %5636 = vmatprep.subr.mxu1 %v6508_v3 }
0x162c   :  { %5637 = vmatpush3.msra.mxu1 %v6960_v53 }
0x162d   :  { %5638 = vmatprep.subr.mxu1 %v6508_v3 }
0x162e   :  { %5639 = vmatpush3.msra.mxu1 %v6967_v5  ;;  %v1253_v7 = vld [vmem:[#allocation2 + $0x38] sm:$0xff] }
0x162f   :  { %5641 = vmatmul.mubr.f32.vlgmr.msra.gmra.mxu1 %v6508_v3  ;;  %5627 = vmatmul.mubr.msk.f32.gmra.mxu0 %vm293_vm5, %v1253_v7 }
0x1630   :  { %5643 = vmatprep.subr.mxu1 %v6508_v3  ;;  %5651 = vmatprep.mubr.msk.f32.mxu1 %vm6509_vm1, %v6508_v3 }
0x1631   :  { %5644 = vmatpush3.msra.mxu1 %v6947_v51  ;;  %5629 = vmatprep.mubr.msk.f32.mxu0 %vm6509_vm1, %v6508_v3 }
0x1632   :  { %5645 = vmatprep.subr.mxu1 %v6508_v3 }
0x1633   :  { %5646 = vmatpush3.msra.mxu1 %v6953_v52 }
0x1634   :  { %5647 = vmatprep.subr.mxu1 %v6508_v3 }
0x1635   :  { %5648 = vmatpush3.msra.mxu1 %v6960_v53 }
0x1636   :  { %5649 = vmatprep.subr.mxu1 %v6508_v3 }
0x1637   :  { %5650 = vmatpush3.msra.mxu1 %v6967_v5 }
0x1638   :  { %5654 = vmatprep.subr.mxu1 %v6508_v3 }
0x16e7   :  { %v1202_v58 = vpop.f32.mrf.mxu1 }
0x16e8   :  { %v7001_v9 = vadd.f32 %v1202_v58, %v280_v57 }
0x16e9   :  { %v5596_v59 = vpop.f32.mrf.mxu1 }
0x16ef   :  { %v1474_v61 = vpop.f32.mrf.mxu1  ;;  %v7010_v62 = vpop.f32.mrf.mxu0 }
0x16f0   :  { %v1478_v63 = vadd.f32 %v1474_v61, %v1355_v11 }
0x16f1   :  { %v5642_v3 = vpop.f32.mrf.mxu1  ;;  %v5628_v0 = vpop.f32.mrf.mxu0 }
0x16f2   :  { %6278 = vtanh.f32 %v1478_v63  ;;  %v5038_v33 = vmul.f32 -1.442695, %v1478_v63 }
0x16f4   :  { %6280 = vpow2.f32 %v5038_v33 }
0x16ff   :  { %v6279_v18 = vpop.eup %6278 }
0x1700   :  { %1488 = vrot.lane.b32.xlu1 %v6279_v18, %s6510_s21  ;;  %v1370_v18 = vadd.f32 %v7006_v60, %v6930_v34 }
0x1701   :  { %v6281_v1 = vpop.eup %6280 }
0x1702   :  { %v1482_v2 = vadd.f32 1.0, %v6281_v1 }
0x1704   :  { %6282 = vrcp.f32 %v1482_v2 }
0x1711   :  { %v6283_v4 = vpop.eup %6282 }
0x1712   :  { %v1486_v10 = vmul.f32 0.0, %v6283_v4 }
0x1772   :  { %v1489_v6 = vpop.permute.xlu1 %1488 }
0x1773   :  { %v1491_v8 = vmul.f32 %v6283_v4, %v1489_v6 }
0x1775   :  { %1493 = vrot.lane.b32.xlu0 %v1491_v8, %s6511_s5 }
0x17e7   :  { %v1494_v12 = vpop.permute.xlu0 %1493 }
0x17e8   :  { %v1496_v14 = vadd.f32 %v1494_v12, %v1486_v10 }
0x17ea   :  { %6284 = vtanh.f32 %v1496_v14 }
0x17f7   :  { %v6285_v15 = vpop.eup %6284 }
0x17f8   :  { %1499 = vrot.lane.b32.xlu1 %v6285_v15, %s6510_s21 }
0x186a   :  { %v1500_v16 = vpop.permute.xlu1 %1499 }
0x186b   :  { %v1502_v17 = vmul.f32 %v6283_v4, %v1500_v16 }
0x186d   :  { %1505 = vrot.lane.b32.xlu0 %v1502_v17, %s6511_s5 }
0x18df   :  { %v1506_v19 = vpop.permute.xlu0 %1505 }
0x18e0   :  { %5652 = vmatmul.mubr.msk.f32.vlgmr.msra.gmra.mxu1 %vm293_vm5, %v1506_v19 }
0x18e1   :  { %5655 = vmatpush3.msra.mxu1 %v6947_v51  ;;  %5662 = vmatprep.mubr.msk.f32.mxu1 %vm6509_vm1, %v7021_v20 }
0x18e2   :  { %5656 = vmatprep.subr.mxu1 %v7021_v20 }
0x18e3   :  { %5657 = vmatpush3.msra.mxu1 %v6953_v52 }
0x18e4   :  { %5658 = vmatprep.subr.mxu1 %v7021_v20 }
0x18e5   :  { %5659 = vmatpush3.msra.mxu1 %v6960_v53 }
0x18e6   :  { %5660 = vmatprep.subr.mxu1 %v7021_v20 }
0x18e7   :  { %5661 = vmatpush3.msra.mxu1 %v6967_v5 }
0x18e8   :  { %5665 = vmatprep.subr.mxu1 %v7021_v20 }
0x19a0   :  { %v1575_v22 = vpop.f32.mrf.mxu1 }
0x19a1   :  { %v1579_v23 = vadd.f32 %v1575_v22, %v1360_v21  ;;  %v5027_v22 = vmul.f32 -1.442695, %v7001_v9 }
0x19a2   :  { %v5653_v24 = vpop.f32.mrf.mxu1 }
0x19a3   :  { %6286 = vtanh.f32 %v1579_v23  ;;  %v5040_v26 = vmul.f32 -1.442695, %v1579_v23 }
0x19a5   :  { %6288 = vpow2.f32 %v5040_v26 }
0x19b0   :  { %v6287_v25 = vpop.eup %6286 }
0x19b1   :  { %1589 = vrot.lane.b32.xlu1 %v6287_v25, %s6510_s21 }
0x19b2   :  { %v6289_v28 = vpop.eup %6288 }
0x19b3   :  { %v1583_v29 = vadd.f32 1.0, %v6289_v28 }
0x19b5   :  { %6290 = vrcp.f32 %v1583_v29 }
0x19c2   :  { %v6291_v32 = vpop.eup %6290 }
0x19c3   :  { %v1587_v38 = vmul.f32 %v6291_v32, %v1496_v14 }
0x1a23   :  { %v1590_v35 = vpop.permute.xlu1 %1589 }
0x1a24   :  { %v1592_v36 = vmul.f32 %v6291_v32, %v1590_v35 }
0x1a26   :  { %1594 = vrot.lane.b32.xlu0 %v1592_v36, %s6511_s5 }
0x1a98   :  { %v1595_v40 = vpop.permute.xlu0 %1594 }
0x1a99   :  { %v1597_v27 = vadd.f32 %v1595_v40, %v1587_v38 }
0x1a9b   :  { %6292 = vtanh.f32 %v1597_v27 }
0x1aa8   :  { %v6293_v41 = vpop.eup %6292 }
0x1aa9   :  { %1600 = vrot.lane.b32.xlu1 %v6293_v41, %s6510_s21  ;;  %v1375_v41 = vadd.f32 %v7006_v60, %v6932_v31 }
0x1b1b   :  { %v1601_v42 = vpop.permute.xlu1 %1600 }
0x1b1c   :  { %v1603_v43 = vmul.f32 %v6291_v32, %v1601_v42 }
0x1b1e   :  { %1606 = vrot.lane.b32.xlu0 %v1603_v43, %s6511_s5 }
0x1b90   :  { %v1607_v44 = vpop.permute.xlu0 %1606 }
0x1b91   :  { %5663 = vmatmul.mubr.msk.f32.vlgmr.msra.gmra.mxu1 %vm293_vm5, %v1607_v44 }
0x1b92   :  { %5666 = vmatpush3.msra.mxu1 %v6947_v51  ;;  %5673 = vmatprep.mubr.msk.f32.mxu1 %vm6509_vm1, %v7021_v20 }
0x1b93   :  { %5667 = vmatprep.subr.mxu1 %v7021_v20 }
0x1b94   :  { %5668 = vmatpush3.msra.mxu1 %v6953_v52 }
0x1b95   :  { %5669 = vmatprep.subr.mxu1 %v7021_v20 }
0x1b96   :  { %5670 = vmatpush3.msra.mxu1 %v6960_v53 }
0x1b97   :  { %5671 = vmatprep.subr.mxu1 %v7021_v20 }
0x1b98   :  { %5672 = vmatpush3.msra.mxu1 %v6967_v5 }
0x1b99   :  { %5676 = vmatprep.subr.mxu1 %v7021_v20 }
0x1c51   :  { %v1676_v46 = vpop.f32.mrf.mxu1 }
0x1c52   :  { %v1680_v47 = vadd.f32 %v1676_v46, %v1365_v45 }
0x1c53   :  { %v5664_v48 = vpop.f32.mrf.mxu1 }
0x1c54   :  { %6294 = vtanh.f32 %v1680_v47  ;;  %v5042_v54 = vmul.f32 -1.442695, %v1680_v47 }
0x1c56   :  { %6296 = vpow2.f32 %v5042_v54 }
0x1c61   :  { %v6295_v50 = vpop.eup %6294 }
0x1c62   :  { %1690 = vrot.lane.b32.xlu1 %v6295_v50, %s6510_s21 }
0x1c63   :  { %v6297_v55 = vpop.eup %6296 }
0x1c64   :  { %v1684_v56 = vadd.f32 1.0, %v6297_v55 }
0x1c66   :  { %6298 = vrcp.f32 %v1684_v56 }
0x1c73   :  { %v6299_v7 = vpop.eup %6298 }
0x1c74   :  { %v1688_v59 = vmul.f32 %v6299_v7, %v1597_v27 }
0x1cd4   :  { %v1691_v57 = vpop.permute.xlu1 %1690 }
0x1cd5   :  { %v1693_v58 = vmul.f32 %v6299_v7, %v1691_v57 }
0x1cd7   :  { %1695 = vrot.lane.b32.xlu0 %v1693_v58, %s6511_s5 }
0x1d49   :  { %v1696_v11 = vpop.permute.xlu0 %1695 }
0x1d4a   :  { %v1698_v30 = vadd.f32 %v1696_v11, %v1688_v59 }
0x1d4c   :  { %6300 = vtanh.f32 %v1698_v30 }
0x1d59   :  { %v6301_v61 = vpop.eup %6300 }
0x1d5a   :  { %1701 = vrot.lane.b32.xlu1 %v6301_v61, %s6510_s21 }
0x1dcc   :  { %v1702_v63 = vpop.permute.xlu1 %1701 }
0x1dcd   :  { %v1704_v3 = vmul.f32 %v6299_v7, %v1702_v63 }
0x1dcf   :  { %1707 = vrot.lane.b32.xlu0 %v1704_v3, %s6511_s5 }
0x1e41   :  { %v1708_v0 = vpop.permute.xlu0 %1707 }
0x1e42   :  { %5674 = vmatmul.mubr.msk.f32.vlgmr.msra.gmra.mxu1 %vm293_vm5, %v1708_v0  ;;  %v1380_v0 = vadd.f32 %v7006_v60, %v6934_v37 }
0x1e43   :  { %5677 = vmatpush3.msra.mxu1 %v6947_v51  ;;  %5684 = vmatprep.mubr.msk.f32.mxu1 %vm6509_vm1, %v7021_v20 }
0x1e44   :  { %5678 = vmatprep.subr.mxu1 %v7021_v20 }
0x1e45   :  { %5679 = vmatpush3.msra.mxu1 %v6953_v52 }
0x1e46   :  { %5680 = vmatprep.subr.mxu1 %v7021_v20 }
0x1e47   :  { %5681 = vmatpush3.msra.mxu1 %v6960_v53 }
0x1e48   :  { %5682 = vmatprep.subr.mxu1 %v7021_v20 }
0x1e49   :  { %5683 = vmatpush3.msra.mxu1 %v6967_v5 }
0x1e4a   :  { %5698 = vmatprep.subr.mxu1 %v7021_v20 }
0x1f02   :  { %v1777_v33 = vpop.f32.mrf.mxu1 }
0x1f03   :  { %v1781_v1 = vadd.f32 %v1777_v33, %v1370_v18 }
0x1f04   :  { %v5675_v2 = vpop.f32.mrf.mxu1 }
0x1f05   :  { %6302 = vtanh.f32 %v1781_v1  ;;  %v5044_v6 = vmul.f32 -1.442695, %v1781_v1 }
0x1f07   :  { %6304 = vpow2.f32 %v5044_v6 }
0x1f12   :  { %v6303_v4 = vpop.eup %6302 }
0x1f13   :  { %1791 = vrot.lane.b32.xlu1 %v6303_v4, %s6510_s21 }
0x1f14   :  { %v6305_v8 = vpop.eup %6304 }
0x1f15   :  { %v1785_v10 = vadd.f32 1.0, %v6305_v8 }
0x1f17   :  { %6306 = vrcp.f32 %v1785_v10 }
0x1f24   :  { %v6307_v12 = vpop.eup %6306 }
0x1f25   :  { %v1789_v16 = vmul.f32 %v6307_v12, %v1698_v30 }
0x1f85   :  { %v1792_v14 = vpop.permute.xlu1 %1791 }
0x1f86   :  { %v1794_v15 = vmul.f32 %v6307_v12, %v1792_v14 }
0x1f88   :  { %1796 = vrot.lane.b32.xlu0 %v1794_v15, %s6511_s5 }
0x1ffa   :  { %v1797_v17 = vpop.permute.xlu0 %1796 }
0x1ffb   :  { %v1799_v34 = vadd.f32 %v1797_v17, %v1789_v16 }
0x1ffd   :  { %6308 = vtanh.f32 %v1799_v34 }
0x1ffe   :  { %6310 = vtanh.f32 %v7001_v9 }
0x1fff   :  { %6312 = vpow2.f32 %v5027_v22 }
0x200a   :  { %v6309_v19 = vpop.eup %6308 }
0x200b   :  { %1802 = vrot.lane.b32.xlu1 %v6309_v19, %s6510_s21  ;;  %v6311_v21 = vpop.eup %6310 }
0x200c   :  { %v6313_v23 = vpop.eup %6312 }
0x200d   :  { %v1210_v24 = vadd.f32 1.0, %v6313_v23 }
0x200f   :  { %1216 = vrot.lane.b32.xlu1 %v6311_v21, %s6510_s21  ;;  %6314 = vrcp.f32 %v1210_v24 }
0x201c   :  { %v6315_v28 = vpop.eup %6314 }
0x201d   :  { %v1214_v9 = vmul.f32 %v6315_v28, %v6940_v49 }
0x207d   :  { %v1803_v25 = vpop.permute.xlu1 %1802 }
0x207e   :  { %v1805_v26 = vmul.f32 %v6307_v12, %v1803_v25 }
0x2080   :  { %1808 = vrot.lane.b32.xlu0 %v1805_v26, %s6511_s5 }
0x2081   :  { %v1217_v29 = vpop.permute.xlu1 %1216 }
0x2082   :  { %v1219_v32 = vmul.f32 %v6315_v28, %v1217_v29 }
0x2084   :  { %1221 = vrot.lane.b32.xlu1 %v1219_v32, %s6511_s5 }
0x20f2   :  { %v1809_v35 = vpop.permute.xlu0 %1808 }
0x20f3   :  { %5685 = vmatmul.mubr.msk.f32.vlgmr.msra.gmra.mxu1 %vm293_vm5, %v1809_v35 }
0x20f4   :  { %5699 = vmatpush3.msra.mxu1 %v6947_v51  ;;  %5706 = vmatprep.mubr.msk.f32.mxu1 %vm6509_vm1, %v7021_v20 }
0x20f5   :  { %5700 = vmatprep.subr.mxu1 %v7021_v20 }
0x20f6   :  { %v1222_v36 = vpop.permute.xlu1 %1221  ;;  %5701 = vmatpush3.msra.mxu1 %v6953_v52 }
0x20f7   :  { %v7083_v38 = vadd.f32 %v1222_v36, %v1214_v9  ;;  %5702 = vmatprep.subr.mxu1 %v7021_v20 }
0x20f8   :  { %5703 = vmatpush3.msra.mxu1 %v6960_v53 }
0x20f9   :  { %6316 = vtanh.f32 %v7083_v38  ;;  %5704 = vmatprep.subr.mxu1 %v7021_v20 }
0x20fa   :  { %5705 = vmatpush3.msra.mxu1 %v6967_v5 }
0x20fb   :  { %5720 = vmatprep.subr.mxu1 %v7021_v20 }
0x2106   :  { %v6317_v49 = vpop.eup %6316 }
0x2107   :  { %1227 = vrot.lane.b32.xlu1 %v6317_v49, %s6510_s21 }
0x2179   :  { %v1228_v40 = vpop.permute.xlu1 %1227 }
0x217a   :  { %v1230_v27 = vmul.f32 %v6315_v28, %v1228_v40  ;;  %v7145_v40 = vld [vmem:[%s8191_s10 + $0x18] sm:$0xff] }
0x217c   :  { %1232 = vrot.lane.b32.xlu1 %v1230_v27, %s6511_s5 }
0x21b3   :  { %v1878_v42 = vpop.f32.mrf.mxu1 }
0x21b4   :  { %v1882_v43 = vadd.f32 %v1878_v42, %v1375_v41  ;;  %v7151_v41 = vld [vmem:[%s8191_s10 + $0x10] sm:$0xff]  ;;  %v7160_v42 = vld [vmem:[%s8191_s10 + $0x8] sm:$0xff] }
0x21b5   :  { %v5686_v44 = vpop.f32.mrf.mxu1 }
0x21b6   :  { %6318 = vtanh.f32 %v1882_v43  ;;  %v5046_v48 = vmul.f32 -1.442695, %v1882_v43  ;;  %v7167_v43 = vld [vmem:[%s8191_s10] sm:$0xff]  ;;  %v1390_v44 = vadd.f32 %v7006_v60, %v7010_v62 }
0x21b8   :  { %6320 = vpow2.f32 %v5046_v48 }
0x21c3   :  { %v6319_v45 = vpop.eup %6318 }
0x21c4   :  { %1892 = vrot.lane.b32.xlu0 %v6319_v45, %s6510_s21 }
0x21c5   :  { %v6321_v31 = vpop.eup %6320 }
0x21c6   :  { %v1886_v50 = vadd.f32 1.0, %v6321_v31 }
0x21c8   :  { %6322 = vrcp.f32 %v1886_v50 }
0x21d5   :  { %v6323_v54 = vpop.eup %6322 }
0x21d6   :  { %v1890_v7 = vmul.f32 %v6323_v54, %v1799_v34 }
0x21ee   :  { %v7096_v46 = vpop.permute.xlu1 %1232 }
0x21ef   :  { %1236 = vst.msk [vmem:[#allocation2 + $0x40] sm:$0xff] %vm293_vm5, %v7096_v46 }
0x21f6   :  { %v1254_v47 = vld [vmem:[#allocation2 + $0x40] sm:$0xff] }
0x21f7   :  { %5630 = vmatmul.mubr.msk.f32.gmra.mxu0 %vm293_vm5, %v1254_v47 }
0x21f8   :  { %5695 = vmatprep.mubr.msk.f32.mxu0 %vm6509_vm1, %v7021_v20 }
0x2236   :  { %v1893_v55 = vpop.permute.xlu0 %1892 }
0x2237   :  { %v1895_v56 = vmul.f32 %v6323_v54, %v1893_v55 }
0x2239   :  { %1897 = vrot.lane.b32.xlu0 %v1895_v56, %s6511_s5 }
0x22ab   :  { %v1898_v57 = vpop.permute.xlu0 %1897 }
0x22ac   :  { %v1900_v58 = vadd.f32 %v1898_v57, %v1890_v7 }
0x22ae   :  { %6324 = vtanh.f32 %v1900_v58 }
0x22b7   :  { %v7104_v59 = vpop.f32.mrf.mxu0 }
0x22b9   :  { %v5631_v11 = vpop.f32.mrf.mxu0 }
0x22bb   :  { %v6325_v30 = vpop.eup %6324 }
0x22bc   :  { %1903 = vrot.lane.b32.xlu0 %v6325_v30, %s6510_s21 }
0x232e   :  { %v1904_v61 = vpop.permute.xlu0 %1903 }
0x232f   :  { %v1906_v63 = vmul.f32 %v6323_v54, %v1904_v61 }
0x2331   :  { %1909 = vrot.lane.b32.xlu0 %v1906_v63, %s6511_s5  ;;  %v2348_v63 = vld [vmem:[%s8183_s2] sm:$0xff] }
0x23a3   :  { %v1910_v3 = vpop.permute.xlu0 %1909 }
0x23a4   :  { %5696 = vmatmul.mubr.msk.f32.vlgmr.msra.gmra.mxu0 %vm293_vm5, %v1910_v3 }
0x23a5   :  { %5710 = vmatpush3.msra.mxu0 %v6947_v51  ;;  %5717 = vmatprep.mubr.msk.f32.mxu0 %vm6509_vm1, %v7021_v20 }
0x23a6   :  { %5711 = vmatprep.subr.mxu0 %v7021_v20 }
0x23a7   :  { %5712 = vmatpush3.msra.mxu0 %v6953_v52 }
0x23a8   :  { %5713 = vmatprep.subr.mxu0 %v7021_v20 }
0x23a9   :  { %5714 = vmatpush3.msra.mxu0 %v6960_v53 }
0x23aa   :  { %5715 = vmatprep.subr.mxu0 %v7021_v20 }
0x23ab   :  { %5716 = vmatpush3.msra.mxu0 %v6967_v5 }
0x23ac   :  { %5731 = vmatprep.subr.mxu0 %v7021_v20 }
0x2464   :  { %v1979_v18 = vpop.f32.mrf.mxu0 }
0x2465   :  { %v1983_v33 = vadd.f32 %v1979_v18, %v1380_v0  ;;  %v7194_v18 = vld [vmem:[%s8190_s9 + $0x78] sm:$0xff] }
0x2466   :  { %v5697_v1 = vpop.f32.mrf.mxu0 }
0x2467   :  { %6326 = vtanh.f32 %v1983_v33  ;;  %v5048_v4 = vmul.f32 -1.442695, %v1983_v33  ;;  %v7200_v1 = vld [vmem:[%s8190_s9 + $0x70] sm:$0xff] }
0x2469   :  { %6328 = vpow2.f32 %v5048_v4  ;;  %v7216_v4 = vld [vmem:[%s8190_s9 + $0x60] sm:$0xff] }
0x2474   :  { %v6327_v2 = vpop.eup %6326 }
0x2475   :  { %1993 = vrot.lane.b32.xlu1 %v6327_v2, %s6510_s21  ;;  %v7209_v2 = vld [vmem:[%s8190_s9 + $0x68] sm:$0xff] }
0x2476   :  { %v6329_v6 = vpop.eup %6328 }
0x2477   :  { %v1987_v8 = vadd.f32 1.0, %v6329_v6  ;;  %v7223_v6 = vld [vmem:[%s8190_s9 + $0x58] sm:$0xff] }
0x2479   :  { %6330 = vrcp.f32 %v1987_v8  ;;  %v7230_v8 = vld [vmem:[%s8190_s9 + $0x50] sm:$0xff] }
0x2486   :  { %v6331_v10 = vpop.eup %6330 }
0x2487   :  { %v1991_v15 = vmul.f32 %v6331_v10, %v1900_v58 }
0x24e7   :  { %v1994_v12 = vpop.permute.xlu1 %1993 }
0x24e8   :  { %v1996_v14 = vmul.f32 %v6331_v10, %v1994_v12  ;;  %v7244_v12 = vld [vmem:[%s8190_s9 + $0x40] sm:$0xff] }
0x24ea   :  { %1998 = vrot.lane.b32.xlu0 %v1996_v14, %s6511_s5  ;;  %v7251_v14 = vld [vmem:[%s8190_s9 + $0x38] sm:$0xff] }
0x255c   :  { %v1999_v16 = vpop.permute.xlu0 %1998 }
0x255d   :  { %v2001_v37 = vadd.f32 %v1999_v16, %v1991_v15  ;;  %v7258_v15 = vld [vmem:[%s8190_s9 + $0x30] sm:$0xff]  ;;  %v7265_v16 = vld [vmem:[%s8190_s9 + $0x28] sm:$0xff] }
0x255f   :  { %6332 = vtanh.f32 %v2001_v37 }
0x256c   :  { %v6333_v17 = vpop.eup %6332 }
0x256d   :  { %2004 = vrot.lane.b32.xlu1 %v6333_v17, %s6510_s21  ;;  %v7279_v17 = vld [vmem:[%s8190_s9 + $0x18] sm:$0xff] }
0x25df   :  { %v2005_v34 = vpop.permute.xlu1 %2004 }
0x25e0   :  { %v2007_v19 = vmul.f32 %v6331_v10, %v2005_v34  ;;  %v7237_v10 = vld [vmem:[%s8190_s9 + $0x48] sm:$0xff]  ;;  %v7286_v34 = vld [vmem:[%s8190_s9 + $0x10] sm:$0xff] }
0x25e2   :  { %2010 = vrot.lane.b32.xlu0 %v2007_v19, %s6511_s5  ;;  %v7293_v19 = vld [vmem:[%s8190_s9 + $0x8] sm:$0xff] }
0x2654   :  { %v2011_v21 = vpop.permute.xlu0 %2010 }
0x2655   :  { %5707 = vmatmul.mubr.msk.f32.vlgmr.msra.gmra.mxu1 %vm293_vm5, %v2011_v21 }
0x2656   :  { %5721 = vmatpush3.msra.mxu1 %v6947_v51  ;;  %5728 = vmatprep.mubr.msk.f32.mxu1 %vm6509_vm1, %v7021_v20  ;;  %v1385_v51 = vadd.f32 %v7006_v60, %v6936_v39 }
0x2657   :  { %5722 = vmatprep.subr.mxu1 %v7021_v20 }
0x2658   :  { %5723 = vmatpush3.msra.mxu1 %v6953_v52 }
0x2659   :  { %5724 = vmatprep.subr.mxu1 %v7021_v20 }
0x265a   :  { %5725 = vmatpush3.msra.mxu1 %v6960_v53 }
0x265b   :  { %5726 = vmatprep.subr.mxu1 %v7021_v20 }
0x265c   :  { %5727 = vmatpush3.msra.mxu1 %v6967_v5 }
0x265d   :  { %5742 = vmatprep.subr.mxu1 %v7021_v20 }
0x2715   :  { %v2080_v22 = vpop.f32.mrf.mxu1 }
0x2716   :  { %v2084_v23 = vadd.f32 %v2080_v22, %v1385_v51  ;;  %v7300_v51 = vld [vmem:[%s8190_s9] sm:$0xff]  ;;  %v6512_v22 = vmov 1.0  }
0x2717   :  { %v5708_v24 = vpop.f32.mrf.mxu1 }
0x2718   :  { %6334 = vtanh.f32 %v2084_v23  ;;  %v5050_v52 = vmul.f32 -1.442695, %v2084_v23  ;;  %v1395_v23 = vadd.f32 %v7006_v60, %v7104_v59 }
0x271a   :  { %6336 = vpow2.f32 %v5050_v52 }
0x2725   :  { %v6335_v25 = vpop.eup %6334 }
0x2726   :  { %2094 = vrot.lane.b32.xlu1 %v6335_v25, %s6510_s21 }
0x2727   :  { %v6337_v26 = vpop.eup %6336 }
0x2728   :  { %v2088_v53 = vadd.f32 1.0, %v6337_v26 }
0x272a   :  { %6338 = vrcp.f32 %v2088_v53  ;;  %v7347_v53 = vld [vmem:[%s8206_s25] ss:$0 sm:$0xff] }
0x2737   :  { %v6339_v28 = vpop.eup %6338 }
0x2738   :  { %v2092_v32 = vmul.f32 %v6339_v28, %v2001_v37  ;;  %v7272_v37 = vld [vmem:[%s8190_s9 + $0x20] sm:$0xff] }
0x2798   :  { %v2095_v29 = vpop.permute.xlu1 %2094 }
0x2799   :  { %v2097_v5 = vmul.f32 %v6339_v28, %v2095_v29 }
0x279b   :  { %2099 = vrot.lane.b32.xlu0 %v2097_v5, %s6511_s5 }
0x280d   :  { %v2100_v35 = vpop.permute.xlu0 %2099 }
0x280e   :  { %v2102_v39 = vadd.f32 %v2100_v35, %v2092_v32 }
0x2810   :  { %6340 = vtanh.f32 %v2102_v39 }
0x281d   :  { %v6341_v9 = vpop.eup %6340 }
0x281e   :  { %2105 = vrot.lane.b32.xlu1 %v6341_v9, %s6510_s21 }
0x2890   :  { %v2106_v36 = vpop.permute.xlu1 %2105 }
0x2891   :  { %v2108_v49 = vmul.f32 %v6339_v28, %v2106_v36 }
0x2893   :  { %2111 = vrot.lane.b32.xlu0 %v2108_v49, %s6511_s5 }
0x2905   :  { %v2112_v27 = vpop.permute.xlu0 %2111 }
0x2906   :  { %5718 = vmatmul.mubr.msk.f32.vlgmr.msra.gmra.mxu0 %vm293_vm5, %v2112_v27 }
0x2907   :  { %5732 = vmatpush3.msra.mxu0 %v7145_v40  ;;  %5739 = vmatprep.mubr.msk.f32.mxu0 %vm6509_vm1, %v7021_v20 }
0x2908   :  { %5733 = vmatprep.subr.mxu0 %v7021_v20 }
0x2909   :  { %5734 = vmatpush3.msra.mxu0 %v7151_v41 }
0x290a   :  { %5735 = vmatprep.subr.mxu0 %v7021_v20 }
0x290b   :  { %5736 = vmatpush3.msra.mxu0 %v7160_v42 }
0x290c   :  { %5737 = vmatprep.subr.mxu0 %v7021_v20 }
0x290d   :  { %5738 = vmatpush3.msra.mxu0 %v7167_v43 }
0x290e   :  { %5740 = vmatmul.mubr.msk.f32.vlgmr.msra.gmra.mxu0 %vm293_vm5, %v7096_v46  ;;  %5777 = vmatprep.subr.mxu0 %v7021_v20 }
0x290f   :  { %5785 = vmatprep.mubr.msk.f32.mxu0 %vm6509_vm1, %v7021_v20 }
0x29c6   :  { %v2181_v45 = vpop.f32.mrf.mxu0 }
0x29c7   :  { %v2185_v47 = vadd.f32 %v2181_v45, %v1390_v44 }
0x29c8   :  { %v5719_v48 = vpop.f32.mrf.mxu0 }
0x29c9   :  { %6342 = vtanh.f32 %v2185_v47  ;;  %v5052_v55 = vmul.f32 -1.442695, %v2185_v47 }
0x29cb   :  { %6344 = vpow2.f32 %v5052_v55 }
0x29ce   :  { %v7179_v31 = vpop.f32.mrf.mxu0 }
0x29d0   :  { %v5741_v50 = vpop.f32.mrf.mxu0 }
0x29d6   :  { %v6343_v54 = vpop.eup %6342 }
0x29d7   :  { %2195 = vrot.lane.b32.xlu1 %v6343_v54, %s6510_s21 }
0x29d8   :  { %v6345_v46 = vpop.eup %6344 }
0x29d9   :  { %v2189_v56 = vadd.f32 1.0, %v6345_v46 }
0x29db   :  { %6346 = vrcp.f32 %v2189_v56 }
0x29e8   :  { %v6347_v7 = vpop.eup %6346 }
0x29e9   :  { %v2193_v62 = vmul.f32 %v6347_v7, %v2102_v39 }
0x2a49   :  { %v2196_v57 = vpop.permute.xlu1 %2195 }
0x2a4a   :  { %v2198_v58 = vmul.f32 %v6347_v7, %v2196_v57 }
0x2a4c   :  { %2200 = vrot.lane.b32.xlu0 %v2198_v58, %s6511_s5  ;;  %v7366_v58 = vld [vmem:[%s8194_s13 + $0x18] sm:$0xff] }
0x2a4d   :  { %5778 = vmatpush3.msra.mxu0 %v7366_v58 }
0x2a4e   :  { %5779 = vmatprep.subr.mxu0 %v7021_v20 }
0x2abe   :  { %v2201_v11 = vpop.permute.xlu0 %2200 }
0x2abf   :  { %v7183_v30 = vadd.f32 %v2201_v11, %v2193_v62  ;;  %v7371_v62 = vld [vmem:[%s8194_s13 + $0x10] sm:$0xff]  ;;  %v7385_v11 = vld [vmem:[%s8194_s13] sm:$0xff] }
0x2ac0   :  { %5780 = vmatpush3.msra.mxu0 %v7371_v62 }
0x2ac1   :  { %6348 = vtanh.f32 %v7183_v30  ;;  %5781 = vmatprep.subr.mxu0 %v7021_v20 }
0x2ace   :  { %v6349_v61 = vpop.eup %6348 }
0x2acf   :  { %2206 = vrot.lane.b32.xlu1 %v6349_v61, %s6510_s21 }
0x2ad3   :  { %2350 = vperm.xlu1 %6213, %v2348_v63  }
0x2b41   :  { %v2207_v3 = vpop.permute.xlu1 %2206 }
0x2b42   :  { %v2209_v0 = vmul.f32 %v6347_v7, %v2207_v3 }
0x2b44   :  { %2212 = vrot.lane.b32.xlu0 %v2209_v0, %s6511_s5 }
0x2b4e   :  { %v2351_v21 = vpop.permute.xlu1 %2350 }
0x2b4f   :  { %vm2352_vm13 = vcmp.eq.s32.totalorder %v6678_v13, %v2351_v21 }
0x2bb6   :  { %v2213_v33 = vpop.permute.xlu0 %2212 }
0x2bb7   :  { %5729 = vmatmul.mubr.msk.f32.vlgmr.msra.gmra.mxu1 %vm293_vm5, %v2213_v33  ;;  %v7397_v33 = vld [vmem:[%s8193_s12 + $0x18] sm:$0xff] }
0x2bb8   :  { %5743 = vmatpush3.msra.mxu1 %v7194_v18  ;;  %5774 = vmatprep.mubr.msk.f32.mxu1 %vm6509_vm1, %v7021_v20 }
0x2bb9   :  { %5744 = vmatprep.subr.mxu1 %v7021_v20 }
0x2bba   :  { %5745 = vmatpush3.msra.mxu1 %v7200_v1 }
0x2bbb   :  { %5746 = vmatprep.subr.mxu1 %v7021_v20 }
0x2bbc   :  { %5747 = vmatpush3.msra.mxu1 %v7209_v2 }
0x2bbd   :  { %5748 = vmatprep.subr.mxu1 %v7021_v20 }
0x2bbe   :  { %5749 = vmatpush3.msra.mxu1 %v7216_v4 }
0x2bbf   :  { %5750 = vmatprep.subr.mxu1 %v7021_v20 }
0x2bc0   :  { %5751 = vmatpush3.msra.mxu1 %v7223_v6 }
0x2bc1   :  { %5752 = vmatprep.subr.mxu1 %v7021_v20 }
0x2bc2   :  { %5753 = vmatpush3.msra.mxu1 %v7230_v8 }
0x2bc3   :  { %5754 = vmatprep.subr.mxu1 %v7021_v20 }
0x2bc4   :  { %5755 = vmatpush3.msra.mxu1 %v7237_v10 }
0x2bc5   :  { %5756 = vmatprep.subr.mxu1 %v7021_v20 }
0x2bc6   :  { %5757 = vmatpush3.msra.mxu1 %v7244_v12 }
0x2bc7   :  { %5758 = vmatprep.subr.mxu1 %v7021_v20 }
0x2bc8   :  { %5759 = vmatpush3.msra.mxu1 %v7251_v14 }
0x2bc9   :  { %5760 = vmatprep.subr.mxu1 %v7021_v20 }
0x2bca   :  { %5761 = vmatpush3.msra.mxu1 %v7258_v15 }
0x2bcb   :  { %5762 = vmatprep.subr.mxu1 %v7021_v20 }
0x2bcc   :  { %5763 = vmatpush3.msra.mxu1 %v7265_v16 }
0x2bcd   :  { %5764 = vmatprep.subr.mxu1 %v7021_v20 }
0x2bce   :  { %5765 = vmatpush3.msra.mxu1 %v7272_v37 }
0x2bcf   :  { %5766 = vmatprep.subr.mxu1 %v7021_v20 }
0x2bd0   :  { %5767 = vmatpush3.msra.mxu1 %v7279_v17 }
0x2bd1   :  { %5768 = vmatprep.subr.mxu1 %v7021_v20 }
0x2bd2   :  { %5769 = vmatpush3.msra.mxu1 %v7286_v34 }
0x2bd3   :  { %5770 = vmatprep.subr.mxu1 %v7021_v20 }
0x2bd4   :  { %5771 = vmatpush3.msra.mxu1 %v7293_v19 }
0x2bd5   :  { %5772 = vmatprep.subr.mxu1 %v7021_v20 }
0x2bd6   :  { %5773 = vmatpush3.msra.mxu1 %v7300_v51 }
0x2bd7   :  { %5775 = vmatmul.mubr.msk.f32.vlgmr.msra.gmra.mxu1 %vm2352_vm13, %v6512_v22  ;;  %5821 = vmatprep.subr.mxu1 %v7021_v20  ;;  %v7403_v22 = vld [vmem:[%s8193_s12 + $0x10] sm:$0xff] }
0x2bd8   :  { %5822 = vmatpush3.msra.mxu1 %v7194_v18  ;;  %5853 = vmatprep.mubr.msk.f32.mxu1 %vm6509_vm1, %v7021_v20 }
0x2bd9   :  { %5823 = vmatprep.subr.mxu1 %v7021_v20 }
0x2bda   :  { %5824 = vmatpush3.msra.mxu1 %v7200_v1 }
0x2bdb   :  { %5825 = vmatprep.subr.mxu1 %v7021_v20 }
0x2bdc   :  { %5826 = vmatpush3.msra.mxu1 %v7209_v2 }
0x2bdd   :  { %5827 = vmatprep.subr.mxu1 %v7021_v20 }
0x2bde   :  { %5828 = vmatpush3.msra.mxu1 %v7216_v4 }
0x2bdf   :  { %5829 = vmatprep.subr.mxu1 %v7021_v20 }
0x2be0   :  { %5830 = vmatpush3.msra.mxu1 %v7223_v6 }
0x2be1   :  { %5831 = vmatprep.subr.mxu1 %v7021_v20 }
0x2be2   :  { %5832 = vmatpush3.msra.mxu1 %v7230_v8 }
0x2be3   :  { %5833 = vmatprep.subr.mxu1 %v7021_v20 }
0x2be4   :  { %5834 = vmatpush3.msra.mxu1 %v7237_v10 }
0x2be5   :  { %5835 = vmatprep.subr.mxu1 %v7021_v20 }
0x2be6   :  { %5836 = vmatpush3.msra.mxu1 %v7244_v12 }
0x2be7   :  { %5837 = vmatprep.subr.mxu1 %v7021_v20 }
0x2be8   :  { %5838 = vmatpush3.msra.mxu1 %v7251_v14 }
0x2be9   :  { %5839 = vmatprep.subr.mxu1 %v7021_v20 }
0x2bea   :  { %5840 = vmatpush3.msra.mxu1 %v7258_v15 }
0x2beb   :  { %5841 = vmatprep.subr.mxu1 %v7021_v20 }
0x2bec   :  { %5842 = vmatpush3.msra.mxu1 %v7265_v16 }
0x2bed   :  { %5843 = vmatprep.subr.mxu1 %v7021_v20 }
0x2bee   :  { %5844 = vmatpush3.msra.mxu1 %v7272_v37 }
0x2bef   :  { %5845 = vmatprep.subr.mxu1 %v7021_v20 }
0x2bf0   :  { %5846 = vmatpush3.msra.mxu1 %v7279_v17 }
0x2bf1   :  { %5847 = vmatprep.subr.mxu1 %v7021_v20 }
0x2bf2   :  { %5848 = vmatpush3.msra.mxu1 %v7286_v34 }
0x2bf3   :  { %5849 = vmatprep.subr.mxu1 %v7021_v20 }
0x2bf4   :  { %5850 = vmatpush3.msra.mxu1 %v7293_v19 }
0x2bf5   :  { %5851 = vmatprep.subr.mxu1 %v7021_v20 }
0x2bf6   :  { %5852 = vmatpush3.msra.mxu1 %v7300_v51 }
0x2bf7   :  { %5900 = vmatprep.subr.mxu1 %v7021_v20 }
0x2c77   :  { %v2282_v24 = vpop.f32.mrf.mxu1 }
0x2c78   :  { %v2286_v25 = vadd.f32 %v2282_v24, %v1395_v23  ;;  %v7412_v23 = vld [vmem:[%s8193_s12 + $0x8] sm:$0xff]  ;;  %v7419_v24 = vld [vmem:[%s8193_s12] sm:$0xff] }
0x2c79   :  { %v5730_v52 = vpop.f32.mrf.mxu1 }
0x2c7a   :  { %6350 = vtanh.f32 %v2286_v25  ;;  %v5054_v59 = vmul.f32 -1.442695, %v2286_v25 }
0x2c87   :  { %v6351_v26 = vpop.eup %6350 }
0x2c88   :  { %2296 = vrot.lane.b32.xlu0 %v6351_v26, %s6510_s21 }
0x2c97   :  { %v2493_v28 = vpop.f32.mrf.mxu1 }
0x2c98   :  { %v2494_v29 = vadd.f32 %v2493_v28, %v7179_v31  ;;  %v7431_v28 = vld [vmem:[%s8195_s14] ss:$0 sm:$0xff] }
0x2c99   :  { %v5776_v5 = vpop.f32.mrf.mxu1 }
0x2c9a   :  { %v2503_v32 = vadd.f32 %v7347_v53, %v2494_v29 }
0x2c9c   :  { %6352 = vtanh.f32 %v2503_v32  ;;  %v5059_v9 = vmul.f32 -1.442695, %v2503_v32 }
0x2c9d   :  { %6354 = vpow2.f32 %v5054_v59 }
0x2ca9   :  { %v6353_v60 = vpop.eup %6352 }
0x2caa   :  { %2513 = vrot.lane.b32.xlu1 %v6353_v60, %s6510_s21  ;;  %v6355_v35 = vpop.eup %6354 }
0x2cab   :  { %v2290_v39 = vadd.f32 1.0, %v6355_v35 }
0x2cad   :  { %6356 = vrcp.f32 %v2290_v39 }
0x2cae   :  { %6358 = vpow2.f32 %v5059_v9 }
0x2cba   :  { %v6357_v36 = vpop.eup %6356 }
0x2cbb   :  { %v6359_v44 = vpop.eup %6358  ;;  %v2294_v50 = vmul.f32 %v6357_v36, %v7183_v30 }
0x2cbc   :  { %v2507_v45 = vadd.f32 1.0, %v6359_v44 }
0x2cbe   :  { %6360 = vrcp.f32 %v2507_v45 }
0x2ccb   :  { %v6361_v47 = vpop.eup %6360 }
0x2ccc   :  { %v2511_v56 = vmul.f32 %v6361_v47, %v7083_v38  ;;  %v7378_v38 = vld [vmem:[%s8194_s13 + $0x8] sm:$0xff] }
0x2ccd   :  { %5782 = vmatpush3.msra.mxu0 %v7378_v38 }
0x2cce   :  { %5783 = vmatprep.subr.mxu0 %v7021_v20 }
0x2ccf   :  { %5784 = vmatpush3.msra.mxu0 %v7385_v11 }
0x2cd0   :  { %5788 = vmatprep.subr.mxu0 %v7021_v20 }
0x2cfa   :  { %v2297_v49 = vpop.permute.xlu0 %2296 }
0x2cfb   :  { %v2299_v27 = vmul.f32 %v6357_v36, %v2297_v49 }
0x2cfd   :  { %2301 = vrot.lane.b32.xlu0 %v2299_v27, %s6511_s5 }
0x2d1c   :  { %v2514_v48 = vpop.permute.xlu1 %2513 }
0x2d1d   :  { %v2516_v31 = vmul.f32 %v6361_v47, %v2514_v48  ;;  %v7443_v48 = vld [vmem:[%s8196_s15 + $0x18] sm:$0xff] }
0x2d1f   :  { %2518 = vrot.lane.b32.xlu1 %v2516_v31, %s6511_s5  ;;  %v7448_v31 = vld [vmem:[%s8196_s15 + $0x10] sm:$0xff] }
0x2d6f   :  { %v2302_v54 = vpop.permute.xlu0 %2301 }
0x2d70   :  { %v7355_v55 = vadd.f32 %v2302_v54, %v2294_v50  ;;  %v7455_v50 = vld [vmem:[%s8196_s15 + $0x8] sm:$0xff]  ;;  %v7462_v54 = vld [vmem:[%s8196_s15] sm:$0xff] }
0x2d72   :  { %6362 = vtanh.f32 %v7355_v55 }
0x2d7f   :  { %v6363_v46 = vpop.eup %6362 }
0x2d80   :  { %2307 = vrot.lane.b32.xlu0 %v6363_v46, %s6510_s21 }
0x2d91   :  { %v2519_v7 = vpop.permute.xlu1 %2518 }
0x2d92   :  { %v7360_v57 = vadd.f32 %v2519_v7, %v2511_v56 }
0x2d94   :  { %6364 = vtanh.f32 %v7360_v57 }
0x2da1   :  { %v6365_v30 = vpop.eup %6364 }
0x2da2   :  { %2524 = vrot.lane.b32.xlu1 %v6365_v30, %s6510_s21  ;;  %v7490_v30 = vld [vmem:[%s8198_s17] sm:$0xff] }
0x2df2   :  { %v2308_v61 = vpop.permute.xlu0 %2307 }
0x2df3   :  { %v2310_v63 = vmul.f32 %v6357_v36, %v2308_v61 }
0x2df5   :  { %2529 = vrot.lane.b32.xlu0 %v2310_v63, %s6511_s5 }
0x2e14   :  { %v2525_v3 = vpop.permute.xlu1 %2524 }
0x2e15   :  { %v2527_v0 = vmul.f32 %v6361_v47, %v2525_v3 }
0x2e17   :  { %2604 = vrot.lane.b32.xlu1 %v2527_v0, %s6511_s5 }
0x2e67   :  { %v2530_v21 = vpop.permute.xlu0 %2529 }
0x2e68   :  { %5786 = vmatmul.mubr.msk.f32.vlgmr.msra.gmra.mxu0 %vm293_vm5, %v2530_v21 }
0x2e69   :  { %5789 = vmatpush3.msra.mxu0 %v7397_v33  ;;  %5796 = vmatprep.mubr.msk.f32.mxu0 %vm6509_vm1, %v7021_v20 }
0x2e6a   :  { %5790 = vmatprep.subr.mxu0 %v7021_v20 }
0x2e6b   :  { %5791 = vmatpush3.msra.mxu0 %v7403_v22 }
0x2e6c   :  { %5792 = vmatprep.subr.mxu0 %v7021_v20 }
0x2e6d   :  { %5793 = vmatpush3.msra.mxu0 %v7412_v23 }
0x2e6e   :  { %5794 = vmatprep.subr.mxu0 %v7021_v20 }
0x2e6f   :  { %5795 = vmatpush3.msra.mxu0 %v7419_v24 }
0x2e70   :  { %5799 = vmatprep.subr.mxu0 %v7021_v20 }
0x2e89   :  { %v2605_v25 = vpop.permute.xlu1 %2604 }
0x2e8a   :  { %5797 = vmatmul.mubr.msk.f32.vlgmr.msra.gmra.mxu0 %vm293_vm5, %v2605_v25 }
0x2e8b   :  { %5807 = vmatprep.mubr.msk.f32.mxu0 %vm6509_vm1, %v7021_v20  ;;  %5800 = vmatpush3.msra.mxu0 %v7443_v48 }
0x2e8c   :  { %5801 = vmatprep.subr.mxu0 %v7021_v20 }
0x2e8d   :  { %5802 = vmatpush3.msra.mxu0 %v7448_v31 }
0x2e8e   :  { %5803 = vmatprep.subr.mxu0 %v7021_v20 }
0x2e8f   :  { %5804 = vmatpush3.msra.mxu0 %v7455_v50 }
0x2e90   :  { %5805 = vmatprep.subr.mxu0 %v7021_v20 }
0x2e91   :  { %5806 = vmatpush3.msra.mxu0 %v7462_v54 }
0x2e92   :  { %5810 = vmatprep.subr.mxu0 %v7021_v20 }
0x2f28   :  { %v2599_v52 = vpop.f32.mrf.mxu0 }
0x2f2a   :  { %v5787_v26 = vpop.f32.mrf.mxu0 }
0x2f2b   :  { %v5068_v26 = vld [vmem:[%s8183_s2 + $0x8] sm:$0xff] }
0x2f4a   :  { %v2674_v29 = vpop.f32.mrf.mxu0 }
0x2f4b   :  { %v2675_v5 = vadd.f32 %v2674_v29, %v2599_v52  ;;  %v7523_v29 = vcvt.s32.f32 %v6678_v13 }
0x2f4c   :  { %v5798_v32 = vpop.f32.mrf.mxu0 }
0x2f4d   :  { %v2684_v60 = vadd.f32 %v7431_v28, %v2675_v5 }
0x2f4f   :  { %6366 = vtanh.f32 %v2684_v60  ;;  %v5063_v35 = vmul.f32 -1.442695, %v2684_v60 }
0x2f51   :  { %6368 = vpow2.f32 %v5063_v35 }
0x2f5c   :  { %v6367_v59 = vpop.eup %6366 }
0x2f5d   :  { %2694 = vrot.lane.b32.xlu0 %v6367_v59, %s6510_s21  ;;  %v2813_v59 = vstv %s2812_s23 }
0x2f5e   :  { %v6369_v39 = vpop.eup %6368 }
0x2f5f   :  { %v2688_v9 = vadd.f32 1.0, %v6369_v39  ;;  %v2816_v39 = vstv %s2815_s24 }
0x2f61   :  { %6370 = vrcp.f32 %v2688_v9 }
0x2f6e   :  { %v6371_v36 = vpop.eup %6370 }
0x2f6f   :  { %v2692_v44 = vmul.f32 %v6371_v36, %v7355_v55 }
0x2fcf   :  { %v2695_v49 = vpop.permute.xlu0 %2694 }
0x2fd0   :  { %v2697_v27 = vmul.f32 %v6371_v36, %v2695_v49 }
0x2fd2   :  { %2699 = vrot.lane.b32.xlu1 %v2697_v27, %s6511_s5 }
0x3044   :  { %v2700_v45 = vpop.permute.xlu1 %2699 }
0x3045   :  { %v7437_v47 = vadd.f32 %v2700_v45, %v2692_v44 }
0x3047   :  { %6372 = vtanh.f32 %v7437_v47 }
0x3054   :  { %v6373_v55 = vpop.eup %6372 }
0x3055   :  { %2705 = vrot.lane.b32.xlu0 %v6373_v55, %s6510_s21 }
0x30c7   :  { %v2706_v46 = vpop.permute.xlu0 %2705 }
0x30c8   :  { %v2708_v56 = vmul.f32 %v6371_v36, %v2706_v46 }
0x30ca   :  { %2716 = vrot.lane.b32.xlu1 %v2708_v56, %s6511_s5 }
0x313c   :  { %v2717_v7 = vpop.permute.xlu1 %2716 }
0x313d   :  { %5808 = vmatmul.mubr.msk.f32.vlgmr.msra.gmra.mxu0 %vm293_vm5, %v2717_v7 }
0x313e   :  { %5811 = vmatpush3.msra.mxu0 %v7145_v40  ;;  %5818 = vmatprep.mubr.msk.f32.mxu0 %vm6509_vm1, %v7021_v20 }
0x313f   :  { %5812 = vmatprep.subr.mxu0 %v7021_v20 }
0x3140   :  { %5813 = vmatpush3.msra.mxu0 %v7151_v41 }
0x3141   :  { %5814 = vmatprep.subr.mxu0 %v7021_v20 }
0x3142   :  { %5815 = vmatpush3.msra.mxu0 %v7160_v42 }
0x3143   :  { %5816 = vmatprep.subr.mxu0 %v7021_v20 }
0x3144   :  { %5817 = vmatpush3.msra.mxu0 %v7167_v43 }
0x3145   :  { %5819 = vmatmul.mubr.msk.f32.vlgmr.msra.gmra.mxu0 %vm293_vm5, %v2605_v25  ;;  %5856 = vmatprep.subr.mxu0 %v7021_v20 }
0x3146   :  { %5857 = vmatpush3.msra.mxu0 %v7366_v58  ;;  %5864 = vmatprep.mubr.msk.f32.mxu0 %vm6509_vm1, %v7021_v20 }
0x3147   :  { %5858 = vmatprep.subr.mxu0 %v7021_v20  ;;  %v7511_v20 = vld [vmem:[%s8197_s16] ss:$0 sm:$0xff] }
0x3148   :  { %5859 = vmatpush3.msra.mxu0 %v7371_v62 }
0x3149   :  { %5860 = vmatprep.subr.mxu0 %v7490_v30 }
0x314a   :  { %5861 = vmatpush3.msra.mxu0 %v7378_v38 }
0x314b   :  { %5862 = vmatprep.subr.mxu0 %v7490_v30 }
0x314c   :  { %5863 = vmatpush3.msra.mxu0 %v7385_v11 }
0x314d   :  { %5865 = vmatmul.mubr.msk.f32.vlgmr.msra.gmra.mxu0 %vm293_vm5, %v2717_v7  ;;  %5867 = vmatprep.subr.mxu0 %v7490_v30 }
0x314e   :  { %5868 = vmatpush3.msra.mxu0 %v7397_v33  ;;  %5875 = vmatprep.mubr.msk.f32.mxu0 %vm6509_vm1, %v7490_v30 }
0x314f   :  { %5869 = vmatprep.subr.mxu0 %v7490_v30 }
0x3150   :  { %5870 = vmatpush3.msra.mxu0 %v7403_v22 }
0x3151   :  { %5871 = vmatprep.subr.mxu0 %v7490_v30 }
0x3152   :  { %5872 = vmatpush3.msra.mxu0 %v7412_v23 }
0x3153   :  { %5873 = vmatprep.subr.mxu0 %v7490_v30 }
0x3154   :  { %5874 = vmatpush3.msra.mxu0 %v7419_v24 }
0x3155   :  { %5878 = vmatprep.subr.mxu0 %v7490_v30 }
0x31fd   :  { %v2786_v61 = vpop.f32.mrf.mxu0 }
0x31fe   :  { %v2787_v63 = vadd.f32 %v7511_v20, %v2786_v61 }
0x31ff   :  { %v5809_v3 = vpop.f32.mrf.mxu0 }
0x3200   :  { %5066 = vst [vmem:[%s8198_s17 + $0x8] sm:$0xff] %v2787_v63  ;;  %2792 = vmax.xlane.f32.xlu0 %v2787_v63 }
0x3205   :  { %v2885_v0 = vpop.f32.mrf.mxu0 }
0x3207   :  { %v5820_v21 = vpop.f32.mrf.mxu0 }
0x320d   :  { %v7517_v25 = vpop.f32.mrf.mxu0 }
0x320f   :  { %v5866_v52 = vpop.f32.mrf.mxu0 }
0x3216   :  { %2804 = vperm.xlu0 %6212, %v5068_v26  }
0x3289   :  { %v2793_v5 = vpop.xlane.xlu0 %2792 }
0x328a   :  { %vm2794_vm14 = vcmp.ge.f32.partialorder %v2787_v63, %v2793_v5 }
0x328b   :  { %v2795_v32 = vsel %vm2794_vm14, %v7523_v29, 128.0 }
0x328c   :  { %2796 = vmin.xlane.f32.xlu1 %v2795_v32 }
0x3291   :  { %v2805_v60 = vpop.permute.xlu0 %2804 }
0x3292   :  { %vm2806_vm15 = vcmp.eq.s32.totalorder %v6678_v13, %v2805_v60 }
0x3293   :  { %v5069_v35 = vsel %vm2806_vm15, 1.0, %v7490_v30 }
0x3294   :  { %v2814_v49 = vmul.f32 %v5069_v35, %v2813_v59 }
0x3315   :  { %v2797_v9 = vpop.xlane.xlu1 %2796 }
0x3316   :  { %vm2798_vm0 = vcmp.eq.f32.partialorder %v7523_v29, %v2797_v9 }
0x3317   :  { %v5067_v36 = vsel %vm2798_vm0, 1.0, %v7490_v30 }
0x3318   :  { %v2817_v27 = vmul.f32 %v5067_v36, %v2816_v39 }
0x331a   :  { %v2818_v44 = vadd.f32 %v2817_v27, %v2814_v49 }
0x331c   :  { %5854 = vmatmul.mubr.f32.vlgmr.msra.gmra.mxu1 %v2818_v44 }
0x331d   :  { %5901 = vmatpush3.msra.mxu1 %v7194_v18  ;;  %5932 = vmatprep.mubr.msk.f32.mxu1 %vm6509_vm1, %v7490_v30 }
0x331e   :  { %5902 = vmatprep.subr.mxu1 %v7490_v30 }
0x331f   :  { %5903 = vmatpush3.msra.mxu1 %v7200_v1 }
0x3320   :  { %5904 = vmatprep.subr.mxu1 %v7490_v30 }
0x3321   :  { %5905 = vmatpush3.msra.mxu1 %v7209_v2 }
0x3322   :  { %5906 = vmatprep.subr.mxu1 %v7490_v30 }
0x3323   :  { %5907 = vmatpush3.msra.mxu1 %v7216_v4 }
0x3324   :  { %5908 = vmatprep.subr.mxu1 %v7490_v30 }
0x3325   :  { %5909 = vmatpush3.msra.mxu1 %v7223_v6 }
0x3326   :  { %5910 = vmatprep.subr.mxu1 %v7490_v30 }
0x3327   :  { %5911 = vmatpush3.msra.mxu1 %v7230_v8 }
0x3328   :  { %5912 = vmatprep.subr.mxu1 %v7490_v30 }
0x3329   :  { %5913 = vmatpush3.msra.mxu1 %v7237_v10 }
0x332a   :  { %5914 = vmatprep.subr.mxu1 %v7490_v30 }
0x332b   :  { %5915 = vmatpush3.msra.mxu1 %v7244_v12 }
0x332c   :  { %5916 = vmatprep.subr.mxu1 %v7490_v30 }
0x332d   :  { %5917 = vmatpush3.msra.mxu1 %v7251_v14 }
0x332e   :  { %5918 = vmatprep.subr.mxu1 %v7490_v30 }
0x332f   :  { %5919 = vmatpush3.msra.mxu1 %v7258_v15 }
0x3330   :  { %5920 = vmatprep.subr.mxu1 %v7490_v30 }
0x3331   :  { %5921 = vmatpush3.msra.mxu1 %v7265_v16 }
0x3332   :  { %5922 = vmatprep.subr.mxu1 %v7490_v30 }
0x3333   :  { %5923 = vmatpush3.msra.mxu1 %v7272_v37 }
0x3334   :  { %5924 = vmatprep.subr.mxu1 %v7490_v30 }
0x3335   :  { %5925 = vmatpush3.msra.mxu1 %v7279_v17 }
0x3336   :  { %5926 = vmatprep.subr.mxu1 %v7490_v30 }
0x3337   :  { %5927 = vmatpush3.msra.mxu1 %v7286_v34 }
0x3338   :  { %5928 = vmatprep.subr.mxu1 %v7490_v30 }
0x3339   :  { %5929 = vmatpush3.msra.mxu1 %v7293_v19 }
0x333a   :  { %5930 = vmatprep.subr.mxu1 %v7490_v30 }
0x333b   :  { %5931 = vmatpush3.msra.mxu1 %v7300_v51 }
0x333c   :  { %5979 = vmatprep.subr.mxu1 %v7490_v30 }
0x33dc   :  { %v2955_v45 = vpop.f32.mrf.mxu1 }
0x33dd   :  { %v2956_v55 = vadd.f32 %v2955_v45, %v2885_v0 }
0x33de   :  { %v5855_v46 = vpop.f32.mrf.mxu1 }
0x33df   :  { %v2959_v56 = vadd.f32 %v7347_v53, %v2956_v55 }
0x33e1   :  { %6374 = vtanh.f32 %v2959_v56  ;;  %v5072_v61 = vmul.f32 -1.442695, %v2959_v56 }
0x33e3   :  { %6376 = vpow2.f32 %v5072_v61 }
0x33ee   :  { %v6375_v7 = vpop.eup %6374 }
0x33ef   :  { %2969 = vrot.lane.b32.xlu1 %v6375_v7, %s6510_s21 }
0x33f0   :  { %v6377_v63 = vpop.eup %6376 }
0x33f1   :  { %v2963_v3 = vadd.f32 1.0, %v6377_v63 }
0x33f3   :  { %6378 = vrcp.f32 %v2963_v3 }
0x3400   :  { %v6379_v21 = vpop.eup %6378 }
0x3401   :  { %v2967_v5 = vmul.f32 %v6379_v21, %v7360_v57 }
0x3461   :  { %v2970_v52 = vpop.permute.xlu1 %2969 }
0x3462   :  { %v2972_v26 = vmul.f32 %v6379_v21, %v2970_v52 }
0x3464   :  { %2974 = vrot.lane.b32.xlu0 %v2972_v26, %s6511_s5 }
0x34d6   :  { %v2975_v0 = vpop.permute.xlu0 %2974 }
0x34d7   :  { %v7568_v32 = vadd.f32 %v2975_v0, %v2967_v5 }
0x34d9   :  { %6380 = vtanh.f32 %v7568_v32 }
0x34e6   :  { %v6381_v60 = vpop.eup %6380 }
0x34e7   :  { %2980 = vrot.lane.b32.xlu1 %v6381_v60, %s6510_s21 }
0x3559   :  { %v2981_v59 = vpop.permute.xlu1 %2980 }
0x355a   :  { %v2983_v35 = vmul.f32 %v6379_v21, %v2981_v59 }
0x355c   :  { %3055 = vrot.lane.b32.xlu0 %v2983_v35, %s6511_s5  ;;  %v5079_v35 = vld [vmem:[%s8183_s2 + $0x10] sm:$0xff] }
0x35ce   :  { %v3056_v39 = vpop.permute.xlu0 %3055 }
0x35cf   :  { %5876 = vmatmul.mubr.msk.f32.vlgmr.msra.gmra.mxu0 %vm293_vm5, %v3056_v39 }
0x35d0   :  { %5879 = vmatpush3.msra.mxu0 %v7443_v48  ;;  %5886 = vmatprep.mubr.msk.f32.mxu0 %vm6509_vm1, %v7490_v30 }
0x35d1   :  { %5880 = vmatprep.subr.mxu0 %v7490_v30 }
0x35d2   :  { %5881 = vmatpush3.msra.mxu0 %v7448_v31 }
0x35d3   :  { %5882 = vmatprep.subr.mxu0 %v7490_v30 }
0x35d4   :  { %5883 = vmatpush3.msra.mxu0 %v7455_v50 }
0x35d5   :  { %5884 = vmatprep.subr.mxu0 %v7490_v30 }
0x35d6   :  { %5885 = vmatpush3.msra.mxu0 %v7462_v54 }
0x35d7   :  { %5889 = vmatprep.subr.mxu0 %v7490_v30 }
0x368f   :  { %v3125_v57 = vpop.f32.mrf.mxu0 }
0x3690   :  { %v3126_v9 = vadd.f32 %v3125_v57, %v7517_v25  ;;  %v3255_v57 = vstv %s3254_s19 }
0x3691   :  { %v5877_v36 = vpop.f32.mrf.mxu0 }
0x3692   :  { %v3129_v49 = vadd.f32 %v7431_v28, %v3126_v9  ;;  %v3252_v36 = vstv %s3251_s18 }
0x3694   :  { %6382 = vtanh.f32 %v3129_v49  ;;  %v5075_v44 = vmul.f32 -1.442695, %v3129_v49 }
0x3696   :  { %6384 = vpow2.f32 %v5075_v44 }
0x36a1   :  { %v6383_v27 = vpop.eup %6382 }
0x36a2   :  { %3139 = vrot.lane.b32.xlu1 %v6383_v27, %s6510_s21 }
0x36a3   :  { %v6385_v45 = vpop.eup %6384 }
0x36a4   :  { %v3133_v55 = vadd.f32 1.0, %v6385_v45 }
0x36a6   :  { %6386 = vrcp.f32 %v3133_v55 }
0x36b3   :  { %v6387_v46 = vpop.eup %6386 }
0x36b4   :  { %v3137_v61 = vmul.f32 %v6387_v46, %v7437_v47 }
0x3714   :  { %v3140_v56 = vpop.permute.xlu1 %3139 }
0x3715   :  { %v3142_v7 = vmul.f32 %v6387_v46, %v3140_v56 }
0x3717   :  { %3144 = vrot.lane.b32.xlu0 %v3142_v7, %s6511_s5 }
0x3789   :  { %v3145_v25 = vpop.permute.xlu0 %3144 }
0x378a   :  { %v7589_v63 = vadd.f32 %v3145_v25, %v3137_v61 }
0x378c   :  { %6388 = vtanh.f32 %v7589_v63 }
0x3799   :  { %v6389_v3 = vpop.eup %6388 }
0x379a   :  { %3150 = vrot.lane.b32.xlu1 %v6389_v3, %s6510_s21 }
0x380c   :  { %v3151_v21 = vpop.permute.xlu1 %3150 }
0x380d   :  { %v3153_v52 = vmul.f32 %v6387_v46, %v3151_v21 }
0x380f   :  { %3155 = vrot.lane.b32.xlu0 %v3153_v52, %s6511_s5 }
0x3881   :  { %v3156_v26 = vpop.permute.xlu0 %3155 }
0x3882   :  { %5887 = vmatmul.mubr.msk.f32.vlgmr.msra.gmra.mxu0 %vm293_vm5, %v3156_v26 }
0x3883   :  { %5890 = vmatpush3.msra.mxu0 %v7145_v40  ;;  %5897 = vmatprep.mubr.msk.f32.mxu0 %vm6509_vm1, %v7490_v30 }
0x3884   :  { %5891 = vmatprep.subr.mxu0 %v7490_v30 }
0x3885   :  { %5892 = vmatpush3.msra.mxu0 %v7151_v41 }
0x3886   :  { %5893 = vmatprep.subr.mxu0 %v7490_v30 }
0x3887   :  { %5894 = vmatpush3.msra.mxu0 %v7160_v42 }
0x3888   :  { %5895 = vmatprep.subr.mxu0 %v7490_v30 }
0x3889   :  { %5896 = vmatpush3.msra.mxu0 %v7167_v43 }
0x388a   :  { %5898 = vmatmul.mubr.msk.f32.vlgmr.msra.gmra.mxu0 %vm293_vm5, %v3056_v39  ;;  %5935 = vmatprep.subr.mxu0 %v7490_v30 }
0x388b   :  { %5936 = vmatpush3.msra.mxu0 %v7366_v58  ;;  %5943 = vmatprep.mubr.msk.f32.mxu0 %vm6509_vm1, %v7490_v30 }
0x388c   :  { %5937 = vmatprep.subr.mxu0 %v7490_v30 }
0x388d   :  { %5938 = vmatpush3.msra.mxu0 %v7371_v62 }
0x388e   :  { %5939 = vmatprep.subr.mxu0 %v7490_v30 }
0x388f   :  { %5940 = vmatpush3.msra.mxu0 %v7378_v38 }
0x3890   :  { %5941 = vmatprep.subr.mxu0 %v7490_v30 }
0x3891   :  { %5942 = vmatpush3.msra.mxu0 %v7385_v11 }
0x3892   :  { %5944 = vmatmul.mubr.msk.f32.vlgmr.msra.gmra.mxu0 %vm293_vm5, %v3156_v26  ;;  %5946 = vmatprep.subr.mxu0 %v7490_v30 }
0x3893   :  { %5947 = vmatpush3.msra.mxu0 %v7397_v33  ;;  %5954 = vmatprep.mubr.msk.f32.mxu0 %vm6509_vm1, %v7490_v30 }
0x3894   :  { %5948 = vmatprep.subr.mxu0 %v7490_v30 }
0x3895   :  { %5949 = vmatpush3.msra.mxu0 %v7403_v22 }
0x3896   :  { %5950 = vmatprep.subr.mxu0 %v7490_v30 }
0x3897   :  { %5951 = vmatpush3.msra.mxu0 %v7412_v23 }
0x3898   :  { %5952 = vmatprep.subr.mxu0 %v7490_v30 }
0x3899   :  { %5953 = vmatpush3.msra.mxu0 %v7419_v24 }
0x389a   :  { %5957 = vmatprep.subr.mxu0 %v7490_v30 }
0x3942   :  { %v3225_v40 = vpop.f32.mrf.mxu0 }
0x3943   :  { %v3226_v41 = vadd.f32 %v7511_v20, %v3225_v40 }
0x3944   :  { %v5888_v42 = vpop.f32.mrf.mxu0 }
0x3945   :  { %5077 = vst [vmem:[%s8198_s17 + $0x10] sm:$0xff] %v3226_v41  ;;  %3231 = vmax.xlane.f32.xlu1 %v3226_v41 }
0x394a   :  { %v3324_v43 = vpop.f32.mrf.mxu0 }
0x394c   :  { %v5899_v47 = vpop.f32.mrf.mxu0 }
0x3952   :  { %v7631_v5 = vpop.f32.mrf.mxu0 }
0x3954   :  { %v5945_v0 = vpop.f32.mrf.mxu0 }
0x39ce   :  { %v3232_v60 = vpop.xlane.xlu1 %3231 }
0x39cf   :  { %vm3233_vm2 = vcmp.ge.f32.partialorder %v3226_v41, %v3232_v60 }
0x39d0   :  { %v3234_v59 = vsel %vm3233_vm2, %v7523_v29, 128.0 }
0x39d1   :  { %3235 = vmin.xlane.f32.xlu0 %v3234_v59 }
0x39e7   :  { %3243 = vperm.xlu0 %6212, %v5079_v35   ;;  %v7709_v35 = vld [vmem:[%s8191_s10 + $0x18] sm:$0xff] }
0x3a5a   :  { %v3236_v39 = vpop.xlane.xlu0 %3235 }
0x3a5b   :  { %vm3237_vm3 = vcmp.eq.f32.partialorder %v7523_v29, %v3236_v39  ;;  %v7725_v39 = vld [vmem:[%s8191_s10 + $0x8] sm:$0xff] }
0x3a5c   :  { %v5078_v9 = vsel %vm3237_vm3, 1.0, %v7490_v30 }
0x3a5d   :  { %v3256_v44 = vmul.f32 %v5078_v9, %v3255_v57  ;;  %v7732_v57 = vld [vmem:[%s8191_s10] sm:$0xff] }
0x3a62   :  { %v3244_v49 = vpop.permute.xlu0 %3243 }
0x3a63   :  { %vm3245_vm4 = vcmp.eq.s32.totalorder %v6678_v13, %v3244_v49 }
0x3a64   :  { %v5080_v27 = vsel %vm3245_vm4, 1.0, %v7490_v30 }
0x3a65   :  { %v3253_v45 = vmul.f32 %v5080_v27, %v3252_v36  ;;  %v3691_v27 = vstv %s3690_s28 }
0x3a67   :  { %v3257_v55 = vadd.f32 %v3256_v44, %v3253_v45  ;;  %v3694_v45 = vstv %s3693_s6 }
0x3a69   :  { %5933 = vmatmul.mubr.f32.vlgmr.msra.gmra.mxu1 %v3257_v55 }
0x3a6a   :  { %5980 = vmatpush3.msra.mxu1 %v7194_v18  ;;  %6011 = vmatprep.mubr.msk.f32.mxu1 %vm6509_vm1, %v7490_v30 }
0x3a6b   :  { %5981 = vmatprep.subr.mxu1 %v7490_v30 }
0x3a6c   :  { %5982 = vmatpush3.msra.mxu1 %v7200_v1 }
0x3a6d   :  { %5983 = vmatprep.subr.mxu1 %v7490_v30 }
0x3a6e   :  { %5984 = vmatpush3.msra.mxu1 %v7209_v2 }
0x3a6f   :  { %5985 = vmatprep.subr.mxu1 %v7490_v30 }
0x3a70   :  { %5986 = vmatpush3.msra.mxu1 %v7216_v4 }
0x3a71   :  { %5987 = vmatprep.subr.mxu1 %v7490_v30 }
0x3a72   :  { %5988 = vmatpush3.msra.mxu1 %v7223_v6 }
0x3a73   :  { %5989 = vmatprep.subr.mxu1 %v7490_v30 }
0x3a74   :  { %5990 = vmatpush3.msra.mxu1 %v7230_v8 }
0x3a75   :  { %5991 = vmatprep.subr.mxu1 %v7490_v30 }
0x3a76   :  { %5992 = vmatpush3.msra.mxu1 %v7237_v10 }
0x3a77   :  { %5993 = vmatprep.subr.mxu1 %v7490_v30 }
0x3a78   :  { %5994 = vmatpush3.msra.mxu1 %v7244_v12 }
0x3a79   :  { %5995 = vmatprep.subr.mxu1 %v7490_v30 }
0x3a7a   :  { %5996 = vmatpush3.msra.mxu1 %v7251_v14 }
0x3a7b   :  { %5997 = vmatprep.subr.mxu1 %v7490_v30 }
0x3a7c   :  { %5998 = vmatpush3.msra.mxu1 %v7258_v15 }
0x3a7d   :  { %5999 = vmatprep.subr.mxu1 %v7490_v30 }
0x3a7e   :  { %6000 = vmatpush3.msra.mxu1 %v7265_v16 }
0x3a7f   :  { %6001 = vmatprep.subr.mxu1 %v7490_v30 }
0x3a80   :  { %6002 = vmatpush3.msra.mxu1 %v7272_v37 }
0x3a81   :  { %6003 = vmatprep.subr.mxu1 %v7490_v30 }
0x3a82   :  { %6004 = vmatpush3.msra.mxu1 %v7279_v17 }
0x3a83   :  { %6005 = vmatprep.subr.mxu1 %v7490_v30 }
0x3a84   :  { %6006 = vmatpush3.msra.mxu1 %v7286_v34 }
0x3a85   :  { %6007 = vmatprep.subr.mxu1 %v7490_v30 }
0x3a86   :  { %6008 = vmatpush3.msra.mxu1 %v7293_v19 }
0x3a87   :  { %6009 = vmatprep.subr.mxu1 %v7490_v30 }
0x3a88   :  { %6010 = vmatpush3.msra.mxu1 %v7300_v51 }
0x3a89   :  { %6058 = vmatprep.subr.mxu1 %v7490_v30 }
0x3b29   :  { %v3394_v18 = vpop.f32.mrf.mxu1 }
0x3b2a   :  { %v3395_v1 = vadd.f32 %v3394_v18, %v3324_v43 }
0x3b2b   :  { %v5934_v2 = vpop.f32.mrf.mxu1 }
0x3b2c   :  { %v3398_v4 = vadd.f32 %v7347_v53, %v3395_v1 }
0x3b2e   :  { %6390 = vtanh.f32 %v3398_v4  ;;  %v5083_v8 = vmul.f32 -1.442695, %v3398_v4 }
0x3b30   :  { %6392 = vpow2.f32 %v5083_v8  ;;  %v7786_v8 = vld [vmem:[%s8190_s9 + $0x70] sm:$0xff] }
0x3b3b   :  { %v6391_v6 = vpop.eup %6390 }
0x3b3c   :  { %3408 = vrot.lane.b32.xlu1 %v6391_v6, %s6510_s21  ;;  %v7777_v6 = vld [vmem:[%s8190_s9 + $0x78] sm:$0xff] }
0x3b3d   :  { %v6393_v10 = vpop.eup %6392 }
0x3b3e   :  { %v3402_v12 = vadd.f32 1.0, %v6393_v10  ;;  %v7793_v10 = vld [vmem:[%s8190_s9 + $0x68] sm:$0xff] }
0x3b40   :  { %6394 = vrcp.f32 %v3402_v12  ;;  %v7800_v12 = vld [vmem:[%s8190_s9 + $0x60] sm:$0xff] }
0x3b4d   :  { %v6395_v14 = vpop.eup %6394 }
0x3b4e   :  { %v3406_v37 = vmul.f32 %v6395_v14, %v7568_v32 }
0x3bae   :  { %v3409_v15 = vpop.permute.xlu1 %3408 }
0x3baf   :  { %v3411_v16 = vmul.f32 %v6395_v14, %v3409_v15  ;;  %v7814_v15 = vld [vmem:[%s8190_s9 + $0x50] sm:$0xff] }
0x3bb1   :  { %3413 = vrot.lane.b32.xlu1 %v3411_v16, %s6511_s5  ;;  %v7821_v16 = vld [vmem:[%s8190_s9 + $0x48] sm:$0xff] }
0x3c23   :  { %v3414_v17 = vpop.permute.xlu1 %3413 }
0x3c24   :  { %v7679_v34 = vadd.f32 %v3414_v17, %v3406_v37  ;;  %v7828_v37 = vld [vmem:[%s8190_s9 + $0x40] sm:$0xff]  ;;  %v7835_v17 = vld [vmem:[%s8190_s9 + $0x38] sm:$0xff] }
0x3c26   :  { %6396 = vtanh.f32 %v7679_v34 }
0x3c33   :  { %v6397_v19 = vpop.eup %6396 }
0x3c34   :  { %3419 = vrot.lane.b32.xlu0 %v6397_v19, %s6510_s21  ;;  %v7842_v19 = vld [vmem:[%s8190_s9 + $0x30] sm:$0xff] }
0x3ca6   :  { %v3420_v51 = vpop.permute.xlu0 %3419 }
0x3ca7   :  { %v3422_v53 = vmul.f32 %v6395_v14, %v3420_v51  ;;  %v7807_v14 = vld [vmem:[%s8190_s9 + $0x58] sm:$0xff]  ;;  %v7849_v51 = vld [vmem:[%s8190_s9 + $0x28] sm:$0xff] }
0x3ca9   :  { %3494 = vrot.lane.b32.xlu1 %v3422_v53, %s6511_s5  ;;  %v7856_v53 = vld [vmem:[%s8190_s9 + $0x20] sm:$0xff] }
0x3d1b   :  { %v3495_v46 = vpop.permute.xlu1 %3494 }
0x3d1c   :  { %5955 = vmatmul.mubr.msk.f32.vlgmr.msra.gmra.mxu0 %vm293_vm5, %v3495_v46 }
0x3d1d   :  { %5958 = vmatpush3.msra.mxu0 %v7443_v48  ;;  %5965 = vmatprep.mubr.msk.f32.mxu0 %vm6509_vm1, %v7490_v30 }
0x3d1e   :  { %5959 = vmatprep.subr.mxu0 %v7490_v30 }
0x3d1f   :  { %5960 = vmatpush3.msra.mxu0 %v7448_v31 }
0x3d20   :  { %5961 = vmatprep.subr.mxu0 %v7490_v30 }
0x3d21   :  { %5962 = vmatpush3.msra.mxu0 %v7455_v50 }
0x3d22   :  { %5963 = vmatprep.subr.mxu0 %v7490_v30 }
0x3d23   :  { %5964 = vmatpush3.msra.mxu0 %v7462_v54 }
0x3d24   :  { %5968 = vmatprep.subr.mxu0 %v7490_v30 }
0x3ddc   :  { %v3564_v32 = vpop.f32.mrf.mxu0 }
0x3ddd   :  { %v3565_v56 = vadd.f32 %v3564_v32, %v7631_v5  ;;  %v7870_v32 = vld [vmem:[%s8190_s9 + $0x10] sm:$0xff] }
0x3dde   :  { %v5956_v7 = vpop.f32.mrf.mxu0 }
0x3ddf   :  { %v3568_v61 = vadd.f32 %v7431_v28, %v3565_v56  ;;  %v7877_v56 = vld [vmem:[%s8190_s9 + $0x8] sm:$0xff]  ;;  %v7884_v7 = vld [vmem:[%s8190_s9] sm:$0xff] }
0x3de1   :  { %6398 = vtanh.f32 %v3568_v61  ;;  %v5086_v3 = vmul.f32 -1.442695, %v3568_v61 }
0x3de3   :  { %6400 = vpow2.f32 %v5086_v3 }
0x3dee   :  { %v6399_v25 = vpop.eup %6398 }
0x3def   :  { %3578 = vrot.lane.b32.xlu0 %v6399_v25, %s6510_s21 }
0x3df0   :  { %v6401_v21 = vpop.eup %6400 }
0x3df1   :  { %v3572_v52 = vadd.f32 1.0, %v6401_v21  ;;  %v7892_v21 = vld [vmem:[%s8206_s25] ss:$0 sm:$0xff] }
0x3df3   :  { %6402 = vrcp.f32 %v3572_v52 }
0x3e00   :  { %v6403_v26 = vpop.eup %6402 }
0x3e01   :  { %v3576_v42 = vmul.f32 %v6403_v26, %v7589_v63  ;;  %v7718_v63 = vld [vmem:[%s8191_s10 + $0x10] sm:$0xff]  ;;  %s4129_s10 = scvt.s32.f32 %s4128_s30 }
0x3e03   :  { %s4132_s22 = ssub.f32 1.0, %s4129_s10 }
0x3e61   :  { %v3579_v40 = vpop.permute.xlu0 %3578 }
0x3e62   :  { %v3581_v41 = vmul.f32 %v6403_v26, %v3579_v40 }
0x3e64   :  { %3583 = vrot.lane.b32.xlu1 %v3581_v41, %s6511_s5 }
0x3ed6   :  { %v3584_v43 = vpop.permute.xlu1 %3583 }
0x3ed7   :  { %v7700_v47 = vadd.f32 %v3584_v43, %v3576_v42 }
0x3ed9   :  { %6404 = vtanh.f32 %v7700_v47 }
0x3ee6   :  { %v6405_v5 = vpop.eup %6404 }
0x3ee7   :  { %3589 = vrot.lane.b32.xlu0 %v6405_v5, %s6510_s21 }
0x3f59   :  { %v3590_v0 = vpop.permute.xlu0 %3589 }
0x3f5a   :  { %v3592_v60 = vmul.f32 %v6403_v26, %v3590_v0 }
0x3f5c   :  { %3594 = vrot.lane.b32.xlu1 %v3592_v60, %s6511_s5 }
0x3fce   :  { %v3595_v59 = vpop.permute.xlu1 %3594 }
0x3fcf   :  { %5966 = vmatmul.mubr.msk.f32.vlgmr.msra.gmra.mxu0 %vm293_vm5, %v3595_v59 }
0x3fd0   :  { %5969 = vmatpush3.msra.mxu0 %v7709_v35  ;;  %5976 = vmatprep.mubr.msk.f32.mxu0 %vm6509_vm1, %v7490_v30 }
0x3fd1   :  { %5970 = vmatprep.subr.mxu0 %v7490_v30 }
0x3fd2   :  { %5971 = vmatpush3.msra.mxu0 %v7718_v63 }
0x3fd3   :  { %5972 = vmatprep.subr.mxu0 %v7490_v30 }
0x3fd4   :  { %5973 = vmatpush3.msra.mxu0 %v7725_v39 }
0x3fd5   :  { %5974 = vmatprep.subr.mxu0 %v7490_v30 }
0x3fd6   :  { %5975 = vmatpush3.msra.mxu0 %v7732_v57 }
0x3fd7   :  { %5977 = vmatmul.mubr.msk.f32.vlgmr.msra.gmra.mxu0 %vm293_vm5, %v3495_v46  ;;  %6014 = vmatprep.subr.mxu0 %v7490_v30  ;;  %v7863_v46 = vld [vmem:[%s8190_s9 + $0x18] sm:$0xff] }
0x3fd8   :  { %6015 = vmatpush3.msra.mxu0 %v7366_v58  ;;  %6022 = vmatprep.mubr.msk.f32.mxu0 %vm6509_vm1, %v7490_v30 }
0x3fd9   :  { %6016 = vmatprep.subr.mxu0 %v7490_v30 }
0x3fda   :  { %6017 = vmatpush3.msra.mxu0 %v7371_v62 }
0x3fdb   :  { %6018 = vmatprep.subr.mxu0 %v7490_v30 }
0x3fdc   :  { %6019 = vmatpush3.msra.mxu0 %v7378_v38 }
0x3fdd   :  { %6020 = vmatprep.subr.mxu0 %v7490_v30 }
0x3fde   :  { %6021 = vmatpush3.msra.mxu0 %v7385_v11 }
0x3fdf   :  { %6023 = vmatmul.mubr.msk.f32.vlgmr.msra.gmra.mxu0 %vm293_vm5, %v3595_v59  ;;  %6025 = vmatprep.subr.mxu0 %v7490_v30 }
0x3fe0   :  { %6026 = vmatpush3.msra.mxu0 %v7397_v33  ;;  %6033 = vmatprep.mubr.msk.f32.mxu0 %vm6509_vm1, %v7490_v30 }
0x3fe1   :  { %6027 = vmatprep.subr.mxu0 %v7490_v30 }
0x3fe2   :  { %6028 = vmatpush3.msra.mxu0 %v7403_v22 }
0x3fe3   :  { %6029 = vmatprep.subr.mxu0 %v7490_v30 }
0x3fe4   :  { %6030 = vmatpush3.msra.mxu0 %v7412_v23 }
0x3fe5   :  { %6031 = vmatprep.subr.mxu0 %v7490_v30 }
0x3fe6   :  { %6032 = vmatpush3.msra.mxu0 %v7419_v24  ;;  %v5090_v24 = vld [vmem:[%s8183_s2 + $0x18] sm:$0xff] }
0x3fe7   :  { %6036 = vmatprep.subr.mxu0 %v7490_v30 }
0x408f   :  { %v3664_v58 = vpop.f32.mrf.mxu0 }
0x4090   :  { %v3665_v62 = vadd.f32 %v7511_v20, %v3664_v58 }
0x4091   :  { %v5967_v38 = vpop.f32.mrf.mxu0 }
0x4092   :  { %5088 = vst [vmem:[%s8198_s17 + $0x18] sm:$0xff] %v3665_v62  ;;  %3670 = vmax.xlane.f32.xlu0 %v3665_v62 }
0x4097   :  { %v7762_v11 = vpop.f32.mrf.mxu0 }
0x4099   :  { %v5978_v33 = vpop.f32.mrf.mxu0 }
0x409f   :  { %v7764_v22 = vpop.f32.mrf.mxu0 }
0x40a1   :  { %v6024_v23 = vpop.f32.mrf.mxu0 }
0x40a8   :  { %3682 = vperm.xlu0 %6212, %v5090_v24  }
0x411b   :  { %v3671_v9 = vpop.xlane.xlu0 %3670 }
0x411c   :  { %vm3672_vm6 = vcmp.ge.f32.partialorder %v3665_v62, %v3671_v9 }
0x411d   :  { %v3673_v36 = vsel %vm3672_vm6, %v7523_v29, 128.0 }
0x411e   :  { %3674 = vmin.xlane.f32.xlu1 %v3673_v36 }
0x4123   :  { %v3683_v49 = vpop.permute.xlu0 %3682 }
0x4124   :  { %vm3684_vm7 = vcmp.eq.s32.totalorder %v6678_v13, %v3683_v49 }
0x4125   :  { %v5091_v44 = vsel %vm3684_vm7, 1.0, %v7490_v30 }
0x4126   :  { %v3692_v1 = vmul.f32 %v5091_v44, %v3691_v27 }
0x41a7   :  { %v3675_v55 = vpop.xlane.xlu1 %3674 }
0x41a8   :  { %vm3676_vm8 = vcmp.eq.f32.partialorder %v7523_v29, %v3675_v55 }
0x41a9   :  { %v5089_v18 = vsel %vm3676_vm8, 1.0, %v7490_v30 }
0x41aa   :  { %v3695_v2 = vmul.f32 %v5089_v18, %v3694_v45 }
0x41ac   :  { %v3696_v4 = vadd.f32 %v3695_v2, %v3692_v1  ;;  %v7948_v2 = vld [vmem:[%s8194_s13 + $0x10] sm:$0xff] }
0x41ae   :  { %6012 = vmatmul.mubr.f32.vlgmr.msra.gmra.mxu1 %v3696_v4  ;;  %v7955_v4 = vld [vmem:[%s8194_s13 + $0x8] sm:$0xff] }
0x41af   :  { %6059 = vmatpush3.msra.mxu1 %v7777_v6  ;;  %6090 = vmatprep.mubr.msk.f32.mxu1 %vm6509_vm1, %v7490_v30 }
0x41b0   :  { %6060 = vmatprep.subr.mxu1 %v7490_v30 }
0x41b1   :  { %6061 = vmatpush3.msra.mxu1 %v7786_v8 }
0x41b2   :  { %6062 = vmatprep.subr.mxu1 %v7490_v30 }
0x41b3   :  { %6063 = vmatpush3.msra.mxu1 %v7793_v10 }
0x41b4   :  { %6064 = vmatprep.subr.mxu1 %v7490_v30 }
0x41b5   :  { %6065 = vmatpush3.msra.mxu1 %v7800_v12 }
0x41b6   :  { %6066 = vmatprep.subr.mxu1 %v7490_v30 }
0x41b7   :  { %6067 = vmatpush3.msra.mxu1 %v7807_v14 }
0x41b8   :  { %6068 = vmatprep.subr.mxu1 %v7490_v30 }
0x41b9   :  { %6069 = vmatpush3.msra.mxu1 %v7814_v15 }
0x41ba   :  { %6070 = vmatprep.subr.mxu1 %v7490_v30 }
0x41bb   :  { %6071 = vmatpush3.msra.mxu1 %v7821_v16 }
0x41bc   :  { %6072 = vmatprep.subr.mxu1 %v7490_v30 }
0x41bd   :  { %6073 = vmatpush3.msra.mxu1 %v7828_v37 }
0x41be   :  { %6074 = vmatprep.subr.mxu1 %v7490_v30 }
0x41bf   :  { %6075 = vmatpush3.msra.mxu1 %v7835_v17 }
0x41c0   :  { %6076 = vmatprep.subr.mxu1 %v7490_v30 }
0x41c1   :  { %6077 = vmatpush3.msra.mxu1 %v7842_v19 }
0x41c2   :  { %6078 = vmatprep.subr.mxu1 %v7490_v30 }
0x41c3   :  { %6079 = vmatpush3.msra.mxu1 %v7849_v51 }
0x41c4   :  { %6080 = vmatprep.subr.mxu1 %v7490_v30 }
0x41c5   :  { %6081 = vmatpush3.msra.mxu1 %v7856_v53 }
0x41c6   :  { %6082 = vmatprep.subr.mxu1 %v7490_v30 }
0x41c7   :  { %6083 = vmatpush3.msra.mxu1 %v7863_v46 }
0x41c8   :  { %6084 = vmatprep.subr.mxu1 %v7490_v30 }
0x41c9   :  { %6085 = vmatpush3.msra.mxu1 %v7870_v32 }
0x41ca   :  { %6086 = vmatprep.subr.mxu1 %v7490_v30 }
0x41cb   :  { %6087 = vmatpush3.msra.mxu1 %v7877_v56 }
0x41cc   :  { %6088 = vmatprep.subr.mxu1 %v7490_v30 }
0x41cd   :  { %6089 = vmatpush3.msra.mxu1 %v7884_v7 }
0x41ce   :  { %6137 = vmatprep.subr.mxu1 %v7490_v30 }
0x426e   :  { %v3833_v61 = vpop.f32.mrf.mxu1 }
0x426f   :  { %v3834_v25 = vadd.f32 %v3833_v61, %v7762_v11  ;;  %v7962_v61 = vld [vmem:[%s8194_s13] sm:$0xff] }
0x4270   :  { %v6013_v3 = vpop.f32.mrf.mxu1 }
0x4271   :  { %v3837_v52 = vadd.f32 %v7892_v21, %v3834_v25  ;;  %v7970_v25 = vld [vmem:[%s8193_s12 + $0x18] sm:$0xff]  ;;  %v7979_v3 = vld [vmem:[%s8193_s12 + $0x10] sm:$0xff] }
0x4273   :  { %6406 = vtanh.f32 %v3837_v52  ;;  %v5094_v40 = vmul.f32 -1.442695, %v3837_v52  ;;  %v7986_v52 = vld [vmem:[%s8193_s12 + $0x8] sm:$0xff] }
0x4275   :  { %6408 = vpow2.f32 %v5094_v40 }
0x4280   :  { %v6407_v26 = vpop.eup %6406 }
0x4281   :  { %3847 = vrot.lane.b32.xlu1 %v6407_v26, %s6510_s21  ;;  %v7993_v26 = vld [vmem:[%s8193_s12] sm:$0xff] }
0x4282   :  { %v6409_v41 = vpop.eup %6408 }
0x4283   :  { %v3841_v42 = vadd.f32 1.0, %v6409_v41 }
0x4285   :  { %6410 = vrcp.f32 %v3841_v42 }
0x4292   :  { %v6411_v43 = vpop.eup %6410 }
0x4293   :  { %v3845_v60 = vmul.f32 %v6411_v43, %v7679_v34 }
0x42f3   :  { %v3848_v5 = vpop.permute.xlu1 %3847 }
0x42f4   :  { %v3850_v0 = vmul.f32 %v6411_v43, %v3848_v5 }
0x42f6   :  { %3852 = vrot.lane.b32.xlu0 %v3850_v0, %s6511_s5 }
0x4368   :  { %v3853_v59 = vpop.permute.xlu0 %3852 }
0x4369   :  { %v7898_v58 = vadd.f32 %v3853_v59, %v3845_v60 }
0x436b   :  { %6412 = vtanh.f32 %v7898_v58 }
0x4378   :  { %v6413_v62 = vpop.eup %6412 }
0x4379   :  { %3858 = vrot.lane.b32.xlu1 %v6413_v62, %s6510_s21 }
0x43eb   :  { %v3859_v38 = vpop.permute.xlu1 %3858 }
0x43ec   :  { %v3861_v11 = vmul.f32 %v6411_v43, %v3859_v38 }
0x43ee   :  { %3933 = vrot.lane.b32.xlu0 %v3861_v11, %s6511_s5  ;;  %v4133_v11 = vstv %s4132_s22 }
0x4460   :  { %v3934_v33 = vpop.permute.xlu0 %3933 }
0x4461   :  { %6034 = vmatmul.mubr.msk.f32.vlgmr.msra.gmra.mxu0 %vm293_vm5, %v3934_v33 }
0x4462   :  { %6037 = vmatpush3.msra.mxu0 %v7443_v48  ;;  %6044 = vmatprep.mubr.msk.f32.mxu0 %vm6509_vm1, %v7490_v30 }
0x4463   :  { %6038 = vmatprep.subr.mxu0 %v7490_v30 }
0x4464   :  { %6039 = vmatpush3.msra.mxu0 %v7448_v31 }
0x4465   :  { %6040 = vmatprep.subr.mxu0 %v7490_v30 }
0x4466   :  { %6041 = vmatpush3.msra.mxu0 %v7455_v50 }
0x4467   :  { %6042 = vmatprep.subr.mxu0 %v7490_v30 }
0x4468   :  { %6043 = vmatpush3.msra.mxu0 %v7462_v54 }
0x4469   :  { %6047 = vmatprep.subr.mxu0 %v7490_v30 }
0x4521   :  { %v4003_v34 = vpop.f32.mrf.mxu0 }
0x4522   :  { %v4004_v48 = vadd.f32 %v4003_v34, %v7764_v22  ;;  %v4130_v34 = vstv %s4129_s10 }
0x4523   :  { %v6035_v23 = vpop.f32.mrf.mxu0 }
0x4524   :  { %v4007_v24 = vadd.f32 %v7431_v28, %v4004_v48  ;;  %v8013_v23 = vld [vmem:[%s8198_s17] sm:$0xff] }
0x4526   :  { %6414 = vtanh.f32 %v4007_v24  ;;  %v5097_v31 = vmul.f32 -1.442695, %v4007_v24 }
0x4528   :  { %6416 = vpow2.f32 %v5097_v31 }
0x4533   :  { %v6415_v9 = vpop.eup %6414 }
0x4534   :  { %4017 = vrot.lane.b32.xlu1 %v6415_v9, %s6510_s21 }
0x4535   :  { %v6417_v36 = vpop.eup %6416 }
0x4536   :  { %v4011_v50 = vadd.f32 1.0, %v6417_v36 }
0x4538   :  { %6418 = vrcp.f32 %v4011_v50 }
0x4545   :  { %v6419_v49 = vpop.eup %6418 }
0x4546   :  { %v4015_v44 = vmul.f32 %v6419_v49, %v7700_v47  ;;  %v7939_v47 = vld [vmem:[%s8194_s13 + $0x18] sm:$0xff] }
0x45a6   :  { %v4018_v27 = vpop.permute.xlu1 %4017 }
0x45a7   :  { %v4020_v54 = vmul.f32 %v6419_v49, %v4018_v27  ;;  %v8078_v27 = vld [vmem:[%s8196_s15 + $0x8] sm:$0xff] }
0x45a9   :  { %4022 = vrot.lane.b32.xlu0 %v4020_v54, %s6511_s5  ;;  %v8085_v54 = vld [vmem:[%s8196_s15] sm:$0xff] }
0x461b   :  { %v4023_v22 = vpop.permute.xlu0 %4022 }
0x461c   :  { %v7919_v45 = vadd.f32 %v4023_v22, %v4015_v44 }
0x461e   :  { %6420 = vtanh.f32 %v7919_v45 }
0x462b   :  { %v6421_v28 = vpop.eup %6420 }
0x462c   :  { %4028 = vrot.lane.b32.xlu1 %v6421_v28, %s6510_s21 }
0x469e   :  { %v4029_v55 = vpop.permute.xlu1 %4028 }
0x469f   :  { %v4031_v18 = vmul.f32 %v6419_v49, %v4029_v55  ;;  %v8062_v49 = vld [vmem:[%s8196_s15 + $0x18] sm:$0xff]  ;;  %v8093_v55 = vld [vmem:[%s8195_s14] ss:$0 sm:$0xff] }
0x46a1   :  { %4033 = vrot.lane.b32.xlu0 %v4031_v18, %s6511_s5 }
0x4713   :  { %v4034_v1 = vpop.permute.xlu0 %4033 }
0x4714   :  { %6045 = vmatmul.mubr.msk.f32.vlgmr.msra.gmra.mxu0 %vm293_vm5, %v4034_v1 }
0x4715   :  { %6048 = vmatpush3.msra.mxu0 %v7709_v35  ;;  %6055 = vmatprep.mubr.msk.f32.mxu0 %vm6509_vm1, %v7490_v30 }
0x4716   :  { %6049 = vmatprep.subr.mxu0 %v7490_v30 }
0x4717   :  { %6050 = vmatpush3.msra.mxu0 %v7718_v63 }
0x4718   :  { %6051 = vmatprep.subr.mxu0 %v7490_v30 }
0x4719   :  { %6052 = vmatpush3.msra.mxu0 %v7725_v39 }
0x471a   :  { %6053 = vmatprep.subr.mxu0 %v7490_v30 }
0x471b   :  { %6054 = vmatpush3.msra.mxu0 %v7732_v57 }
0x471c   :  { %6056 = vmatmul.mubr.msk.f32.vlgmr.msra.gmra.mxu0 %vm293_vm5, %v3934_v33  ;;  %6093 = vmatprep.subr.mxu0 %v7490_v30 }
0x471d   :  { %6094 = vmatpush3.msra.mxu0 %v7939_v47  ;;  %6101 = vmatprep.mubr.msk.f32.mxu0 %vm6509_vm1, %v7490_v30 }
0x471e   :  { %6095 = vmatprep.subr.mxu0 %v7490_v30 }
0x471f   :  { %6096 = vmatpush3.msra.mxu0 %v7948_v2 }
0x4720   :  { %6097 = vmatprep.subr.mxu0 %v7490_v30 }
0x4721   :  { %6098 = vmatpush3.msra.mxu0 %v7955_v4 }
0x4722   :  { %6099 = vmatprep.subr.mxu0 %v7490_v30 }
0x4723   :  { %6100 = vmatpush3.msra.mxu0 %v7962_v61 }
0x4724   :  { %6102 = vmatmul.mubr.msk.f32.vlgmr.msra.gmra.mxu0 %vm293_vm5, %v4034_v1  ;;  %6104 = vmatprep.subr.mxu0 %v7490_v30 }
0x4725   :  { %6105 = vmatpush3.msra.mxu0 %v7970_v25  ;;  %6112 = vmatprep.mubr.msk.f32.mxu0 %vm6509_vm1, %v7490_v30 }
0x4726   :  { %6106 = vmatprep.subr.mxu0 %v7490_v30 }
0x4727   :  { %6107 = vmatpush3.msra.mxu0 %v7979_v3 }
0x4728   :  { %6108 = vmatprep.subr.mxu0 %v7490_v30 }
0x4729   :  { %6109 = vmatpush3.msra.mxu0 %v7986_v52 }
0x472a   :  { %6110 = vmatprep.subr.mxu0 %v7490_v30 }
0x472b   :  { %6111 = vmatpush3.msra.mxu0 %v7993_v26 }
0x472c   :  { %6115 = vmatprep.subr.mxu0 %v7490_v30 }
0x47d4   :  { %v4103_v40 = vpop.f32.mrf.mxu0 }
0x47d5   :  { %v4104_v41 = vadd.f32 %v7511_v20, %v4103_v40  ;;  %v5101_v20 = vld [vmem:[%s8183_s2 + $0x20] sm:$0xff] }
0x47d6   :  { %v6046_v42 = vpop.f32.mrf.mxu0 }
0x47d7   :  { %5099 = vst [vmem:[%s8198_s17 + $0x20] sm:$0xff] %v4104_v41  ;;  %4109 = vmax.xlane.f32.xlu1 %v4104_v41 }
0x47dc   :  { %v4202_v43 = vpop.f32.mrf.mxu0 }
0x47de   :  { %v6057_v5 = vpop.f32.mrf.mxu0 }
0x47e4   :  { %v8001_v0 = vpop.f32.mrf.mxu0 }
0x47e6   :  { %v6103_v60 = vpop.f32.mrf.mxu0 }
0x4860   :  { %v4110_v59 = vpop.xlane.xlu1 %4109 }
0x4861   :  { %vm4111_vm9 = vcmp.ge.f32.partialorder %v4104_v41, %v4110_v59 }
0x4862   :  { %v4112_v62 = vsel %vm4111_vm9, %v7523_v29, 128.0 }
0x4863   :  { %4113 = vmin.xlane.f32.xlu0 %v4112_v62 }
0x4879   :  { %4121 = vperm.xlu0 %6212, %v5101_v20  }
0x48ec   :  { %v4114_v38 = vpop.xlane.xlu0 %4113 }
0x48ed   :  { %vm4115_vm10 = vcmp.eq.f32.partialorder %v7523_v29, %v4114_v38 }
0x48ee   :  { %v5100_v33 = vsel %vm4115_vm10, 1.0, %v7490_v30 }
0x48ef   :  { %v4134_v9 = vmul.f32 %v5100_v33, %v4133_v11 }
0x48f4   :  { %v4122_v48 = vpop.permute.xlu0 %4121 }
0x48f5   :  { %vm4123_vm11 = vcmp.eq.s32.totalorder %v6678_v13, %v4122_v48 }
0x48f6   :  { %v5102_v24 = vsel %vm4123_vm11, 1.0, %v8013_v23 }
0x48f7   :  { %v4131_v31 = vmul.f32 %v5102_v24, %v4130_v34 }
0x48f9   :  { %v4135_v36 = vadd.f32 %v4134_v9, %v4131_v31 }
0x48fb   :  { %6091 = vmatmul.mubr.f32.vlgmr.msra.gmra.mxu1 %v4135_v36 }
0x48fc   :  { %6138 = vmatpush3.msra.mxu1 %v7777_v6  ;;  %6169 = vmatprep.mubr.msk.f32.mxu1 %vm6509_vm1, %v8013_v23 }
0x48fd   :  { %6139 = vmatprep.subr.mxu1 %v8013_v23 }
0x48fe   :  { %6140 = vmatpush3.msra.mxu1 %v7786_v8 }
0x48ff   :  { %6141 = vmatprep.subr.mxu1 %v8013_v23 }
0x4900   :  { %6142 = vmatpush3.msra.mxu1 %v7793_v10 }
0x4901   :  { %6143 = vmatprep.subr.mxu1 %v8013_v23 }
0x4902   :  { %6144 = vmatpush3.msra.mxu1 %v7800_v12 }
0x4903   :  { %6145 = vmatprep.subr.mxu1 %v8013_v23 }
0x4904   :  { %6146 = vmatpush3.msra.mxu1 %v7807_v14 }
0x4905   :  { %6147 = vmatprep.subr.mxu1 %v8013_v23 }
0x4906   :  { %6148 = vmatpush3.msra.mxu1 %v7814_v15 }
0x4907   :  { %6149 = vmatprep.subr.mxu1 %v8013_v23 }
0x4908   :  { %6150 = vmatpush3.msra.mxu1 %v7821_v16 }
0x4909   :  { %6151 = vmatprep.subr.mxu1 %v8013_v23 }
0x490a   :  { %6152 = vmatpush3.msra.mxu1 %v7828_v37 }
0x490b   :  { %6153 = vmatprep.subr.mxu1 %v8013_v23 }
0x490c   :  { %6154 = vmatpush3.msra.mxu1 %v7835_v17 }
0x490d   :  { %6155 = vmatprep.subr.mxu1 %v8013_v23 }
0x490e   :  { %6156 = vmatpush3.msra.mxu1 %v7842_v19 }
0x490f   :  { %6157 = vmatprep.subr.mxu1 %v8013_v23 }
0x4910   :  { %6158 = vmatpush3.msra.mxu1 %v7849_v51 }
0x4911   :  { %6159 = vmatprep.subr.mxu1 %v8013_v23 }
0x4912   :  { %6160 = vmatpush3.msra.mxu1 %v7856_v53 }
0x4913   :  { %6161 = vmatprep.subr.mxu1 %v8013_v23 }
0x4914   :  { %6162 = vmatpush3.msra.mxu1 %v7863_v46 }
0x4915   :  { %6163 = vmatprep.subr.mxu1 %v8013_v23 }
0x4916   :  { %6164 = vmatpush3.msra.mxu1 %v7870_v32 }
0x4917   :  { %6165 = vmatprep.subr.mxu1 %v8013_v23 }
0x4918   :  { %6166 = vmatpush3.msra.mxu1 %v7877_v56 }
0x4919   :  { %6167 = vmatprep.subr.mxu1 %v8013_v23 }
0x491a   :  { %6168 = vmatpush3.msra.mxu1 %v7884_v7 }
0x49bb   :  { %v4272_v30 = vpop.f32.mrf.mxu1 }
0x49bc   :  { %v4273_v6 = vadd.f32 %v4272_v30, %v4202_v43 }
0x49bd   :  { %v6092_v8 = vpop.f32.mrf.mxu1 }
0x49be   :  { %v4276_v10 = vadd.f32 %v7892_v21, %v4273_v6 }
0x49c0   :  { %6422 = vtanh.f32 %v4276_v10  ;;  %v5105_v14 = vmul.f32 -1.442695, %v4276_v10 }
0x49c2   :  { %6424 = vpow2.f32 %v5105_v14 }
0x49cd   :  { %v6423_v12 = vpop.eup %6422 }
0x49ce   :  { %4286 = vrot.lane.b32.xlu1 %v6423_v12, %s6510_s21 }
0x49cf   :  { %v6425_v15 = vpop.eup %6424 }
0x49d0   :  { %v4280_v16 = vadd.f32 1.0, %v6425_v15 }
0x49d2   :  { %6426 = vrcp.f32 %v4280_v16 }
0x49df   :  { %v6427_v37 = vpop.eup %6426 }
0x49e0   :  { %v4284_v51 = vmul.f32 %v6427_v37, %v7898_v58  ;;  %v8071_v58 = vld [vmem:[%s8196_s15 + $0x10] sm:$0xff] }
0x4a40   :  { %v4287_v17 = vpop.permute.xlu1 %4286 }
0x4a41   :  { %v4289_v19 = vmul.f32 %v6427_v37, %v4287_v17 }
0x4a43   :  { %4291 = vrot.lane.b32.xlu1 %v4289_v19, %s6511_s5 }
0x4ab5   :  { %v4292_v53 = vpop.permute.xlu1 %4291 }
0x4ab6   :  { %v8053_v46 = vadd.f32 %v4292_v53, %v4284_v51 }
0x4ab8   :  { %6428 = vtanh.f32 %v8053_v46 }
0x4ac5   :  { %v6429_v32 = vpop.eup %6428 }
0x4ac6   :  { %4297 = vrot.lane.b32.xlu0 %v6429_v32, %s6510_s21 }
0x4b38   :  { %v4298_v56 = vpop.permute.xlu0 %4297 }
0x4b39   :  { %v4300_v7 = vmul.f32 %v6427_v37, %v4298_v56 }
0x4b3b   :  { %4372 = vrot.lane.b32.xlu1 %v4300_v7, %s6511_s5 }
0x4bad   :  { %v4373_v50 = vpop.permute.xlu1 %4372 }
0x4bae   :  { %6113 = vmatmul.mubr.msk.f32.vlgmr.msra.gmra.mxu0 %vm293_vm5, %v4373_v50 }
0x4baf   :  { %6116 = vmatpush3.msra.mxu0 %v8062_v49  ;;  %6123 = vmatprep.mubr.msk.f32.mxu0 %vm6509_vm1, %v8013_v23 }
0x4bb0   :  { %6117 = vmatprep.subr.mxu0 %v8013_v23 }
0x4bb1   :  { %6118 = vmatpush3.msra.mxu0 %v8071_v58 }
0x4bb2   :  { %6119 = vmatprep.subr.mxu0 %v8013_v23 }
0x4bb3   :  { %6120 = vmatpush3.msra.mxu0 %v8078_v27 }
0x4bb4   :  { %6121 = vmatprep.subr.mxu0 %v8013_v23 }
0x4bb5   :  { %6122 = vmatpush3.msra.mxu0 %v8085_v54 }
0x4bb6   :  { %6126 = vmatprep.subr.mxu0 %v8013_v23 }
0x4c6e   :  { %v4442_v44 = vpop.f32.mrf.mxu0 }
0x4c6f   :  { %v4443_v22 = vadd.f32 %v4442_v44, %v8001_v0 }
0x4c70   :  { %v6114_v28 = vpop.f32.mrf.mxu0 }
0x4c71   :  { %v4446_v18 = vadd.f32 %v8093_v55, %v4443_v22 }
0x4c73   :  { %6430 = vtanh.f32 %v4446_v18  ;;  %v5108_v40 = vmul.f32 -1.442695, %v4446_v18 }
0x4c75   :  { %6432 = vpow2.f32 %v5108_v40 }
0x4c80   :  { %v6431_v1 = vpop.eup %6430 }
0x4c81   :  { %4456 = vrot.lane.b32.xlu0 %v6431_v1, %s6510_s21 }
0x4c82   :  { %v6433_v41 = vpop.eup %6432 }
0x4c83   :  { %v4450_v42 = vadd.f32 1.0, %v6433_v41 }
0x4c85   :  { %6434 = vrcp.f32 %v4450_v42 }
0x4c92   :  { %v6435_v43 = vpop.eup %6434 }
0x4c93   :  { %v4454_v60 = vmul.f32 %v6435_v43, %v7919_v45 }
0x4cf3   :  { %v4457_v5 = vpop.permute.xlu0 %4456 }
0x4cf4   :  { %v4459_v0 = vmul.f32 %v6435_v43, %v4457_v5 }
0x4cf6   :  { %4461 = vrot.lane.b32.xlu1 %v4459_v0, %s6511_s5 }
0x4d68   :  { %v4462_v59 = vpop.permute.xlu1 %4461 }
0x4d69   :  { %v8099_v62 = vadd.f32 %v4462_v59, %v4454_v60 }
0x4d6b   :  { %6436 = vtanh.f32 %v8099_v62 }
0x4d78   :  { %v6437_v20 = vpop.eup %6436 }
0x4d79   :  { %4467 = vrot.lane.b32.xlu0 %v6437_v20, %s6510_s21 }
0x4deb   :  { %v4468_v38 = vpop.permute.xlu0 %4467 }
0x4dec   :  { %v4470_v11 = vmul.f32 %v6435_v43, %v4468_v38 }
0x4dee   :  { %4472 = vrot.lane.b32.xlu1 %v4470_v11, %s6511_s5 }
0x4e60   :  { %v4473_v33 = vpop.permute.xlu1 %4472 }
0x4e61   :  { %6124 = vmatmul.mubr.msk.f32.vlgmr.msra.gmra.mxu0 %vm293_vm5, %v4473_v33 }
0x4e62   :  { %6127 = vmatpush3.msra.mxu0 %v7709_v35  ;;  %6134 = vmatprep.mubr.msk.f32.mxu0 %vm6509_vm1, %v8013_v23 }
0x4e63   :  { %6128 = vmatprep.subr.mxu0 %v8013_v23 }
0x4e64   :  { %6129 = vmatpush3.msra.mxu0 %v7718_v63  ;;  %v8140_v63 = vld [vmem:[%s8197_s16] ss:$0 sm:$0xff]  ;;  %s5114_s16 = sld [smem:[#allocation5 + $0x5]] }
0x4e65   :  { %6130 = vmatprep.subr.mxu0 %v8013_v23 }
0x4e66   :  { %6131 = vmatpush3.msra.mxu0 %v7725_v39 }
0x4e67   :  { %6132 = vmatprep.subr.mxu0 %v8013_v23 }
0x4e68   :  { %6133 = vmatpush3.msra.mxu0 %v7732_v57 }
0x4e69   :  { %6135 = vmatmul.mubr.msk.f32.vlgmr.msra.gmra.mxu0 %vm293_vm5, %v4373_v50  ;;  %6172 = vmatprep.subr.mxu0 %v8013_v23 }
0x4e6a   :  { %6173 = vmatpush3.msra.mxu0 %v7939_v47  ;;  %6180 = vmatprep.mubr.msk.f32.mxu0 %vm6509_vm1, %v8013_v23  ;;  %p4566_p9 = scmp.ne.s32.totalorder %s5114_s16, 0 }
0x4e6b   :  { %6174 = vmatprep.subr.mxu0 %v8013_v23 }
0x4e6c   :  { %6175 = vmatpush3.msra.mxu0 %v7948_v2  ;;  %s4567_s7 = scalar_select %p4566_p9, 1, 0 }
0x4e6d   :  { %6176 = vmatprep.subr.mxu0 %v8013_v23 }
0x4e6e   :  { %6177 = vmatpush3.msra.mxu0 %v7955_v4  ;;  %s4568_s3 = scvt.s32.f32 %s4567_s7 }
0x4e6f   :  { %6178 = vmatprep.subr.mxu0 %v8013_v23 }
0x4e70   :  { %6179 = vmatpush3.msra.mxu0 %v7962_v61  ;;  %v5112_v61 = vld [vmem:[%s8183_s2 + $0x28] sm:$0xff]  ;;  %s4571_s12 = ssub.f32 1.0, %s4568_s3 }
0x4e71   :  { %6181 = vmatmul.mubr.msk.f32.vlgmr.msra.gmra.mxu0 %vm293_vm5, %v4473_v33  ;;  %6183 = vmatprep.subr.mxu0 %v8013_v23 }
0x4e72   :  { %6184 = vmatpush3.msra.mxu0 %v7970_v25  ;;  %6191 = vmatprep.mubr.msk.f32.mxu0 %vm6509_vm1, %v8013_v23  ;;  %v4572_v48 = vstv %s4571_s12 }
0x4e73   :  { %6185 = vmatprep.subr.mxu0 %v8013_v23 }
0x4e74   :  { %6186 = vmatpush3.msra.mxu0 %v7979_v3 }
0x4e75   :  { %6187 = vmatprep.subr.mxu0 %v8013_v23 }
0x4e76   :  { %6188 = vmatpush3.msra.mxu0 %v7986_v52 }
0x4e77   :  { %6189 = vmatprep.subr.mxu0 %v8013_v23 }
0x4e78   :  { %6190 = vmatpush3.msra.mxu0 %v7993_v26  ;;  %v4569_v26 = vstv %s4568_s3 }
0x4e79   :  { %6194 = vmatprep.subr.mxu0 %v8013_v23 }
0x4f21   :  { %v4542_v35 = vpop.f32.mrf.mxu0 }
0x4f22   :  { %v4543_v39 = vadd.f32 %v8140_v63, %v4542_v35 }
0x4f23   :  { %v6125_v57 = vpop.f32.mrf.mxu0 }
0x4f24   :  { %5110 = vst [vmem:[%s8198_s17 + $0x28] sm:$0xff] %v4543_v39  ;;  %4548 = vmax.xlane.f32.xlu0 %v4543_v39 }
0x4f29   :  { %v4641_v45 = vpop.f32.mrf.mxu0 }
0x4f2b   :  { %v6136_v47 = vpop.f32.mrf.mxu0 }
0x4f31   :  { %v4806_v2 = vpop.f32.mrf.mxu0 }
0x4f33   :  { %v6182_v4 = vpop.f32.mrf.mxu0 }
0x4f3a   :  { %4560 = vperm.xlu0 %6212, %v5112_v61  }
0x4fad   :  { %v4549_v25 = vpop.xlane.xlu0 %4548 }
0x4fae   :  { %vm4550_vm12 = vcmp.ge.f32.partialorder %v4543_v39, %v4549_v25 }
0x4faf   :  { %v4551_v3 = vsel %vm4550_vm12, %v7523_v29, 128.0 }
0x4fb0   :  { %4552 = vmin.xlane.f32.xlu1 %v4551_v3 }
0x4fb5   :  { %v4561_v52 = vpop.permute.xlu0 %4560 }
0x4fb6   :  { %vm4562_vm13 = vcmp.eq.s32.totalorder %v6678_v13, %v4561_v52 }
0x4fb7   :  { %v5113_v34 = vsel %vm4562_vm13, 1.0, %v8013_v23 }
0x4fb8   :  { %v4570_v31 = vmul.f32 %v5113_v34, %v4569_v26 }
0x5039   :  { %v4553_v24 = vpop.xlane.xlu1 %4552 }
0x503a   :  { %vm4554_vm14 = vcmp.eq.f32.partialorder %v7523_v29, %v4553_v24 }
0x503b   :  { %v5111_v9 = vsel %vm4554_vm14, 1.0, %v8013_v23 }
0x503c   :  { %v4573_v36 = vmul.f32 %v5111_v9, %v4572_v48 }
0x503e   :  { %v4574_v30 = vadd.f32 %v4573_v36, %v4570_v31 }
0x5040   :  { %6170 = vmatmul.mubr.f32.vlgmr.msra.gmra.mxu1 %v4574_v30 }
0x5100   :  { %v4711_v6 = vpop.f32.mrf.mxu1 }
0x5101   :  { %v4712_v8 = vadd.f32 %v4711_v6, %v4641_v45 }
0x5102   :  { %v6171_v10 = vpop.f32.mrf.mxu1 }
0x5103   :  { %v4715_v12 = vadd.f32 %v7892_v21, %v4712_v8 }
0x5105   :  { %6438 = vtanh.f32 %v4715_v12  ;;  %v5116_v14 = vmul.f32 -1.442695, %v4715_v12 }
0x5107   :  { %6440 = vpow2.f32 %v5116_v14 }
0x5112   :  { %v6439_v13 = vpop.eup %6438 }
0x5113   :  { %4725 = vrot.lane.b32.xlu1 %v6439_v13, %s6510_s21 }
0x5114   :  { %v6441_v15 = vpop.eup %6440 }
0x5115   :  { %v4719_v16 = vadd.f32 1.0, %v6441_v15 }
0x5117   :  { %6442 = vrcp.f32 %v4719_v16 }
0x5124   :  { %v6443_v29 = vpop.eup %6442 }
0x5125   :  { %v4723_v19 = vmul.f32 %v6443_v29, %v8053_v46 }
0x5185   :  { %v4726_v37 = vpop.permute.xlu1 %4725 }
0x5186   :  { %v4728_v17 = vmul.f32 %v6443_v29, %v4726_v37 }
0x5188   :  { %4730 = vrot.lane.b32.xlu0 %v4728_v17, %s6511_s5 }
0x51fa   :  { %v4731_v51 = vpop.permute.xlu0 %4730 }
0x51fb   :  { %v4733_v53 = vadd.f32 %v4731_v51, %v4723_v19 }
0x51fd   :  { %6444 = vtanh.f32 %v4733_v53 }
0x520a   :  { %v6445_v21 = vpop.eup %6444 }
0x520b   :  { %4736 = vrot.lane.b32.xlu1 %v6445_v21, %s6510_s21 }
0x527d   :  { %v4737_v32 = vpop.permute.xlu1 %4736 }
0x527e   :  { %v4739_v56 = vmul.f32 %v6443_v29, %v4737_v32 }
0x5280   :  { %4811 = vrot.lane.b32.xlu0 %v4739_v56, %s6511_s5 }
0x52f2   :  { %v4812_v7 = vpop.permute.xlu0 %4811 }
0x52f3   :  { %6192 = vmatmul.mubr.msk.f32.vlgmr.msra.gmra.mxu0 %vm293_vm5, %v4812_v7 }
0x52f4   :  { %6195 = vmatpush3.msra.mxu0 %v8062_v49  ;;  %6202 = vmatprep.mubr.msk.f32.mxu0 %vm6509_vm1, %v8013_v23 }
0x52f5   :  { %6196 = vmatprep.subr.mxu0 %v8013_v23 }
0x52f6   :  { %6197 = vmatpush3.msra.mxu0 %v8071_v58 }
0x52f7   :  { %6198 = vmatprep.subr.mxu0 %v8013_v23 }
0x52f8   :  { %6199 = vmatpush3.msra.mxu0 %v8078_v27 }
0x52f9   :  { %6200 = vmatprep.subr.mxu0 %v8013_v23 }
0x52fa   :  { %6201 = vmatpush3.msra.mxu0 %v8085_v54 }
0x53b3   :  { %v4881_v46 = vpop.f32.mrf.mxu0 }
0x53b4   :  { %v4882_v50 = vadd.f32 %v4881_v46, %v4806_v2 }
0x53b5   :  { %v6193_v44 = vpop.f32.mrf.mxu0 }
0x53b6   :  { %v4885_v49 = vadd.f32 %v8093_v55, %v4882_v50 }
0x53b8   :  { %6446 = vtanh.f32 %v4885_v49  ;;  %v5119_v28 = vmul.f32 -1.442695, %v4885_v49 }
0x53ba   :  { %6448 = vpow2.f32 %v5119_v28 }
0x53c5   :  { %v6447_v22 = vpop.eup %6446 }
0x53c6   :  { %4895 = vrot.lane.b32.xlu1 %v6447_v22, %s6510_s21 }
0x53c7   :  { %v6449_v58 = vpop.eup %6448 }
0x53c8   :  { %v4889_v18 = vadd.f32 1.0, %v6449_v58 }
0x53ca   :  { %6450 = vrcp.f32 %v4889_v18 }
0x53d7   :  { %v6451_v1 = vpop.eup %6450 }
0x53d8   :  { %v4893_v23 = vmul.f32 %v6451_v1, %v8099_v62 }
0x5438   :  { %v4896_v27 = vpop.permute.xlu1 %4895 }
0x5439   :  { %v4898_v40 = vmul.f32 %v6451_v1, %v4896_v27 }
0x543b   :  { %4900 = vrot.lane.b32.xlu0 %v4898_v40, %s6511_s5 }
0x54ad   :  { %v4901_v54 = vpop.permute.xlu0 %4900 }
0x54ae   :  { %v4903_v41 = vadd.f32 %v4901_v54, %v4893_v23 }
0x54b0   :  { %6452 = vtanh.f32 %v4903_v41 }
0x54bd   :  { %v6453_v55 = vpop.eup %6452 }
0x54be   :  { %4906 = vrot.lane.b32.xlu1 %v6453_v55, %s6510_s21 }
0x5530   :  { %v4907_v42 = vpop.permute.xlu1 %4906 }
0x5531   :  { %v4909_v43 = vmul.f32 %v6451_v1, %v4907_v42 }
0x5533   :  { %4911 = vrot.lane.b32.xlu0 %v4909_v43, %s6511_s5 }
0x55a5   :  { %v4912_v5 = vpop.permute.xlu0 %4911 }
0x55a6   :  { %6203 = vmatmul.mubr.msk.f32.vlgmr.msra.gmra.mxu0 %vm293_vm5, %v4912_v5 }
0x5666   :  { %v4981_v0 = vpop.f32.mrf.mxu0 }
0x5667   :  { %v4982_v60 = vadd.f32 %v8140_v63, %v4981_v0 }
0x5668   :  { %v6204_v59 = vpop.f32.mrf.mxu0 }
0x5669   :  { %5121 = vst [vmem:[%s8198_s17 + $0x30] sm:$0xff] %v4982_v60 }

</bundles_post_ra>
